<compile_context>
chip_gen: v5e
topology: v5e:2x2
jax: 0.10.0
libtpu: 0.0.40
codegen_flags: <defaults>
</compile_context>

<pallas_src>
import functools
import math

import jax
import jax.numpy as jnp
from jax import lax
from jax.experimental import pallas as pl
from jax.experimental.pallas import tpu as pltpu

# ----------------------------- model config ---------------------------------
BATCH = 2
SEQ = 64                 # num_tokens_q = num_tokens_kv (chess board squares)
HIDDEN = 128             # hidden_size
NUM_HEADS = 4            # num_attention_heads
DIM_PER_HEAD = HIDDEN // NUM_HEADS
FFN = 256                # ffn_hidden_size
ALPHA = 1.0
EPS = 1e-5
VEC_W = 3 * HIDDEN       # packed bias/LN slab width (>= FFN and >= 3H)


def _layer_norm(x, gamma, beta, eps):
    # PyTorch LayerNorm: biased variance over last dim (f32 math).
    mean = jnp.mean(x, axis=-1, keepdims=True)
    var = jnp.mean(jnp.square(x - mean), axis=-1, keepdims=True)
    return (x - mean) * jax.lax.rsqrt(var + eps) * gamma + beta


def encoder_layer_kernel(bb, x_ref, wqkv_ref, wo_ref, w1_ref, w2_ref, vec_ref,
                         out_ref):
    # TODO(synk): smolgen / RPE / SoftMoE / dual-attention / dropout branches of
    # EncoderLayer are disabled in this configuration and not implemented.

    m = bb * SEQ

    # ---- whole-block load (leading-dim reshape is layout-free) --------------
    x = x_ref[...].reshape(m, HIDDEN).astype(jnp.float32)      # (bb*S, H)
    x_bf = x.astype(jnp.bfloat16)

    vec = vec_ref[...]                          # (8, VEC_W) f32, packed vectors
    bqkv = vec[0]                               # (3H,)  (Q third pre-scaled)
    bo = vec[1, :HIDDEN]
    g1, be1 = vec[2, :HIDDEN], vec[3, :HIDDEN]
    b1 = vec[4, :FFN]
    b2 = vec[5, :HIDDEN]
    g2, be2 = vec[6, :HIDDEN], vec[7, :HIDDEN]

    # ---- fused QKV projection (bf16 operands, f32 accumulation) -------------
    # 1/sqrt(dim_per_head) is folded into the Q columns of wqkv/bqkv on host.
    qkv = jnp.dot(x_bf, wqkv_ref[...],
                  preferred_element_type=jnp.float32) + bqkv           # (bb*S, 3H)
    qkv_bf = qkv.astype(jnp.bfloat16)           # single full-width convert pass

    # ---- attention: per-(b,h) softmax feeding straight into p@v -------------
    # TODO(synk): lane-pairing of two (S,S) score tiles per vreg (64-lane fill)
    # is a possible further micro-opt; skipped, kernel is overhead-bound.
    pv_rows = []
    for b in range(bb):
        r0 = b * SEQ
        head_outs = []
        for h in range(NUM_HEADS):
            lo = h * DIM_PER_HEAD
            qh = qkv_bf[r0:r0 + SEQ, lo:lo + DIM_PER_HEAD]
            kh = qkv_bf[r0:r0 + SEQ, HIDDEN + lo:HIDDEN + lo + DIM_PER_HEAD]
            vh = qkv_bf[r0:r0 + SEQ,
                        2 * HIDDEN + lo:2 * HIDDEN + lo + DIM_PER_HEAD]
            s = lax.dot_general(qh, kh, (((1,), (1,)), ((), ())),
                                preferred_element_type=jnp.float32)     # (S, S)
            s = s - jnp.max(s, axis=-1, keepdims=True)
            p = jnp.exp(s)
            p = p / jnp.sum(p, axis=-1, keepdims=True)   # exact softmax denom
            head_outs.append(
                jnp.dot(p.astype(jnp.bfloat16), vh,
                        preferred_element_type=jnp.float32))            # (S, D)
        pv_rows.append(jnp.concatenate(head_outs, axis=-1))             # (S, H)
    pv = pv_rows[0] if bb == 1 else jnp.concatenate(pv_rows, axis=0)    # (bb*S, H)

    # ---- single K=128 output projection (MXU fully filled, dense output) ----
    attn_out = jnp.dot(pv.astype(jnp.bfloat16), wo_ref[...],
                       preferred_element_type=jnp.float32) + bo         # (bb*S, H)

    # ---- residual + LayerNorm 1 (f32) ----------------------------------------
    resid1 = x + attn_out if ALPHA == 1.0 else x * ALPHA + attn_out
    out1 = _layer_norm(resid1, g1, be1, EPS)

    # ---- FFN (ReLUSquared), bf16 matmul operands -----------------------------
    h1 = jnp.dot(out1.astype(jnp.bfloat16), w1_ref[...],
                 preferred_element_type=jnp.float32) + b1
    h1 = jnp.maximum(h1, 0.0)
    h1 = h1 * h1
    mlp_out = jnp.dot(h1.astype(jnp.bfloat16), w2_ref[...],
                      preferred_element_type=jnp.float32) + b2

    # ---- residual + LayerNorm 2 (f32) ----------------------------------------
    resid2 = out1 + mlp_out if ALPHA == 1.0 else out1 * ALPHA + mlp_out
    out2 = _layer_norm(resid2, g2, be2, EPS)

    # ---- single lane-dense whole-block store ---------------------------------
    out_ref[...] = out2.reshape(bb, SEQ, HIDDEN).astype(out_ref.dtype)


def _num_tensorcores() -> int:
    """TensorCores per chip (structural query; string fallback; default 1)."""
    try:
        info = pltpu.get_tpu_info()
        for attr in ("num_cores", "core_count", "tensorcores_per_chip",
                     "num_tensorcores", "cores_per_chip"):
            v = getattr(info, attr, None)
            if isinstance(v, int) and v > 0:
                return v
    except Exception:
        pass
    try:
        kind = jax.devices()[0].device_kind.lower()
        if "v7" in kind:
            return 2
    except Exception:
        pass
    return 1


def _batches_per_block(batch: int) -> int:
    """Batch rows fused per grid step.

    Single-TC chips (v5e/v6e): fuse the whole batch into one grid step
    (M = B*S fills the MXU, no per-step overhead).  2-TC chips (v7x):
    bb = B // 2 so each core fuses its half of the batch.
    """
    tc = _num_tensorcores()
    bb = max(1, batch // tc)
    while batch % bb:
        bb -= 1
    return bb


def _pack_vectors(params, qkv_scale):
    """Pack the 8 small bias / LayerNorm vectors into one (8, VEC_W) f32 slab.

    The Q third of bqkv is pre-scaled by 1/sqrt(dim_per_head).
    """
    def row(v):
        v = jnp.asarray(v, jnp.float32).reshape(-1)
        return jnp.pad(v, (0, VEC_W - v.shape[0]))
    bqkv = jnp.asarray(params["bqkv"], jnp.float32).reshape(-1)
    bqkv = bqkv.at[:HIDDEN].multiply(qkv_scale)
    return jnp.stack([
        row(bqkv), row(params["bo"]),
        row(params["ln1_g"]), row(params["ln1_b"]),
        row(params["b1"]), row(params["b2"]),
        row(params["ln2_g"]), row(params["ln2_b"]),
    ], axis=0)


@jax.jit
def encoder_layer(x, params):
    B, S, H = x.shape
    bb = _batches_per_block(B)
    grid = (B // bb,)

    # Fold the attention scale into the Q columns of Wqkv (host-side, once).
    qkv_scale = 1.0 / math.sqrt(DIM_PER_HEAD)
    wqkv_f32 = jnp.asarray(params["wqkv"], jnp.float32)
    wqkv_f32 = wqkv_f32.at[:, :HIDDEN].multiply(qkv_scale)

    # bf16 matmul operands (f32 accumulation happens inside the kernel).
    wqkv = wqkv_f32.astype(jnp.bfloat16)
    wo = params["wo"].astype(jnp.bfloat16)
    w1 = params["w1"].astype(jnp.bfloat16)
    w2 = params["w2"].astype(jnp.bfloat16)
    vec = _pack_vectors(params, qkv_scale)

    # NOTE: the five constant-index operands below could be single-buffered
    # (pipeline_mode=pl.Buffered(1)); irrelevant at this size (<1 MiB total),
    # left default for lowering robustness.
    full = lambda shape: pl.BlockSpec(shape, lambda b: (0,) * len(shape))
    in_specs = [
        pl.BlockSpec((bb, S, H), lambda b: (b, 0, 0)),   # x
        full((H, 3 * H)),                                # wqkv (bf16, Q pre-scaled)
        full((H, H)),                                    # wo   (bf16)
        full((H, FFN)),                                  # w1   (bf16)
        full((FFN, H)),                                  # w2   (bf16)
        full((8, VEC_W)),                                # packed biases / LN (f32)
    ]
    out_spec = pl.BlockSpec((bb, S, H), lambda b: (b, 0, 0))

    # Advisory cost model for XLA scheduling around the custom call.
    flops = B * (
        2 * S * H * 3 * H                                # qkv projection
        + NUM_HEADS * (2 * S * S * DIM_PER_HEAD) * 2     # scores + p@v
        + 2 * S * H * H                                  # output projection
        + 2 * S * H * FFN * 2                            # ffn1 + ffn2
    )
    transcendentals = B * (NUM_HEADS * S * S + 2 * S)
    bytes_accessed = (
        2 * B * S * H * 4                                # x in + out (f32)
        + (H * 3 * H + H * H + H * FFN + FFN * H) * 2    # bf16 weights
        + 8 * VEC_W * 4                                  # packed vector slab
    )

    return pl.pallas_call(
        functools.partial(encoder_layer_kernel, bb),
        out_shape=jax.ShapeDtypeStruct((B, S, H), x.dtype),
        grid_spec=pltpu.PrefetchScalarGridSpec(
            num_scalar_prefetch=0,
            grid=grid,
            in_specs=in_specs,
            out_specs=out_spec,
        ),
        compiler_params=pltpu.CompilerParams(
            dimension_semantics=("parallel",),
        ),
        cost_estimate=pl.CostEstimate(
            flops=flops,
            transcendentals=transcendentals,
            bytes_accessed=bytes_accessed,
        ),
    )(x, wqkv, wo, w1, w2, vec)


def init_params(key):
    ks = jax.random.split(key, 6)
    scale = 0.02
    return {
        "wqkv": scale * jax.random.normal(ks[0], (HIDDEN, 3 * HIDDEN), jnp.float32),
        "bqkv": jnp.zeros((1, 3 * HIDDEN), jnp.float32),
        "wo":   scale * jax.random.normal(ks[1], (HIDDEN, HIDDEN), jnp.float32),
        "bo":   jnp.zeros((1, HIDDEN), jnp.float32),
        "ln1_g": jnp.ones((1, HIDDEN), jnp.float32),
        "ln1_b": jnp.zeros((1, HIDDEN), jnp.float32),
        "w1":   scale * jax.random.normal(ks[2], (HIDDEN, FFN), jnp.float32),
        "b1":   jnp.zeros((1, FFN), jnp.float32),
        "w2":   scale * jax.random.normal(ks[3], (FFN, HIDDEN), jnp.float32),
        "b2":   jnp.zeros((1, HIDDEN), jnp.float32),
        "ln2_g": jnp.ones((1, HIDDEN), jnp.float32),
        "ln2_b": jnp.zeros((1, HIDDEN), jnp.float32),
    }


if __name__ == "__main__":
    key = jax.random.PRNGKey(0)
    k_x, k_p = jax.random.split(key)
    x = jax.random.normal(k_x, (BATCH, SEQ, HIDDEN), jnp.float32)
    params = init_params(k_p)

    out = encoder_layer(x, params)
    jax.block_until_ready(out)
    assert out.shape == (BATCH, SEQ, HIDDEN)
    assert bool(jnp.all(jnp.isfinite(out)))
    print("KERNEL_OK")
</pallas_src>

<mosaic_0001>
module attributes {stable_mosaic.version = 11 : i64} {
  func.func @encoder_layer_kernel(%arg0: i32, %arg1: memref<2x64x128xf32, #tpu.memory_space<vmem>>, %arg2: memref<128x384xbf16, #tpu.memory_space<vmem>>, %arg3: memref<128x128xbf16, #tpu.memory_space<vmem>>, %arg4: memref<128x256xbf16, #tpu.memory_space<vmem>>, %arg5: memref<256x128xbf16, #tpu.memory_space<vmem>>, %arg6: memref<8x384xf32, #tpu.memory_space<vmem>>, %arg7: memref<2x64x128xf32, #tpu.memory_space<vmem>>) attributes {dimension_semantics = [#tpu.dimension_semantics<parallel>], iteration_bounds = array<i64: 1>, scalar_prefetch = 0 : i64, scratch_operands = 0 : i64, tpu.core_type = #tpu.core_type<tc>, window_params = [{transform_indices = @transform_0, window_bounds = array<i64: 2, 64, 128>}, {pipeline_mode = #tpu.pipeline_mode<synchronous>, transform_indices = @transform_1, window_bounds = array<i64: 128, 384>}, {pipeline_mode = #tpu.pipeline_mode<synchronous>, transform_indices = @transform_2, window_bounds = array<i64: 128, 128>}, {pipeline_mode = #tpu.pipeline_mode<synchronous>, transform_indices = @transform_3, window_bounds = array<i64: 128, 256>}, {pipeline_mode = #tpu.pipeline_mode<synchronous>, transform_indices = @transform_4, window_bounds = array<i64: 256, 128>}, {pipeline_mode = #tpu.pipeline_mode<synchronous>, transform_indices = @transform_5, window_bounds = array<i64: 8, 384>}, {transform_indices = @transform_6, window_bounds = array<i64: 2, 64, 128>}]} {
    %c0 = arith.constant 0 : index
    %c0_0 = arith.constant 0 : index
    %c0_1 = arith.constant 0 : index
    %0 = vector.load %arg1[%c0, %c0_0, %c0_1] : memref<2x64x128xf32, #tpu.memory_space<vmem>>, vector<2x64x128xf32>
    %1 = vector.shape_cast %0 : vector<2x64x128xf32> to vector<128x128xf32>
    %2 = arith.truncf %1 : vector<128x128xf32> to vector<128x128xbf16>
    %c0_2 = arith.constant 0 : index
    %c0_3 = arith.constant 0 : index
    %3 = vector.load %arg6[%c0_2, %c0_3] : memref<8x384xf32, #tpu.memory_space<vmem>>, vector<8x384xf32>
    %4 = vector.extract_strided_slice %3 {offsets = [0, 0], sizes = [1, 384], strides = [1, 1]} : vector<8x384xf32> to vector<1x384xf32>
    %5 = vector.shape_cast %4 : vector<1x384xf32> to vector<384xf32>
    %6 = vector.extract_strided_slice %3 {offsets = [1, 0], sizes = [1, 128], strides = [1, 1]} : vector<8x384xf32> to vector<1x128xf32>
    %7 = vector.shape_cast %6 : vector<1x128xf32> to vector<128xf32>
    %8 = vector.extract_strided_slice %3 {offsets = [2, 0], sizes = [1, 128], strides = [1, 1]} : vector<8x384xf32> to vector<1x128xf32>
    %9 = vector.shape_cast %8 : vector<1x128xf32> to vector<128xf32>
    %10 = vector.extract_strided_slice %3 {offsets = [3, 0], sizes = [1, 128], strides = [1, 1]} : vector<8x384xf32> to vector<1x128xf32>
    %11 = vector.shape_cast %10 : vector<1x128xf32> to vector<128xf32>
    %12 = vector.extract_strided_slice %3 {offsets = [4, 0], sizes = [1, 256], strides = [1, 1]} : vector<8x384xf32> to vector<1x256xf32>
    %13 = vector.shape_cast %12 : vector<1x256xf32> to vector<256xf32>
    %14 = vector.extract_strided_slice %3 {offsets = [5, 0], sizes = [1, 128], strides = [1, 1]} : vector<8x384xf32> to vector<1x128xf32>
    %15 = vector.shape_cast %14 : vector<1x128xf32> to vector<128xf32>
    %16 = vector.extract_strided_slice %3 {offsets = [6, 0], sizes = [1, 128], strides = [1, 1]} : vector<8x384xf32> to vector<1x128xf32>
    %17 = vector.shape_cast %16 : vector<1x128xf32> to vector<128xf32>
    %18 = vector.extract_strided_slice %3 {offsets = [7, 0], sizes = [1, 128], strides = [1, 1]} : vector<8x384xf32> to vector<1x128xf32>
    %19 = vector.shape_cast %18 : vector<1x128xf32> to vector<128xf32>
    %c0_4 = arith.constant 0 : index
    %c0_5 = arith.constant 0 : index
    %20 = vector.load %arg2[%c0_4, %c0_5] : memref<128x384xbf16, #tpu.memory_space<vmem>>, vector<128x384xbf16>
    %cst = arith.constant dense<0.000000e+00> : vector<128x384xf32>
    %21 = tpu.matmul %2, %20, %cst {dimension_numbers = #tpu.dot_dimension_numbers<[1], [0], [0], [1], [0, 0, 1, 1], [], []>} : vector<128x128xbf16>, vector<128x384xbf16>, vector<128x384xf32> -> vector<128x384xf32>
    %22 = vector.shape_cast %5 : vector<384xf32> to vector<1x384xf32>
    %23 = vector.broadcast %22 : vector<1x384xf32> to vector<128x384xf32>
    %24 = arith.addf %21, %23 : vector<128x384xf32>
    %25 = arith.truncf %24 : vector<128x384xf32> to vector<128x384xbf16>
    %26 = vector.extract_strided_slice %25 {offsets = [0, 0], sizes = [64, 32], strides = [1, 1]} : vector<128x384xbf16> to vector<64x32xbf16>
    %27 = vector.extract_strided_slice %25 {offsets = [0, 128], sizes = [64, 32], strides = [1, 1]} : vector<128x384xbf16> to vector<64x32xbf16>
    %28 = vector.extract_strided_slice %25 {offsets = [0, 256], sizes = [64, 32], strides = [1, 1]} : vector<128x384xbf16> to vector<64x32xbf16>
    %cst_6 = arith.constant dense<0.000000e+00> : vector<64x64xf32>
    %29 = tpu.matmul %26, %27, %cst_6 {dimension_numbers = #tpu.dot_dimension_numbers<[1], [1], [0], [0], [0, 0, 1, 0], [], []>} : vector<64x32xbf16>, vector<64x32xbf16>, vector<64x64xf32> -> vector<64x64xf32>
    %cst_7 = arith.constant dense<0xFF800000> : vector<64xf32>
    %30 = vector.multi_reduction <maximumf>, %29, %cst_7 [1] : vector<64x64xf32> to vector<64xf32>
    %31 = vector.shape_cast %30 : vector<64xf32> to vector<64x1xf32>
    %32 = vector.broadcast %31 : vector<64x1xf32> to vector<64x64xf32>
    %33 = arith.subf %29, %32 : vector<64x64xf32>
    %34 = math.exp %33 : vector<64x64xf32>
    %cst_8 = arith.constant dense<0.000000e+00> : vector<64xf32>
    %35 = vector.multi_reduction <add>, %34, %cst_8 [1] : vector<64x64xf32> to vector<64xf32>
    %36 = vector.shape_cast %35 : vector<64xf32> to vector<64x1xf32>
    %37 = vector.broadcast %36 : vector<64x1xf32> to vector<64x64xf32>
    %38 = arith.divf %34, %37 : vector<64x64xf32>
    %39 = arith.truncf %38 : vector<64x64xf32> to vector<64x64xbf16>
    %cst_9 = arith.constant dense<0.000000e+00> : vector<64x32xf32>
    %40 = tpu.matmul %39, %28, %cst_9 {dimension_numbers = #tpu.dot_dimension_numbers<[1], [0], [0], [1], [0, 0, 1, 1], [], []>} : vector<64x64xbf16>, vector<64x32xbf16>, vector<64x32xf32> -> vector<64x32xf32>
    %41 = vector.extract_strided_slice %25 {offsets = [0, 32], sizes = [64, 32], strides = [1, 1]} : vector<128x384xbf16> to vector<64x32xbf16>
    %42 = vector.extract_strided_slice %25 {offsets = [0, 160], sizes = [64, 32], strides = [1, 1]} : vector<128x384xbf16> to vector<64x32xbf16>
    %43 = vector.extract_strided_slice %25 {offsets = [0, 288], sizes = [64, 32], strides = [1, 1]} : vector<128x384xbf16> to vector<64x32xbf16>
    %cst_10 = arith.constant dense<0.000000e+00> : vector<64x64xf32>
    %44 = tpu.matmul %41, %42, %cst_10 {dimension_numbers = #tpu.dot_dimension_numbers<[1], [1], [0], [0], [0, 0, 1, 0], [], []>} : vector<64x32xbf16>, vector<64x32xbf16>, vector<64x64xf32> -> vector<64x64xf32>
    %cst_11 = arith.constant dense<0xFF800000> : vector<64xf32>
    %45 = vector.multi_reduction <maximumf>, %44, %cst_11 [1] : vector<64x64xf32> to vector<64xf32>
    %46 = vector.shape_cast %45 : vector<64xf32> to vector<64x1xf32>
    %47 = vector.broadcast %46 : vector<64x1xf32> to vector<64x64xf32>
    %48 = arith.subf %44, %47 : vector<64x64xf32>
    %49 = math.exp %48 : vector<64x64xf32>
    %cst_12 = arith.constant dense<0.000000e+00> : vector<64xf32>
    %50 = vector.multi_reduction <add>, %49, %cst_12 [1] : vector<64x64xf32> to vector<64xf32>
    %51 = vector.shape_cast %50 : vector<64xf32> to vector<64x1xf32>
    %52 = vector.broadcast %51 : vector<64x1xf32> to vector<64x64xf32>
    %53 = arith.divf %49, %52 : vector<64x64xf32>
    %54 = arith.truncf %53 : vector<64x64xf32> to vector<64x64xbf16>
    %cst_13 = arith.constant dense<0.000000e+00> : vector<64x32xf32>
    %55 = tpu.matmul %54, %43, %cst_13 {dimension_numbers = #tpu.dot_dimension_numbers<[1], [0], [0], [1], [0, 0, 1, 1], [], []>} : vector<64x64xbf16>, vector<64x32xbf16>, vector<64x32xf32> -> vector<64x32xf32>
    %56 = vector.extract_strided_slice %25 {offsets = [0, 64], sizes = [64, 32], strides = [1, 1]} : vector<128x384xbf16> to vector<64x32xbf16>
    %57 = vector.extract_strided_slice %25 {offsets = [0, 192], sizes = [64, 32], strides = [1, 1]} : vector<128x384xbf16> to vector<64x32xbf16>
    %58 = vector.extract_strided_slice %25 {offsets = [0, 320], sizes = [64, 32], strides = [1, 1]} : vector<128x384xbf16> to vector<64x32xbf16>
    %cst_14 = arith.constant dense<0.000000e+00> : vector<64x64xf32>
    %59 = tpu.matmul %56, %57, %cst_14 {dimension_numbers = #tpu.dot_dimension_numbers<[1], [1], [0], [0], [0, 0, 1, 0], [], []>} : vector<64x32xbf16>, vector<64x32xbf16>, vector<64x64xf32> -> vector<64x64xf32>
    %cst_15 = arith.constant dense<0xFF800000> : vector<64xf32>
    %60 = vector.multi_reduction <maximumf>, %59, %cst_15 [1] : vector<64x64xf32> to vector<64xf32>
    %61 = vector.shape_cast %60 : vector<64xf32> to vector<64x1xf32>
    %62 = vector.broadcast %61 : vector<64x1xf32> to vector<64x64xf32>
    %63 = arith.subf %59, %62 : vector<64x64xf32>
    %64 = math.exp %63 : vector<64x64xf32>
    %cst_16 = arith.constant dense<0.000000e+00> : vector<64xf32>
    %65 = vector.multi_reduction <add>, %64, %cst_16 [1] : vector<64x64xf32> to vector<64xf32>
    %66 = vector.shape_cast %65 : vector<64xf32> to vector<64x1xf32>
    %67 = vector.broadcast %66 : vector<64x1xf32> to vector<64x64xf32>
    %68 = arith.divf %64, %67 : vector<64x64xf32>
    %69 = arith.truncf %68 : vector<64x64xf32> to vector<64x64xbf16>
    %cst_17 = arith.constant dense<0.000000e+00> : vector<64x32xf32>
    %70 = tpu.matmul %69, %58, %cst_17 {dimension_numbers = #tpu.dot_dimension_numbers<[1], [0], [0], [1], [0, 0, 1, 1], [], []>} : vector<64x64xbf16>, vector<64x32xbf16>, vector<64x32xf32> -> vector<64x32xf32>
    %71 = vector.extract_strided_slice %25 {offsets = [0, 96], sizes = [64, 32], strides = [1, 1]} : vector<128x384xbf16> to vector<64x32xbf16>
    %72 = vector.extract_strided_slice %25 {offsets = [0, 224], sizes = [64, 32], strides = [1, 1]} : vector<128x384xbf16> to vector<64x32xbf16>
    %73 = vector.extract_strided_slice %25 {offsets = [0, 352], sizes = [64, 32], strides = [1, 1]} : vector<128x384xbf16> to vector<64x32xbf16>
    %cst_18 = arith.constant dense<0.000000e+00> : vector<64x64xf32>
    %74 = tpu.matmul %71, %72, %cst_18 {dimension_numbers = #tpu.dot_dimension_numbers<[1], [1], [0], [0], [0, 0, 1, 0], [], []>} : vector<64x32xbf16>, vector<64x32xbf16>, vector<64x64xf32> -> vector<64x64xf32>
    %cst_19 = arith.constant dense<0xFF800000> : vector<64xf32>
    %75 = vector.multi_reduction <maximumf>, %74, %cst_19 [1] : vector<64x64xf32> to vector<64xf32>
    %76 = vector.shape_cast %75 : vector<64xf32> to vector<64x1xf32>
    %77 = vector.broadcast %76 : vector<64x1xf32> to vector<64x64xf32>
    %78 = arith.subf %74, %77 : vector<64x64xf32>
    %79 = math.exp %78 : vector<64x64xf32>
    %cst_20 = arith.constant dense<0.000000e+00> : vector<64xf32>
    %80 = vector.multi_reduction <add>, %79, %cst_20 [1] : vector<64x64xf32> to vector<64xf32>
    %81 = vector.shape_cast %80 : vector<64xf32> to vector<64x1xf32>
    %82 = vector.broadcast %81 : vector<64x1xf32> to vector<64x64xf32>
    %83 = arith.divf %79, %82 : vector<64x64xf32>
    %84 = arith.truncf %83 : vector<64x64xf32> to vector<64x64xbf16>
    %cst_21 = arith.constant dense<0.000000e+00> : vector<64x32xf32>
    %85 = tpu.matmul %84, %73, %cst_21 {dimension_numbers = #tpu.dot_dimension_numbers<[1], [0], [0], [1], [0, 0, 1, 1], [], []>} : vector<64x64xbf16>, vector<64x32xbf16>, vector<64x32xf32> -> vector<64x32xf32>
    %86 = tpu.concatenate %40, %55, %70, %85 in 1 : vector<64x32xf32>, vector<64x32xf32>, vector<64x32xf32>, vector<64x32xf32> -> vector<64x128xf32>
    %87 = vector.extract_strided_slice %25 {offsets = [64, 0], sizes = [64, 32], strides = [1, 1]} : vector<128x384xbf16> to vector<64x32xbf16>
    %88 = vector.extract_strided_slice %25 {offsets = [64, 128], sizes = [64, 32], strides = [1, 1]} : vector<128x384xbf16> to vector<64x32xbf16>
    %89 = vector.extract_strided_slice %25 {offsets = [64, 256], sizes = [64, 32], strides = [1, 1]} : vector<128x384xbf16> to vector<64x32xbf16>
    %cst_22 = arith.constant dense<0.000000e+00> : vector<64x64xf32>
    %90 = tpu.matmul %87, %88, %cst_22 {dimension_numbers = #tpu.dot_dimension_numbers<[1], [1], [0], [0], [0, 0, 1, 0], [], []>} : vector<64x32xbf16>, vector<64x32xbf16>, vector<64x64xf32> -> vector<64x64xf32>
    %cst_23 = arith.constant dense<0xFF800000> : vector<64xf32>
    %91 = vector.multi_reduction <maximumf>, %90, %cst_23 [1] : vector<64x64xf32> to vector<64xf32>
    %92 = vector.shape_cast %91 : vector<64xf32> to vector<64x1xf32>
    %93 = vector.broadcast %92 : vector<64x1xf32> to vector<64x64xf32>
    %94 = arith.subf %90, %93 : vector<64x64xf32>
    %95 = math.exp %94 : vector<64x64xf32>
    %cst_24 = arith.constant dense<0.000000e+00> : vector<64xf32>
    %96 = vector.multi_reduction <add>, %95, %cst_24 [1] : vector<64x64xf32> to vector<64xf32>
    %97 = vector.shape_cast %96 : vector<64xf32> to vector<64x1xf32>
    %98 = vector.broadcast %97 : vector<64x1xf32> to vector<64x64xf32>
    %99 = arith.divf %95, %98 : vector<64x64xf32>
    %100 = arith.truncf %99 : vector<64x64xf32> to vector<64x64xbf16>
    %cst_25 = arith.constant dense<0.000000e+00> : vector<64x32xf32>
    %101 = tpu.matmul %100, %89, %cst_25 {dimension_numbers = #tpu.dot_dimension_numbers<[1], [0], [0], [1], [0, 0, 1, 1], [], []>} : vector<64x64xbf16>, vector<64x32xbf16>, vector<64x32xf32> -> vector<64x32xf32>
    %102 = vector.extract_strided_slice %25 {offsets = [64, 32], sizes = [64, 32], strides = [1, 1]} : vector<128x384xbf16> to vector<64x32xbf16>
    %103 = vector.extract_strided_slice %25 {offsets = [64, 160], sizes = [64, 32], strides = [1, 1]} : vector<128x384xbf16> to vector<64x32xbf16>
    %104 = vector.extract_strided_slice %25 {offsets = [64, 288], sizes = [64, 32], strides = [1, 1]} : vector<128x384xbf16> to vector<64x32xbf16>
    %cst_26 = arith.constant dense<0.000000e+00> : vector<64x64xf32>
    %105 = tpu.matmul %102, %103, %cst_26 {dimension_numbers = #tpu.dot_dimension_numbers<[1], [1], [0], [0], [0, 0, 1, 0], [], []>} : vector<64x32xbf16>, vector<64x32xbf16>, vector<64x64xf32> -> vector<64x64xf32>
    %cst_27 = arith.constant dense<0xFF800000> : vector<64xf32>
    %106 = vector.multi_reduction <maximumf>, %105, %cst_27 [1] : vector<64x64xf32> to vector<64xf32>
    %107 = vector.shape_cast %106 : vector<64xf32> to vector<64x1xf32>
    %108 = vector.broadcast %107 : vector<64x1xf32> to vector<64x64xf32>
    %109 = arith.subf %105, %108 : vector<64x64xf32>
    %110 = math.exp %109 : vector<64x64xf32>
    %cst_28 = arith.constant dense<0.000000e+00> : vector<64xf32>
    %111 = vector.multi_reduction <add>, %110, %cst_28 [1] : vector<64x64xf32> to vector<64xf32>
    %112 = vector.shape_cast %111 : vector<64xf32> to vector<64x1xf32>
    %113 = vector.broadcast %112 : vector<64x1xf32> to vector<64x64xf32>
    %114 = arith.divf %110, %113 : vector<64x64xf32>
    %115 = arith.truncf %114 : vector<64x64xf32> to vector<64x64xbf16>
    %cst_29 = arith.constant dense<0.000000e+00> : vector<64x32xf32>
    %116 = tpu.matmul %115, %104, %cst_29 {dimension_numbers = #tpu.dot_dimension_numbers<[1], [0], [0], [1], [0, 0, 1, 1], [], []>} : vector<64x64xbf16>, vector<64x32xbf16>, vector<64x32xf32> -> vector<64x32xf32>
    %117 = vector.extract_strided_slice %25 {offsets = [64, 64], sizes = [64, 32], strides = [1, 1]} : vector<128x384xbf16> to vector<64x32xbf16>
    %118 = vector.extract_strided_slice %25 {offsets = [64, 192], sizes = [64, 32], strides = [1, 1]} : vector<128x384xbf16> to vector<64x32xbf16>
    %119 = vector.extract_strided_slice %25 {offsets = [64, 320], sizes = [64, 32], strides = [1, 1]} : vector<128x384xbf16> to vector<64x32xbf16>
    %cst_30 = arith.constant dense<0.000000e+00> : vector<64x64xf32>
    %120 = tpu.matmul %117, %118, %cst_30 {dimension_numbers = #tpu.dot_dimension_numbers<[1], [1], [0], [0], [0, 0, 1, 0], [], []>} : vector<64x32xbf16>, vector<64x32xbf16>, vector<64x64xf32> -> vector<64x64xf32>
    %cst_31 = arith.constant dense<0xFF800000> : vector<64xf32>
    %121 = vector.multi_reduction <maximumf>, %120, %cst_31 [1] : vector<64x64xf32> to vector<64xf32>
    %122 = vector.shape_cast %121 : vector<64xf32> to vector<64x1xf32>
    %123 = vector.broadcast %122 : vector<64x1xf32> to vector<64x64xf32>
    %124 = arith.subf %120, %123 : vector<64x64xf32>
    %125 = math.exp %124 : vector<64x64xf32>
    %cst_32 = arith.constant dense<0.000000e+00> : vector<64xf32>
    %126 = vector.multi_reduction <add>, %125, %cst_32 [1] : vector<64x64xf32> to vector<64xf32>
    %127 = vector.shape_cast %126 : vector<64xf32> to vector<64x1xf32>
    %128 = vector.broadcast %127 : vector<64x1xf32> to vector<64x64xf32>
    %129 = arith.divf %125, %128 : vector<64x64xf32>
    %130 = arith.truncf %129 : vector<64x64xf32> to vector<64x64xbf16>
    %cst_33 = arith.constant dense<0.000000e+00> : vector<64x32xf32>
    %131 = tpu.matmul %130, %119, %cst_33 {dimension_numbers = #tpu.dot_dimension_numbers<[1], [0], [0], [1], [0, 0, 1, 1], [], []>} : vector<64x64xbf16>, vector<64x32xbf16>, vector<64x32xf32> -> vector<64x32xf32>
    %132 = vector.extract_strided_slice %25 {offsets = [64, 96], sizes = [64, 32], strides = [1, 1]} : vector<128x384xbf16> to vector<64x32xbf16>
    %133 = vector.extract_strided_slice %25 {offsets = [64, 224], sizes = [64, 32], strides = [1, 1]} : vector<128x384xbf16> to vector<64x32xbf16>
    %134 = vector.extract_strided_slice %25 {offsets = [64, 352], sizes = [64, 32], strides = [1, 1]} : vector<128x384xbf16> to vector<64x32xbf16>
    %cst_34 = arith.constant dense<0.000000e+00> : vector<64x64xf32>
    %135 = tpu.matmul %132, %133, %cst_34 {dimension_numbers = #tpu.dot_dimension_numbers<[1], [1], [0], [0], [0, 0, 1, 0], [], []>} : vector<64x32xbf16>, vector<64x32xbf16>, vector<64x64xf32> -> vector<64x64xf32>
    %cst_35 = arith.constant dense<0xFF800000> : vector<64xf32>
    %136 = vector.multi_reduction <maximumf>, %135, %cst_35 [1] : vector<64x64xf32> to vector<64xf32>
    %137 = vector.shape_cast %136 : vector<64xf32> to vector<64x1xf32>
    %138 = vector.broadcast %137 : vector<64x1xf32> to vector<64x64xf32>
    %139 = arith.subf %135, %138 : vector<64x64xf32>
    %140 = math.exp %139 : vector<64x64xf32>
    %cst_36 = arith.constant dense<0.000000e+00> : vector<64xf32>
    %141 = vector.multi_reduction <add>, %140, %cst_36 [1] : vector<64x64xf32> to vector<64xf32>
    %142 = vector.shape_cast %141 : vector<64xf32> to vector<64x1xf32>
    %143 = vector.broadcast %142 : vector<64x1xf32> to vector<64x64xf32>
    %144 = arith.divf %140, %143 : vector<64x64xf32>
    %145 = arith.truncf %144 : vector<64x64xf32> to vector<64x64xbf16>
    %cst_37 = arith.constant dense<0.000000e+00> : vector<64x32xf32>
    %146 = tpu.matmul %145, %134, %cst_37 {dimension_numbers = #tpu.dot_dimension_numbers<[1], [0], [0], [1], [0, 0, 1, 1], [], []>} : vector<64x64xbf16>, vector<64x32xbf16>, vector<64x32xf32> -> vector<64x32xf32>
    %147 = tpu.concatenate %101, %116, %131, %146 in 1 : vector<64x32xf32>, vector<64x32xf32>, vector<64x32xf32>, vector<64x32xf32> -> vector<64x128xf32>
    %148 = tpu.concatenate %86, %147 in 0 : vector<64x128xf32>, vector<64x128xf32> -> vector<128x128xf32>
    %149 = arith.truncf %148 : vector<128x128xf32> to vector<128x128xbf16>
    %c0_38 = arith.constant 0 : index
    %c0_39 = arith.constant 0 : index
    %150 = vector.load %arg3[%c0_38, %c0_39] : memref<128x128xbf16, #tpu.memory_space<vmem>>, vector<128x128xbf16>
    %cst_40 = arith.constant dense<0.000000e+00> : vector<128x128xf32>
    %151 = tpu.matmul %149, %150, %cst_40 {dimension_numbers = #tpu.dot_dimension_numbers<[1], [0], [0], [1], [0, 0, 1, 1], [], []>} : vector<128x128xbf16>, vector<128x128xbf16>, vector<128x128xf32> -> vector<128x128xf32>
    %152 = vector.shape_cast %7 : vector<128xf32> to vector<1x128xf32>
    %153 = vector.broadcast %152 : vector<1x128xf32> to vector<128x128xf32>
    %154 = arith.addf %151, %153 : vector<128x128xf32>
    %155 = arith.addf %1, %154 : vector<128x128xf32>
    %cst_41 = arith.constant dense<0.000000e+00> : vector<128xf32>
    %156 = vector.multi_reduction <add>, %155, %cst_41 [1] : vector<128x128xf32> to vector<128xf32>
    %157 = vector.shape_cast %156 : vector<128xf32> to vector<128x1xf32>
    %cst_42 = arith.constant 1.280000e+02 : f32
    %158 = vector.broadcast %cst_42 : f32 to vector<128x1xf32>
    %159 = arith.divf %157, %158 : vector<128x1xf32>
    %160 = vector.broadcast %159 : vector<128x1xf32> to vector<128x128xf32>
    %161 = arith.subf %155, %160 : vector<128x128xf32>
    %162 = arith.mulf %161, %161 : vector<128x128xf32>
    %cst_43 = arith.constant dense<0.000000e+00> : vector<128xf32>
    %163 = vector.multi_reduction <add>, %162, %cst_43 [1] : vector<128x128xf32> to vector<128xf32>
    %164 = vector.shape_cast %163 : vector<128xf32> to vector<128x1xf32>
    %cst_44 = arith.constant 1.280000e+02 : f32
    %165 = vector.broadcast %cst_44 : f32 to vector<128x1xf32>
    %166 = arith.divf %164, %165 : vector<128x1xf32>
    %167 = vector.broadcast %159 : vector<128x1xf32> to vector<128x128xf32>
    %168 = arith.subf %155, %167 : vector<128x128xf32>
    %cst_45 = arith.constant 9.99999974E-6 : f32
    %169 = vector.broadcast %cst_45 : f32 to vector<128x1xf32>
    %170 = arith.addf %166, %169 : vector<128x1xf32>
    %171 = math.rsqrt %170 : vector<128x1xf32>
    %172 = vector.broadcast %171 : vector<128x1xf32> to vector<128x128xf32>
    %173 = arith.mulf %168, %172 : vector<128x128xf32>
    %174 = vector.shape_cast %9 : vector<128xf32> to vector<1x128xf32>
    %175 = vector.broadcast %174 : vector<1x128xf32> to vector<128x128xf32>
    %176 = arith.mulf %173, %175 : vector<128x128xf32>
    %177 = vector.shape_cast %11 : vector<128xf32> to vector<1x128xf32>
    %178 = vector.broadcast %177 : vector<1x128xf32> to vector<128x128xf32>
    %179 = arith.addf %176, %178 : vector<128x128xf32>
    %180 = arith.truncf %179 : vector<128x128xf32> to vector<128x128xbf16>
    %c0_46 = arith.constant 0 : index
    %c0_47 = arith.constant 0 : index
    %181 = vector.load %arg4[%c0_46, %c0_47] : memref<128x256xbf16, #tpu.memory_space<vmem>>, vector<128x256xbf16>
    %cst_48 = arith.constant dense<0.000000e+00> : vector<128x256xf32>
    %182 = tpu.matmul %180, %181, %cst_48 {dimension_numbers = #tpu.dot_dimension_numbers<[1], [0], [0], [1], [0, 0, 1, 1], [], []>} : vector<128x128xbf16>, vector<128x256xbf16>, vector<128x256xf32> -> vector<128x256xf32>
    %183 = vector.shape_cast %13 : vector<256xf32> to vector<1x256xf32>
    %184 = vector.broadcast %183 : vector<1x256xf32> to vector<128x256xf32>
    %185 = arith.addf %182, %184 : vector<128x256xf32>
    %cst_49 = arith.constant 0.000000e+00 : f32
    %186 = vector.broadcast %cst_49 : f32 to vector<128x256xf32>
    %187 = arith.maximumf %185, %186 : vector<128x256xf32>
    %188 = arith.mulf %187, %187 : vector<128x256xf32>
    %189 = arith.truncf %188 : vector<128x256xf32> to vector<128x256xbf16>
    %c0_50 = arith.constant 0 : index
    %c0_51 = arith.constant 0 : index
    %190 = vector.load %arg5[%c0_50, %c0_51] : memref<256x128xbf16, #tpu.memory_space<vmem>>, vector<256x128xbf16>
    %cst_52 = arith.constant dense<0.000000e+00> : vector<128x128xf32>
    %191 = tpu.matmul %189, %190, %cst_52 {dimension_numbers = #tpu.dot_dimension_numbers<[1], [0], [0], [1], [0, 0, 1, 1], [], []>} : vector<128x256xbf16>, vector<256x128xbf16>, vector<128x128xf32> -> vector<128x128xf32>
    %192 = vector.shape_cast %15 : vector<128xf32> to vector<1x128xf32>
    %193 = vector.broadcast %192 : vector<1x128xf32> to vector<128x128xf32>
    %194 = arith.addf %191, %193 : vector<128x128xf32>
    %195 = arith.addf %179, %194 : vector<128x128xf32>
    %cst_53 = arith.constant dense<0.000000e+00> : vector<128xf32>
    %196 = vector.multi_reduction <add>, %195, %cst_53 [1] : vector<128x128xf32> to vector<128xf32>
    %197 = vector.shape_cast %196 : vector<128xf32> to vector<128x1xf32>
    %cst_54 = arith.constant 1.280000e+02 : f32
    %198 = vector.broadcast %cst_54 : f32 to vector<128x1xf32>
    %199 = arith.divf %197, %198 : vector<128x1xf32>
    %200 = vector.broadcast %199 : vector<128x1xf32> to vector<128x128xf32>
    %201 = arith.subf %195, %200 : vector<128x128xf32>
    %202 = arith.mulf %201, %201 : vector<128x128xf32>
    %cst_55 = arith.constant dense<0.000000e+00> : vector<128xf32>
    %203 = vector.multi_reduction <add>, %202, %cst_55 [1] : vector<128x128xf32> to vector<128xf32>
    %204 = vector.shape_cast %203 : vector<128xf32> to vector<128x1xf32>
    %cst_56 = arith.constant 1.280000e+02 : f32
    %205 = vector.broadcast %cst_56 : f32 to vector<128x1xf32>
    %206 = arith.divf %204, %205 : vector<128x1xf32>
    %207 = vector.broadcast %199 : vector<128x1xf32> to vector<128x128xf32>
    %208 = arith.subf %195, %207 : vector<128x128xf32>
    %cst_57 = arith.constant 9.99999974E-6 : f32
    %209 = vector.broadcast %cst_57 : f32 to vector<128x1xf32>
    %210 = arith.addf %206, %209 : vector<128x1xf32>
    %211 = math.rsqrt %210 : vector<128x1xf32>
    %212 = vector.broadcast %211 : vector<128x1xf32> to vector<128x128xf32>
    %213 = arith.mulf %208, %212 : vector<128x128xf32>
    %214 = vector.shape_cast %17 : vector<128xf32> to vector<1x128xf32>
    %215 = vector.broadcast %214 : vector<1x128xf32> to vector<128x128xf32>
    %216 = arith.mulf %213, %215 : vector<128x128xf32>
    %217 = vector.shape_cast %19 : vector<128xf32> to vector<1x128xf32>
    %218 = vector.broadcast %217 : vector<1x128xf32> to vector<128x128xf32>
    %219 = arith.addf %216, %218 : vector<128x128xf32>
    %220 = vector.shape_cast %219 : vector<128x128xf32> to vector<2x64x128xf32>
    %c0_58 = arith.constant 0 : index
    %c0_59 = arith.constant 0 : index
    %c0_60 = arith.constant 0 : index
    %221 = vector.load %arg7[%c0_58, %c0_59, %c0_60] : memref<2x64x128xf32, #tpu.memory_space<vmem>>, vector<2x64x128xf32>
    tpu.vector_store %arg7[%c0_58, %c0_59, %c0_60], %220 {strides = array<i32>} : memref<2x64x128xf32, #tpu.memory_space<vmem>>, vector<2x64x128xf32>,
    return
  }
  func.func @transform_0(%arg0: i32) -> (i32, i32, i32) {
    %c0_i32 = arith.constant 0 : i32
    %c0_i32_0 = arith.constant 0 : i32
    %c0_i32_1 = arith.constant 0 : i32
    return %arg0, %c0_i32, %c0_i32_0 : i32, i32, i32
  }
  func.func @transform_1(%arg0: i32) -> (i32, i32) {
    %c0_i32 = arith.constant 0 : i32
    %c0_i32_0 = arith.constant 0 : i32
    %c0_i32_1 = arith.constant 0 : i32
    return %c0_i32, %c0_i32_0 : i32, i32
  }
  func.func @transform_2(%arg0: i32) -> (i32, i32) {
    %c0_i32 = arith.constant 0 : i32
    %c0_i32_0 = arith.constant 0 : i32
    %c0_i32_1 = arith.constant 0 : i32
    return %c0_i32, %c0_i32_0 : i32, i32
  }
  func.func @transform_3(%arg0: i32) -> (i32, i32) {
    %c0_i32 = arith.constant 0 : i32
    %c0_i32_0 = arith.constant 0 : i32
    %c0_i32_1 = arith.constant 0 : i32
    return %c0_i32, %c0_i32_0 : i32, i32
  }
  func.func @transform_4(%arg0: i32) -> (i32, i32) {
    %c0_i32 = arith.constant 0 : i32
    %c0_i32_0 = arith.constant 0 : i32
    %c0_i32_1 = arith.constant 0 : i32
    return %c0_i32, %c0_i32_0 : i32, i32
  }
  func.func @transform_5(%arg0: i32) -> (i32, i32) {
    %c0_i32 = arith.constant 0 : i32
    %c0_i32_0 = arith.constant 0 : i32
    %c0_i32_1 = arith.constant 0 : i32
    return %c0_i32, %c0_i32_0 : i32, i32
  }
  func.func @transform_6(%arg0: i32) -> (i32, i32, i32) {
    %c0_i32 = arith.constant 0 : i32
    %c0_i32_0 = arith.constant 0 : i32
    %c0_i32_1 = arith.constant 0 : i32
    return %arg0, %c0_i32, %c0_i32_0 : i32, i32, i32
  }
}

</mosaic_0001>

<bundles_post_ra>
// kernel: encoder_layer.1
= control target key start
LH: loop header
LB: loop body
LE: loop exit
PB: predicated region body
PF: predicated region fallthrough
CT: control target
= control target key end

     0   :  { %s9020_s0 = inlined_call_operand.vmem [shape: f32[2,64,128], index: 0, kind: input, shape index: {}]   ;;  %s9021_s1 = inlined_call_operand.vmem [shape: bf16[128,384], index: 1, kind: input, shape index: {}]   ;;  %s9022_s2 = inlined_call_operand.vmem [shape: bf16[128,128], index: 2, kind: input, shape index: {}]   ;;  %s9023_s3 = inlined_call_operand.vmem [shape: bf16[128,256], index: 3, kind: input, shape index: {}]   ;;  %s9024_s4 = inlined_call_operand.vmem [shape: bf16[256,128], index: 4, kind: input, shape index: {}]   ;;  %s9025_s5 = inlined_call_operand.vmem [shape: f32[8,384], index: 5, kind: input, shape index: {}]   ;;  %s9026_s6 = inlined_call_operand.hbm [shape: f32[2,64,128], index: 6, kind: output, shape index: {}]  }
   0x1   :  { %v4737_v0 = vld [vmem:[%s9021_s1 + $0xa8] sm:$0xf]  ;;  %v4993_v1 = vld [vmem:[%s9021_s1 + $0xb0] sm:$0xf0]  ;;  %v4992_v2 = vld [vmem:[%s9021_s1 + $0xac] sm:$0xf] }
   0x2   :  { %v4738_v3 = vor.u32 %v4993_v1, %v4737_v0  ;;  %v4739_v4 = vld [vmem:[%s9021_s1 + $0xb4] sm:$0xf0]  ;;  %v4745_v5 = vld [vmem:[%s9021_s1 + $0xb0] sm:$0xf]  ;;  %v4994_v6 = vld [vmem:[%s9021_s1 + $0xb8] sm:$0xf0] }
   0x3   :  { %v4742_v7 = vor.u32 %v4992_v2, %v4739_v4  ;;  %v4746_v8 = vor.u32 %v4994_v6, %v4745_v5  ;;  %v4725_v9 = vld [vmem:[%s9021_s1 + $0x90] sm:$0xf]  ;;  %v4990_v10 = vld [vmem:[%s9021_s1 + $0x98] sm:$0xf0]  ;;  %v4989_v11 = vld [vmem:[%s9021_s1 + $0x94] sm:$0xf] }
   0x4   :  { %215 = vmatpush.bf16.msra.mxu0 %v4738_v3  ;;  %v4726_v12 = vor.u32 %v4990_v10, %v4725_v9  ;;  %v4727_v13 = vld [vmem:[%s9021_s1 + $0x9c] sm:$0xf0]  ;;  %v4733_v14 = vld [vmem:[%s9021_s1 + $0x98] sm:$0xf]  ;;  %v4991_v15 = vld [vmem:[%s9021_s1 + $0xa0] sm:$0xf0] }
   0x5   :  { %264 = vmatpush.bf16.msra.mxu1 %v4742_v7  ;;  %313 = vmatpush.bf16.msra.mxu2 %v4746_v8  ;;  %v4730_v16 = vor.u32 %v4989_v11, %v4727_v13  ;;  %v4734_v17 = vor.u32 %v4991_v15, %v4733_v14  ;;  %v4713_v18 = vld [vmem:[%s9021_s1 + $0x78] sm:$0xf]  ;;  %v4987_v19 = vld [vmem:[%s9021_s1 + $0x80] sm:$0xf0]  ;;  %v4986_v20 = vld [vmem:[%s9021_s1 + $0x7c] sm:$0xf] }
   0x6   :  { %v4715_v21 = vld [vmem:[%s9021_s1 + $0x84] sm:$0xf0]  ;;  %5035 = vmatpush.bf16.msra.mxu3 %v4746_v8  ;;  %v4721_v22 = vld [vmem:[%s9021_s1 + $0x80] sm:$0xf]  ;;  %v4988_v23 = vld [vmem:[%s9021_s1 + $0x88] sm:$0xf0]  ;;  %v4714_v24 = vor.u32 %v4987_v19, %v4713_v18 }
   0x7   :  { %v4718_v25 = vor.u32 %v4986_v20, %v4715_v21  ;;  %v4722_v26 = vor.u32 %v4988_v23, %v4721_v22  ;;  %v4701_v27 = vld [vmem:[%s9021_s1 + $0x60] sm:$0xf]  ;;  %v4984_v28 = vld [vmem:[%s9021_s1 + $0x68] sm:$0xf0]  ;;  %v4983_v29 = vld [vmem:[%s9021_s1 + $0x64] sm:$0xf] }
   0x8   :  { %216 = vmatpush.bf16.msra.mxu0 %v4726_v12  ;;  %v4703_v30 = vld [vmem:[%s9021_s1 + $0x6c] sm:$0xf0]  ;;  %v4709_v31 = vld [vmem:[%s9021_s1 + $0x68] sm:$0xf]  ;;  %v4985_v32 = vld [vmem:[%s9021_s1 + $0x70] sm:$0xf0]  ;;  %v4702_v33 = vor.u32 %v4984_v28, %v4701_v27 }
   0x9   :  { %265 = vmatpush.bf16.msra.mxu1 %v4730_v16  ;;  %314 = vmatpush.bf16.msra.mxu2 %v4734_v17  ;;  %v4706_v34 = vor.u32 %v4983_v29, %v4703_v30  ;;  %v4710_v35 = vor.u32 %v4985_v32, %v4709_v31  ;;  %v4689_v36 = vld [vmem:[%s9021_s1 + $0x48] sm:$0xf]  ;;  %v4981_v37 = vld [vmem:[%s9021_s1 + $0x50] sm:$0xf0]  ;;  %v4980_v38 = vld [vmem:[%s9021_s1 + $0x4c] sm:$0xf] }
   0xa   :  { %5036 = vmatpush.bf16.msra.mxu3 %v4734_v17  ;;  %v4691_v39 = vld [vmem:[%s9021_s1 + $0x54] sm:$0xf0]  ;;  %v4697_v40 = vld [vmem:[%s9021_s1 + $0x50] sm:$0xf]  ;;  %v4982_v41 = vld [vmem:[%s9021_s1 + $0x58] sm:$0xf0]  ;;  %v4690_v42 = vor.u32 %v4981_v37, %v4689_v36 }
   0xb   :  { %v4694_v43 = vor.u32 %v4980_v38, %v4691_v39  ;;  %v4698_v44 = vor.u32 %v4982_v41, %v4697_v40  ;;  %v4677_v45 = vld [vmem:[%s9021_s1 + $0x30] sm:$0xf]  ;;  %v4978_v46 = vld [vmem:[%s9021_s1 + $0x38] sm:$0xf0]  ;;  %v4977_v47 = vld [vmem:[%s9021_s1 + $0x34] sm:$0xf] }
   0xc   :  { %217 = vmatpush.bf16.msra.mxu0 %v4714_v24  ;;  %v4679_v48 = vld [vmem:[%s9021_s1 + $0x3c] sm:$0xf0]  ;;  %v4685_v49 = vld [vmem:[%s9021_s1 + $0x38] sm:$0xf]  ;;  %v4979_v50 = vld [vmem:[%s9021_s1 + $0x40] sm:$0xf0] }
   0xd   :  { %266 = vmatpush.bf16.msra.mxu1 %v4718_v25  ;;  %315 = vmatpush.bf16.msra.mxu2 %v4722_v26 }
   0xe   :  { %5037 = vmatpush.bf16.msra.mxu3 %v4722_v26 }
  0x10   :  { %218 = vmatpush.bf16.msra.mxu0 %v4702_v33 }
  0x11   :  { %267 = vmatpush.bf16.msra.mxu1 %v4706_v34  ;;  %316 = vmatpush.bf16.msra.mxu2 %v4710_v35 }
  0x12   :  { %5038 = vmatpush.bf16.msra.mxu3 %v4710_v35 }
  0x13   :  { %11 = vsyncpa [#allocation3], 0  ;;  %v4678_v51 = vor.u32 %v4978_v46, %v4677_v45  ;;  %v4682_v52 = vor.u32 %v4977_v47, %v4679_v48  ;;  %v4686_v53 = vor.u32 %v4979_v50, %v4685_v49  ;;  %v4665_v54 = vld [vmem:[%s9021_s1 + $0x18] sm:$0xf]  ;;  %v4975_v55 = vld [vmem:[%s9021_s1 + $0x20] sm:$0xf0] }
  0x14   :  { %219 = vmatpush.bf16.msra.mxu0 %v4690_v42  ;;  %v4974_v56 = vld [vmem:[%s9021_s1 + $0x1c] sm:$0xf]  ;;  %v4667_v57 = vld [vmem:[%s9021_s1 + $0x24] sm:$0xf0]  ;;  %v4673_v58 = vld [vmem:[%s9021_s1 + $0x20] sm:$0xf]  ;;  %v4666_v60 = vor.u32 %v4975_v55, %v4665_v54 }
  0x15   :  { %268 = vmatpush.bf16.msra.mxu1 %v4694_v43  ;;  %317 = vmatpush.bf16.msra.mxu2 %v4698_v44  ;;  %v4976_v59 = vld [vmem:[%s9021_s1 + $0x28] sm:$0xf0]  ;;  %v4670_v61 = vor.u32 %v4974_v56, %v4667_v57  ;;  %v4653_v63 = vld [vmem:[%s9021_s1] sm:$0xf]  ;;  %v4971_v1 = vld [vmem:[%s9021_s1 + $0x4] sm:$0xf] }
  0x16   :  { %5039 = vmatpush.bf16.msra.mxu3 %v4698_v44  ;;  %v4674_v62 = vor.u32 %v4976_v59, %v4673_v58  ;;  %v4972_v0 = vld [vmem:[%s9021_s1 + $0x8] sm:$0xf0]  ;;  %v4655_v2 = vld [vmem:[%s9021_s1 + $0xc] sm:$0xf0]  ;;  %v4661_v3 = vld [vmem:[%s9021_s1 + $0x8] sm:$0xf] }
  0x17   :  { %v4973_v4 = vld [vmem:[%s9021_s1 + $0x10] sm:$0xf0]  ;;  %v4654_v5 = vor.u32 %v4972_v0, %v4653_v63  ;;  %v25_v6 = vld [vmem:[%s9020_s0] sm:$0xff]  ;;  %v26_v7 = vld [vmem:[%s9020_s0 + $0x8] sm:$0xff]  ;;  %v4658_v8 = vor.u32 %v4971_v1, %v4655_v2  ;;  %s5537_s9 = smov 64   ;;  %s5538_s10 = smov 96  }
  0x18   :  { %220 = vmatpush.bf16.msra.mxu0 %v4678_v51  ;;  %v4662_v9 = vor.u32 %v4973_v4, %v4661_v3  ;;  %v33_v10 = vld [vmem:[%s9020_s0 + $0x40] sm:$0xff]  ;;  %v34_v11 = vld [vmem:[%s9020_s0 + $0x48] sm:$0xff]  ;;  %v41_v12 = vpack.c.bf16 %v26_v7, %v25_v6  ;;  %v27_v14 = vld [vmem:[%s9020_s0 + $0x10] sm:$0xff]  ;;  %s5539_s11 = smov 32   ;;  %vm426_vm0 = vcmask 261120   ;;  %vm480_vm1 = vcmask 523264  }
  0x19   :  { %269 = vmatpush.bf16.msra.mxu1 %v4682_v52  ;;  %318 = vmatpush.bf16.msra.mxu2 %v4686_v53  ;;  %v45_v13 = vpack.c.bf16 %v34_v11, %v33_v10  ;;  %v28_v15 = vld [vmem:[%s9020_s0 + $0x18] sm:$0xff]  ;;  %v35_v16 = vld [vmem:[%s9020_s0 + $0x50] sm:$0xff]  ;;  %v29_v20 = vld [vmem:[%s9020_s0 + $0x20] sm:$0xff]  ;;  %s4639_s28 = sshll.u32 %s9026_s6, 4  ;;  %s5542_s29 = smov 128   ;;  %s4640_s28 = int_to_ptr.hbm [resolvable:$true] %s4639_s28 }
  0x1a   :  { %5040 = vmatpush.bf16.msra.mxu3 %v4686_v53  ;;  %v36_v17 = vld [vmem:[%s9020_s0 + $0x58] sm:$0xff]  ;;  %v42_v18 = vpack.c.bf16 %v28_v15, %v27_v14  ;;  %v30_v21 = vld [vmem:[%s9020_s0 + $0x28] sm:$0xff]  ;;  %v37_v22 = vld [vmem:[%s9020_s0 + $0x60] sm:$0xff]  ;;  %s5543_s30 = smov 8  }
  0x1b   :  { %v46_v19 = vpack.c.bf16 %v36_v17, %v35_v16  ;;  %v38_v23 = vld [vmem:[%s9020_s0 + $0x68] sm:$0xff]  ;;  %v43_v24 = vpack.c.bf16 %v30_v21, %v29_v20  ;;  %v31_v26 = vld [vmem:[%s9020_s0 + $0x30] sm:$0xff]  ;;  %v32_v27 = vld [vmem:[%s9020_s0 + $0x38] sm:$0xff] }
  0x1c   :  { %221 = vmatpush.bf16.msra.mxu0 %v4666_v60  ;;  %v47_v25 = vpack.c.bf16 %v38_v23, %v37_v22  ;;  %v39_v28 = vld [vmem:[%s9020_s0 + $0x70] sm:$0xff]  ;;  %v40_v29 = vld [vmem:[%s9020_s0 + $0x78] sm:$0xff]  ;;  %v44_v30 = vpack.c.bf16 %v32_v27, %v31_v26  ;;  %v49_v32 = vld [vmem:[%s9025_s5] sm:$0xff] }
  0x1d   :  { %270 = vmatpush.bf16.msra.mxu1 %v4670_v61  ;;  %319 = vmatpush.bf16.msra.mxu2 %v4674_v62  ;;  %v48_v31 = vpack.c.bf16 %v40_v29, %v39_v28  ;;  %v50_v33 = vld [vmem:[%s9025_s5 + $0x8] sm:$0xff]  ;;  %v5777_v36 = vperm.slane %v49_v32, 0  ;;  %v51_v48 = vld [vmem:[%s9025_s5 + $0x10] sm:$0xff] }
  0x1e   :  { %5041 = vmatpush.bf16.msra.mxu3 %v4674_v62  ;;  %v5779_v37 = vperm.slane %v50_v33, 0  ;;  %v5788_v53 = vperm.slane %v51_v48, 0 }
  0x20   :  { %222 = vmatpush.bf16.msra.mxu0 %v4654_v5 }
  0x21   :  { %271 = vmatpush.bf16.msra.mxu1 %v4658_v8  ;;  %320 = vmatpush.bf16.msra.mxu2 %v4662_v9 }
  0x22   :  { %5042 = vmatpush.bf16.msra.mxu3 %v4662_v9 }
  0x23   :  { %223 = vmatmul.bf16.vlgmr.msra.gmra.mxu0 %v41_v12 }
  0x24   :  { %272 = vmatmul.bf16.vlgmr.msra.gmra.mxu1 %v41_v12  ;;  %321 = vmatmul.bf16.vlgmr.msra.gmra.mxu2 %v41_v12 }
  0x25   :  { %341 = vmatmul.bf16.vlgmr.msra.gmra.mxu3 %v45_v13 }
  0x33   :  { %228 = vmatmul.bf16.gmra.mxu0 %v42_v18 }
  0x34   :  { %277 = vmatmul.bf16.gmra.mxu1 %v42_v18  ;;  %326 = vmatmul.bf16.gmra.mxu2 %v42_v18 }
  0x35   :  { %346 = vmatmul.bf16.gmra.mxu3 %v46_v19 }
  0x43   :  { %233 = vmatmul.bf16.gmra.mxu0 %v43_v24 }
  0x44   :  { %282 = vmatmul.bf16.gmra.mxu1 %v43_v24  ;;  %331 = vmatmul.bf16.gmra.mxu2 %v43_v24 }
  0x45   :  { %351 = vmatmul.bf16.gmra.mxu3 %v47_v25 }
  0x53   :  { %238 = vmatmul.bf16.gmra.mxu0 %v44_v30 }
  0x54   :  { %287 = vmatmul.bf16.gmra.mxu1 %v44_v30  ;;  %336 = vmatmul.bf16.gmra.mxu2 %v44_v30 }
  0x55   :  { %356 = vmatmul.bf16.gmra.mxu3 %v48_v31 }
  0x63   :  { %243 = vmatmul.bf16.gmra.mxu0 %v45_v13 }
  0x64   :  { %292 = vmatmul.bf16.gmra.mxu1 %v45_v13 }
  0x73   :  { %248 = vmatmul.bf16.gmra.mxu0 %v46_v19 }
  0x74   :  { %297 = vmatmul.bf16.gmra.mxu1 %v46_v19 }
  0x83   :  { %253 = vmatmul.bf16.gmra.mxu0 %v47_v25 }
  0x84   :  { %302 = vmatmul.bf16.gmra.mxu1 %v47_v25 }
  0x93   :  { %258 = vmatmul.bf16.gmra.mxu0 %v48_v31 }
  0x94   :  { %307 = vmatmul.bf16.gmra.mxu1 %v48_v31 }
  0xa0   :  { %v224_v34 = vpop.f32.mrf.mxu0 }
  0xa1   :  { %v273_v35 = vpop.f32.mrf.mxu1  ;;  %v225_v38 = vadd.f32 %v224_v34, %v5777_v36 }
  0xa2   :  { %v274_v39 = vadd.f32 %v273_v35, %v5779_v37 }
  0xa4   :  { %v362_v45 = vpack.c.bf16 %v274_v39, %v225_v38 }
  0xa6   :  { %v402_v49 = vunpack.c.l.b16 %v362_v45  ;;  %v414_v50 = vunpack.c.h.b16 %v362_v45 }
  0xa7   :  { %v322_v40 = vpop.f32.mrf.mxu2 }
  0xa8   :  { %v226_v41 = vpop.f32.mrf.mxu0  ;;  %v342_v42 = vpop.f32.mrf.mxu3  ;;  %v323_v62 = vadd.f32 %v322_v40, %v5788_v53 }
  0xa9   :  { %v227_v43 = vadd.f32 %v226_v41, %v5777_v36  ;;  %v275_v44 = vpop.f32.mrf.mxu1  ;;  %v343_v60 = vadd.f32 %v342_v42, %v5788_v53 }
  0xaa   :  { %v276_v46 = vadd.f32 %v275_v44, %v5779_v37  ;;  %v363_v2 = vpack.c.bf16 %v323_v62, %v323_v62 }
  0xab   :  { %v379_v0 = vpack.c.bf16 %v343_v60, %v343_v60 }
  0xac   :  { %v364_v47 = vpack.c.bf16 %v276_v46, %v227_v43  ;;  %v685_v13 = vunpack.c.l.b16 %v363_v2 }
  0xad   :  { %v2106_v6 = vunpack.c.l.b16 %v379_v0 }
  0xae   :  { %v403_v51 = vunpack.c.l.b16 %v364_v47  ;;  %v415_v52 = vunpack.c.h.b16 %v364_v47 }
  0xaf   :  { %v324_v59 = vpop.f32.mrf.mxu2 }
  0xb0   :  { %v229_v54 = vpop.f32.mrf.mxu0  ;;  %v5790_v55 = vpack.c.b16 %v415_v52, %v414_v50  ;;  %v5792_v56 = vpack.c.b16 %v403_v51, %v402_v49  ;;  %v344_v57 = vpop.f32.mrf.mxu3  ;;  %v325_v63 = vadd.f32 %v324_v59, %v5788_v53 }
  0xb1   :  { %v278_v58 = vpop.f32.mrf.mxu1  ;;  %v345_v61 = vadd.f32 %v344_v57, %v5788_v53  ;;  %v230_v5 = vadd.f32 %v229_v54, %v5777_v36 }
  0xb2   :  { %1068 = vrot.lane.b32.xlu0 %v5790_v55, %s5537_s9  ;;  %750 = vrot.lane.b32.xlu1 %v5790_v55, %s5538_s10  ;;  %v365_v3 = vpack.c.bf16 %v325_v63, %v325_v63  ;;  %v279_v9 = vadd.f32 %v278_v58, %v5779_v37 }
  0xb3   :  { %742 = vrot.lane.b32.xlu2 %v5792_v56, %s5538_s10  ;;  %v381_v1 = vpack.c.bf16 %v345_v61, %v345_v61 }
  0xb4   :  { %v686_v14 = vunpack.c.l.b16 %v365_v3  ;;  %v366_v15 = vpack.c.bf16 %v279_v9, %v230_v5 }
  0xb5   :  { %v2107_v12 = vunpack.c.l.b16 %v381_v1 }
  0xb6   :  { %v5816_v18 = vpack.c.b16 %v686_v14, %v685_v13  ;;  %v416_v21 = vunpack.c.h.b16 %v366_v15  ;;  %v404_v23 = vunpack.c.l.b16 %v366_v15 }
  0xb7   :  { %v327_v8 = vpop.f32.mrf.mxu2  ;;  %v5814_v17 = vpack.c.b16 %v2107_v12, %v2106_v6 }
  0xb8   :  { %v231_v4 = vpop.f32.mrf.mxu0  ;;  %v347_v27 = vpop.f32.mrf.mxu3  ;;  %v328_v31 = vadd.f32 %v327_v8, %v5788_v53 }
  0xb9   :  { %v280_v7 = vpop.f32.mrf.mxu1  ;;  %v232_v10 = vadd.f32 %v231_v4, %v5777_v36  ;;  %9062 = vst [vmem:[#allocation5_spill] sm:$0xff] %v5814_v17  ;;  %v348_v42 = vadd.f32 %v347_v27, %v5788_v53 }
  0xba   :  { %v281_v11 = vadd.f32 %v280_v7, %v5779_v37  ;;  %1386 = vrot.lane.b32.xlu1 %v5790_v55, %s5539_s11  ;;  %1060 = vrot.lane.b32.xlu0 %v5792_v56, %s5537_s9  ;;  %v367_v34 = vpack.c.bf16 %v328_v31, %v328_v31 }
  0xbb   :  { %1378 = vrot.lane.b32.xlu2 %v5792_v56, %s5539_s11  ;;  %v383_v52 = vpack.c.bf16 %v348_v42, %v348_v42 }
  0xbc   :  { %v368_v16 = vpack.c.bf16 %v281_v11, %v232_v10  ;;  %v687_v41 = vunpack.c.l.b16 %v367_v34 }
  0xbd   :  { %v2108_v1 = vunpack.c.l.b16 %v383_v52 }
  0xbe   :  { %v417_v22 = vunpack.c.h.b16 %v368_v16  ;;  %v405_v24 = vunpack.c.l.b16 %v368_v16 }
  0xbf   :  { %v329_v25 = vpop.f32.mrf.mxu2 }
  0xc0   :  { %v234_v19 = vpop.f32.mrf.mxu0  ;;  %v5824_v26 = vpack.c.b16 %v417_v22, %v416_v21  ;;  %v5826_v28 = vpack.c.b16 %v405_v24, %v404_v23  ;;  %v330_v32 = vadd.f32 %v329_v25, %v5788_v53  ;;  %v349_v39 = vpop.f32.mrf.mxu3 }
  0xc1   :  { %v283_v20 = vpop.f32.mrf.mxu1  ;;  %v235_v43 = vadd.f32 %v234_v19, %v5777_v36  ;;  %v350_v46 = vadd.f32 %v349_v39, %v5788_v53 }
  0xc2   :  { %2428 = vrot.lane.b32.xlu1 %v5814_v17, %s5538_s10  ;;  %1007 = vrot.lane.b32.xlu0 %v5816_v18, %s5538_s10  ;;  %v369_v35 = vpack.c.bf16 %v330_v32, %v330_v32  ;;  %v284_v44 = vadd.f32 %v283_v20, %v5779_v37 }
  0xc3   :  { %1325 = vrot.lane.b32.xlu2 %v5816_v18, %s5537_s9  ;;  %v385_v54 = vpack.c.bf16 %v350_v46, %v350_v46 }
  0xc4   :  { %v688_v45 = vunpack.c.l.b16 %v369_v35  ;;  %v370_v57 = vpack.c.bf16 %v284_v44, %v235_v43 }
  0xc5   :  { %v2109_v2 = vunpack.c.l.b16 %v385_v54 }
  0xc6   :  { %v5850_v59 = vpack.c.b16 %v688_v45, %v687_v41  ;;  %v418_v3 = vunpack.c.h.b16 %v370_v57  ;;  %v406_v15 = vunpack.c.l.b16 %v370_v57  ;;  %v443_v41 = vsel %vm426_vm0, %v5824_v26, 0 }
  0xc7   :  { %v332_v33 = vpop.f32.mrf.mxu2  ;;  %v5866_v8 = vpack.c.b16 %v2109_v2, %v2108_v1 }
  0xc8   :  { %v236_v29 = vpop.f32.mrf.mxu0  ;;  %v333_v12 = vadd.f32 %v332_v33, %v5788_v53  ;;  %v352_v19 = vpop.f32.mrf.mxu3 }
  0xc9   :  { %v285_v30 = vpop.f32.mrf.mxu1  ;;  %v237_v47 = vadd.f32 %v236_v29, %v5777_v36  ;;  %9063 = vst [vmem:[#allocation6_spill] sm:$0xff] %v5866_v8 }
  0xca   :  { %752 = vrot.lane.b32.xlu1 %v5824_v26, %s5538_s10  ;;  %1643 = vrot.lane.b32.xlu0 %v5816_v18, %s5539_s11  ;;  %v286_v48 = vadd.f32 %v285_v30, %v5779_v37  ;;  %v371_v20 = vpack.c.bf16 %v333_v12, %v333_v12 }
  0xcb   :  { %744 = vrot.lane.b32.xlu2 %v5826_v28, %s5538_s10 }
  0xcc   :  { %v372_v58 = vpack.c.bf16 %v286_v48, %v237_v47  ;;  %v689_v27 = vunpack.c.l.b16 %v371_v20 }
  0xce   :  { %v419_v4 = vunpack.c.h.b16 %v372_v58  ;;  %v407_v16 = vunpack.c.l.b16 %v372_v58 }
  0xcf   :  { %v334_v51 = vpop.f32.mrf.mxu2 }
  0xd0   :  { %v239_v38 = vpop.f32.mrf.mxu0  ;;  %v424_v11 = vpack.c.b16 %v419_v4, %v418_v3  ;;  %v335_v13 = vadd.f32 %v334_v51, %v5788_v53  ;;  %v5876_v23 = vpack.c.b16 %v407_v16, %v406_v15  ;;  %v354_v34 = vpop.f32.mrf.mxu3 }
  0xd1   :  { %v288_v40 = vpop.f32.mrf.mxu1  ;;  %v240_v49 = vadd.f32 %v239_v38, %v5777_v36  ;;  %v355_v42 = vadd.f32 %v354_v34, %v5788_v53 }
  0xd2   :  { %1070 = vrot.lane.b32.xlu1 %v5824_v26, %s5537_s9  ;;  %1062 = vrot.lane.b32.xlu0 %v5826_v28, %s5537_s9  ;;  %v289_v50 = vadd.f32 %v288_v40, %v5779_v37  ;;  %v373_v21 = vpack.c.bf16 %v335_v13, %v335_v13  ;;  %v446_v30 = vsel %vm426_vm0, %v424_v11, 0  ;;  %v353_v40 = vadd.f32 %v352_v19, %v5788_v53 }
  0xd3   :  { %1388 = vrot.lane.b32.xlu2 %v5824_v26, %s5539_s11  ;;  %v389_v47 = vpack.c.bf16 %v355_v42, %v355_v42  ;;  %v440_v26 = vsel %vm426_vm0, %v5790_v55, 0 }
  0xd4   :  { %v5852_v60 = vpack.c.bf16 %v289_v50, %v240_v49  ;;  %v690_v29 = vunpack.c.l.b16 %v373_v21  ;;  %v387_v46 = vpack.c.bf16 %v353_v40, %v353_v40 }
  0xd5   :  { %v2111_v50 = vunpack.c.l.b16 %v389_v47 }
  0xd6   :  { %v420_v5 = vunpack.c.h.b16 %v5852_v60  ;;  %v695_v33 = vpack.c.b16 %v690_v29, %v689_v27  ;;  %v2110_v49 = vunpack.c.l.b16 %v387_v46  ;;  %v408_v55 = vunpack.c.l.b16 %v5852_v60 }
  0xd7   :  { %v337_v9 = vpop.f32.mrf.mxu2 }
  0xd8   :  { %v241_v61 = vpop.f32.mrf.mxu0  ;;  %v338_v31 = vadd.f32 %v337_v9, %v5788_v53  ;;  %v5899_v54 = vpack.c.b16 %v2111_v50, %v2110_v49  ;;  %v357_v57 = vpop.f32.mrf.mxu3 }
  0xd9   :  { %v242_v62 = vadd.f32 %v241_v61, %v5777_v36  ;;  %v290_v63 = vpop.f32.mrf.mxu1 }
  0xda   :  { %v291_v0 = vadd.f32 %v290_v63, %v5779_v37  ;;  %1380 = vrot.lane.b32.xlu1 %v5826_v28, %s5539_s11  ;;  %1009 = vrot.lane.b32.xlu0 %v5850_v59, %s5538_s10  ;;  %v375_v35 = vpack.c.bf16 %v338_v31, %v338_v31  ;;  %9064 = vst [vmem:[#allocation7_spill] sm:$0xff] %v5899_v54 }
  0xdb   :  { %1327 = vrot.lane.b32.xlu2 %v5850_v59, %s5537_s9 }
  0xdc   :  { %v5863_v6 = vpack.c.bf16 %v291_v0, %v242_v62  ;;  %v691_v44 = vunpack.c.l.b16 %v375_v35 }
  0xde   :  { %v421_v7 = vunpack.c.h.b16 %v5863_v6  ;;  %v409_v58 = vunpack.c.l.b16 %v5863_v6 }
  0xdf   :  { %v339_v24 = vpop.f32.mrf.mxu2 }
  0xe0   :  { %v425_v10 = vpack.c.b16 %v421_v7, %v420_v5  ;;  %v244_v22 = vpop.f32.mrf.mxu0  ;;  %v340_v32 = vadd.f32 %v339_v24, %v5788_v53  ;;  %v5911_v63 = vpack.c.b16 %v409_v58, %v408_v55  ;;  %v359_v0 = vpop.f32.mrf.mxu3 }
  0xe1   :  { %v293_v25 = vpop.f32.mrf.mxu1  ;;  %v245_v1 = vadd.f32 %v244_v22, %v5777_v36 }
  0xe2   :  { %1645 = vrot.lane.b32.xlu1 %v5850_v59, %s5539_s11  ;;  %754 = vrot.lane.b32.xlu0 %v424_v11, %s5538_s10  ;;  %v449_v14 = vsel %vm426_vm0, %v425_v10, 0  ;;  %v377_v38 = vpack.c.bf16 %v340_v32, %v340_v32  ;;  %v294_v2 = vadd.f32 %v293_v25, %v5779_v37 }
  0xe3   :  { %2430 = vrot.lane.b32.xlu2 %v5866_v8, %s5538_s10  ;;  %455 = vmatpush.bf16.xpose.msrb.mxu3 %v449_v14 }
  0xe4   :  { %v692_v45 = vunpack.c.l.b16 %v377_v38  ;;  %v378_v60 = vpack.c.bf16 %v294_v2, %v245_v1 }
  0xe6   :  { %v696_v48 = vpack.c.b16 %v692_v45, %v691_v44 }
  0xe8   :  { %v246_v39 = vpop.f32.mrf.mxu0 }
  0xe9   :  { %v295_v43 = vpop.f32.mrf.mxu1  ;;  %v247_v3 = vadd.f32 %v246_v39, %v5777_v36 }
  0xea   :  { %1072 = vrot.lane.b32.xlu1 %v424_v11, %s5537_s9  ;;  %1382 = vrot.lane.b32.xlu0 %v5876_v23, %s5539_s11 }
  0xeb   :  { %746 = vrot.lane.b32.xlu2 %v5876_v23, %s5538_s10  ;;  %456 = vmatpush.bf16.xpose.msrb.mxu3 %v446_v30 }
  0xf0   :  { %v249_v51 = vpop.f32.mrf.mxu0 }
  0xf1   :  { %v298_v52 = vpop.f32.mrf.mxu1  ;;  %v250_v13 = vadd.f32 %v249_v51, %v5777_v36 }
  0xf2   :  { %1011 = vrot.lane.b32.xlu1 %v695_v33, %s5538_s10  ;;  %756 = vrot.lane.b32.xlu0 %v425_v10, %s5538_s10 }
  0xf3   :  { %1390 = vrot.lane.b32.xlu2 %v424_v11, %s5539_s11  ;;  %457 = vmatpush.bf16.xpose.msrb.mxu3 %v443_v41  ;;  %v1837_v11 = vunpack.c.h.b16 %v378_v60 }
  0xf8   :  { %v251_v61 = vpop.f32.mrf.mxu0 }
  0xf9   :  { %v300_v62 = vpop.f32.mrf.mxu1  ;;  %v252_v16 = vadd.f32 %v251_v61, %v5777_v36 }
  0xfa   :  { %1329 = vrot.lane.b32.xlu1 %v695_v33, %s5537_s9  ;;  %1074 = vrot.lane.b32.xlu0 %v425_v10, %s5537_s9  ;;  %v301_v19 = vadd.f32 %v300_v62, %v5779_v37 }
  0xfb   :  { %1064 = vrot.lane.b32.xlu2 %v5876_v23, %s5537_s9  ;;  %458 = vmatpush.bf16.xpose.msrb.mxu3 %v440_v26 }
  0xfc   :  { %v384_v29 = vpack.c.bf16 %v301_v19, %v252_v16 }
  0xfe   :  { %v1828_v40 = vunpack.c.l.b16 %v384_v29 }
 0x100   :  { %v254_v9 = vpop.f32.mrf.mxu0 }
 0x101   :  { %v303_v14 = vpop.f32.mrf.mxu1  ;;  %v255_v39 = vadd.f32 %v254_v9, %v5777_v36 }
 0x102   :  { %2432 = vrot.lane.b32.xlu1 %v5899_v54, %s5538_s10  ;;  %1392 = vrot.lane.b32.xlu0 %v425_v10, %s5539_s11  ;;  %v1825_v10 = vunpack.c.l.b16 %v378_v60  ;;  %v304_v41 = vadd.f32 %v303_v14, %v5779_v37 }
 0x103   :  { %717 = vmatpush.bf16.msra.mxu3 %v696_v48  ;;  %1647 = vrot.lane.b32.xlu2 %v695_v33, %s5539_s11 }
 0x104   :  { %4747 = vmatmul.msk.bf16.vlgmr.msrb.gmra.mxu3 %vm426_vm0, %v5792_v56  ;;  %v296_v56 = vadd.f32 %v295_v43, %v5779_v37  ;;  %v386_v49 = vpack.c.bf16 %v304_v41, %v255_v39 }
 0x106   :  { %v380_v5 = vpack.c.bf16 %v296_v56, %v247_v3  ;;  %v1841_v51 = vunpack.c.h.b16 %v386_v49 }
 0x107   :  { %718 = vmatpush.bf16.msra.mxu3 %v695_v33  ;;  %v1840_v33 = vunpack.c.h.b16 %v384_v29 }
 0x108   :  { %v1826_v12 = vunpack.c.l.b16 %v380_v5  ;;  %v1838_v15 = vunpack.c.h.b16 %v380_v5  ;;  %v256_v31 = vpop.f32.mrf.mxu0 }
 0x109   :  { %v257_v42 = vadd.f32 %v256_v31, %v5777_v36 }
 0x10a   :  { %748 = vrot.lane.b32.xlu1 %v5911_v63, %s5538_s10  ;;  %1331 = vrot.lane.b32.xlu0 %v696_v48, %s5537_s9  ;;  %v5938_v24 = vpack.c.b16 %v1826_v12, %v1825_v10  ;;  %v5940_v25 = vpack.c.b16 %v1838_v15, %v1837_v11 }
 0x10b   :  { %719 = vmatpush.bf16.msra.mxu3 %v5850_v59  ;;  %1066 = vrot.lane.b32.xlu2 %v5911_v63, %s5537_s9  ;;  %v360_v59 = vadd.f32 %v359_v0, %v5788_v53  ;;  %v1829_v0 = vunpack.c.l.b16 %v386_v49 }
 0x10d   :  { %v5924_v4 = vpop.permute.xlu2 %742  ;;  %v393_v7 = vpack.c.bf16 %v360_v59, %v360_v59 }
 0x10f   :  { %720 = vmatpush.bf16.msra.mxu3 %v5816_v18  ;;  %v358_v18 = vadd.f32 %v357_v57, %v5788_v53  ;;  %v299_v53 = vadd.f32 %v298_v52, %v5779_v37  ;;  %v2113_v21 = vunpack.c.l.b16 %v393_v7 }
 0x110   :  { %v259_v44 = vpop.f32.mrf.mxu0 }
 0x111   :  { %v391_v6 = vpack.c.bf16 %v358_v18, %v358_v18  ;;  %v382_v27 = vpack.c.bf16 %v299_v53, %v250_v13  ;;  %v260_v1 = vadd.f32 %v259_v44, %v5777_v36 }
 0x112   :  { %1384 = vrot.lane.b32.xlu1 %v5911_v63, %s5539_s11  ;;  %1649 = vrot.lane.b32.xlu0 %v696_v48, %s5539_s11 }
 0x113   :  { %1013 = vrot.lane.b32.xlu2 %v696_v48, %s5538_s10  ;;  %v2112_v20 = vunpack.c.l.b16 %v391_v6  ;;  %v1839_v32 = vunpack.c.h.b16 %v382_v27  ;;  %v1827_v38 = vunpack.c.l.b16 %v382_v27 }
 0x114   :  { %4748 = vmatmul.msk.bf16.gmra.mxu3 %vm426_vm0, %v5826_v28  ;;  %v305_v28 = vpop.f32.mrf.mxu1 }
 0x115   :  { %v5936_v22 = vpop.permute.xlu2 %1378  ;;  %v5942_v30 = vpack.c.b16 %v2113_v21, %v2112_v20  ;;  %v5952_v35 = vpack.c.b16 %v1840_v33, %v1839_v32  ;;  %v306_v43 = vadd.f32 %v305_v28, %v5779_v37  ;;  %v5972_v26 = vpack.c.b16 %v1828_v40, %v1827_v38 }
 0x117   :  { %v388_v50 = vpack.c.bf16 %v306_v43, %v257_v42 }
 0x118   :  { %v261_v61 = vpop.f32.mrf.mxu0 }
 0x119   :  { %v1830_v2 = vunpack.c.l.b16 %v388_v50  ;;  %v262_v56 = vadd.f32 %v261_v61, %v5777_v36 }
 0x11a   :  { %2163 = vrot.lane.b32.xlu1 %v5938_v24, %s5538_s10  ;;  %2171 = vrot.lane.b32.xlu0 %v5940_v25, %s5538_s10 }
 0x11b   :  { %2434 = vrot.lane.b32.xlu2 %v5942_v30, %s5538_s10  ;;  %v6004_v9 = vpack.c.b16 %v1830_v2, %v1829_v0 }
 0x11c   :  { %v308_v48 = vpop.f32.mrf.mxu1 }
 0x11d   :  { %v5950_v34 = vpop.permute.xlu2 %1325  ;;  %v309_v3 = vadd.f32 %v308_v48, %v5779_v37 }
 0x11f   :  { %v390_v6 = vpack.c.bf16 %v309_v3, %v260_v1 }
 0x121   :  { %v1843_v36 = vunpack.c.h.b16 %v390_v6  ;;  %v1831_v13 = vunpack.c.l.b16 %v390_v6 }
 0x122   :  { %2489 = vrot.lane.b32.xlu1 %v5940_v25, %s5537_s9  ;;  %2809 = vrot.lane.b32.xlu0 %v5952_v35, %s5539_s11 }
 0x123   :  { %2799 = vrot.lane.b32.xlu2 %v5938_v24, %s5539_s11 }
 0x124   :  { %4749 = vmatmul.msk.bf16.gmra.mxu3 %vm426_vm0, %v5876_v23  ;;  %v5966_v45 = vpop.permute.xlu0 %1068  ;;  %v5968_v46 = vpop.permute.xlu1 %750  ;;  %v1842_v23 = vunpack.c.h.b16 %v388_v50 }
 0x125   :  { %v5970_v47 = vpop.permute.xlu2 %744  ;;  %v310_v62 = vpop.f32.mrf.mxu1  ;;  %v771_v2 = vsel %vm426_vm0, %v5968_v46, 0  ;;  %v1089_v46 = vsel %vm426_vm0, %v5966_v45, 0 }
 0x126   :  { %v5986_v58 = vpack.c.b16 %v1842_v23, %v1841_v51  ;;  %v311_v18 = vadd.f32 %v310_v62, %v5779_v37 }
 0x128   :  { %v392_v7 = vpack.c.bf16 %v311_v18, %v262_v56 }
 0x12a   :  { %2481 = vrot.lane.b32.xlu1 %v5938_v24, %s5537_s9  ;;  %2483 = vrot.lane.b32.xlu0 %v5972_v26, %s5537_s9  ;;  %v1844_v37 = vunpack.c.h.b16 %v392_v7  ;;  %v1832_v14 = vunpack.c.l.b16 %v392_v7 }
 0x12b   :  { %2173 = vrot.lane.b32.xlu2 %v5952_v35, %s5538_s10 }
 0x12c   :  { %v5980_v52 = vpop.permute.xlu1 %1386  ;;  %v5982_v57 = vpop.permute.xlu0 %1060  ;;  %v6016_v12 = vpack.c.b16 %v1844_v37, %v1843_v36  ;;  %v6028_v19 = vpack.c.b16 %v1832_v14, %v1831_v13 }
 0x12d   :  { %v5984_v55 = vpop.permute.xlu2 %1388 }
 0x12e   :  { %v1871_v36 = vsel %vm426_vm0, %v6016_v12, 0 }
 0x132   :  { %2807 = vrot.lane.b32.xlu1 %v5940_v25, %s5539_s11  ;;  %2175 = vrot.lane.b32.xlu0 %v5986_v58, %s5538_s10 }
 0x133   :  { %2165 = vrot.lane.b32.xlu2 %v5972_v26, %s5538_s10 }
 0x134   :  { %4750 = vmatmul.msk.bf16.gmra.mxu3 %vm426_vm0, %v5911_v63  ;;  %v6000_v59 = vpop.permute.xlu1 %2428  ;;  %v1008_v60 = vpop.permute.xlu0 %1007 }
 0x135   :  { %9065 = vst [vmem:[#allocation8_spill] sm:$0xff] %v6000_v59  ;;  %v6002_v5 = vpop.permute.xlu2 %1327 }
 0x13a   :  { %2491 = vrot.lane.b32.xlu1 %v5952_v35, %s5537_s9  ;;  %2803 = vrot.lane.b32.xlu0 %v6004_v9, %s5539_s11 }
 0x13b   :  { %2167 = vrot.lane.b32.xlu2 %v6004_v9, %s5538_s10 }
 0x13c   :  { %v753_v63 = vpop.permute.xlu1 %752  ;;  %v6012_v10 = vpop.permute.xlu0 %1643 }
 0x13d   :  { %v6014_v11 = vpop.permute.xlu2 %2430  ;;  %v774_v61 = vsel %vm426_vm0, %v753_v63, 0  ;;  %v1410_v63 = vsel %vm426_vm0, %v5984_v55, 0  ;;  %v1407_v55 = vsel %vm426_vm0, %v5980_v52, 0 }
 0x13e   :  { %9066 = vst [vmem:[#allocation9_spill] sm:$0xff] %v6014_v11 }
 0x142   :  { %2801 = vrot.lane.b32.xlu1 %v5972_v26, %s5539_s11  ;;  %2495 = vrot.lane.b32.xlu0 %v6016_v12, %s5537_s9 }
 0x143   :  { %2485 = vrot.lane.b32.xlu2 %v6004_v9, %s5537_s9 }
 0x144   :  { %v1071_v15 = vpop.permute.xlu1 %1070  ;;  %v6024_v53 = vpop.permute.xlu0 %1062 }
 0x145   :  { %v6026_v16 = vpop.permute.xlu2 %746  ;;  %v1092_v56 = vsel %vm426_vm0, %v1071_v15, 0 }
 0x14a   :  { %2493 = vrot.lane.b32.xlu1 %v5986_v58, %s5537_s9  ;;  %2813 = vrot.lane.b32.xlu0 %v6016_v12, %s5539_s11 }
 0x14b   :  { %2169 = vrot.lane.b32.xlu2 %v6028_v19, %s5538_s10 }
 0x14c   :  { %v6036_v20 = vpop.permute.xlu1 %1380  ;;  %v1010_v21 = vpop.permute.xlu0 %1009 }
 0x14d   :  { %v1391_v27 = vpop.permute.xlu2 %1390 }
 0x14e   :  { %v1413_v7 = vsel %vm426_vm0, %v1391_v27, 0 }
 0x152   :  { %2811 = vrot.lane.b32.xlu1 %v5986_v58, %s5539_s11  ;;  %2487 = vrot.lane.b32.xlu0 %v6028_v19, %s5537_s9 }
 0x154   :  { %v1646_v29 = vpop.permute.xlu1 %1645  ;;  %v755_v31 = vpop.permute.xlu0 %754 }
 0x155   :  { %v6042_v32 = vpop.permute.xlu2 %1064  ;;  %v777_v49 = vsel %vm426_vm0, %v755_v31, 0 }
 0x15a   :  { %2177 = vrot.lane.b32.xlu1 %v6016_v12, %s5538_s10  ;;  %v1868_v12 = vsel %vm426_vm0, %v5986_v58, 0  ;;  %v1865_v58 = vsel %vm426_vm0, %v5952_v35, 0 }
 0x15c   :  { %v1073_v33 = vpop.permute.xlu1 %1072  ;;  %v6046_v28 = vpop.permute.xlu0 %1382 }
 0x15d   :  { %v1648_v38 = vpop.permute.xlu2 %1647  ;;  %v1095_v62 = vsel %vm426_vm0, %v1073_v33, 0 }
 0x162   :  { %2805 = vrot.lane.b32.xlu1 %v6028_v19, %s5539_s11 }
 0x164   :  { %v1012_v39 = vpop.permute.xlu1 %1011  ;;  %v757_v40 = vpop.permute.xlu0 %756 }
 0x165   :  { %v6050_v41 = vpop.permute.xlu2 %1066  ;;  %v780_v42 = vsel %vm426_vm0, %v757_v40, 0 }
 0x166   :  { %786 = vmatpush.bf16.xpose.msrb.mxu0 %v780_v42 }
 0x16c   :  { %v1330_v43 = vpop.permute.xlu1 %1329  ;;  %v1075_v44 = vpop.permute.xlu0 %1074 }
 0x16d   :  { %v1014_v48 = vpop.permute.xlu2 %1013  ;;  %v1098_v50 = vsel %vm426_vm0, %v1075_v44, 0 }
 0x16e   :  { %1035 = vmatpush.bf16.msrb.mxu1 %v1014_v48  ;;  %787 = vmatpush.bf16.xpose.msrb.mxu0 %v777_v49 }
 0x16f   :  { %1104 = vmatpush.bf16.xpose.msrb.mxu2 %v1098_v50 }
 0x172   :  { %1036 = vmatpush.bf16.msrb.mxu1 %v1012_v39 }
 0x174   :  { %v6055_v51 = vpop.permute.xlu1 %2432  ;;  %v1393_v23 = vpop.permute.xlu0 %1392 }
 0x175   :  { %9067 = vst [vmem:[#allocation10_spill] sm:$0xff] %v6055_v51  ;;  %v1416_v3 = vsel %vm426_vm0, %v1393_v23, 0 }
 0x176   :  { %1037 = vmatpush.bf16.msrb.mxu1 %v1010_v21  ;;  %788 = vmatpush.bf16.xpose.msrb.mxu0 %v774_v61 }
 0x177   :  { %1105 = vmatpush.bf16.xpose.msrb.mxu2 %v1095_v62  ;;  %v6152_v62 = vpop.permute.xlu2 %2434 }
 0x178   :  { %9068 = vst [vmem:[#allocation11_spill] sm:$0xff] %v6152_v62 }
 0x17a   :  { %1038 = vmatpush.bf16.msrb.mxu1 %v1008_v60 }
 0x17c   :  { %v6059_v0 = vpop.permute.xlu1 %748  ;;  %v1332_v1 = vpop.permute.xlu0 %1331 }
 0x17d   :  { %1353 = vmatpush.bf16.msrb.mxu3 %v1332_v1 }
 0x17e   :  { %789 = vmatpush.bf16.xpose.msrb.mxu0 %v771_v2 }
 0x17f   :  { %1106 = vmatpush.bf16.xpose.msrb.mxu2 %v1092_v56  ;;  %v6158_v2 = vpop.permute.xlu2 %2799 }
 0x181   :  { %1354 = vmatpush.bf16.msrb.mxu3 %v1330_v43 }
 0x184   :  { %v6065_v18 = vpop.permute.xlu1 %1384  ;;  %v1650_v6 = vpop.permute.xlu0 %1649 }
 0x185   :  { %4755 = vmatmul.msk.bf16.vlgmr.msrb.gmra.mxu0 %vm426_vm0, %v5924_v4  ;;  %1355 = vmatpush.bf16.msrb.mxu3 %v6002_v5 }
 0x186   :  { %1422 = vmatpush.bf16.xpose.msra.mxu0 %v1416_v3  ;;  %1671 = vmatpush.bf16.msra.mxu1 %v1650_v6 }
 0x187   :  { %v6070_v60 = vpop.f32.mrf.mxu3  ;;  %1107 = vmatpush.bf16.xpose.msrb.mxu2 %v1089_v46  ;;  %v2174_v3 = vpop.permute.xlu2 %2173 }
 0x188   :  { %v481_v37 = vsel %vm480_vm1, %v6070_v60, -inf  ;;  %v2195_v56 = vsel %vm426_vm0, %v2174_v3, 0 }
 0x189   :  { %482 = vmax.xlane.f32.xlu2 %v481_v37  ;;  %1356 = vmatpush.bf16.msrb.mxu3 %v5950_v34 }
 0x18a   :  { %1672 = vmatpush.bf16.msra.mxu1 %v1648_v38 }
 0x18c   :  { %v6080_v4 = vpop.permute.xlu1 %2163  ;;  %v6082_v5 = vpop.permute.xlu0 %2171 }
 0x18d   :  { %v2192_v6 = vsel %vm426_vm0, %v6082_v5, 0 }
 0x18e   :  { %1423 = vmatpush.bf16.xpose.msra.mxu0 %v1413_v7  ;;  %4763 = vmatmul.msk.bf16.vlgmr.msrb.gmra.mxu2 %vm426_vm0, %v5982_v57 }
 0x18f   :  { %1877 = vmatpush.bf16.xpose.msra.mxu2 %v1871_v36  ;;  %v6084_v45 = vpop.f32.mrf.mxu3  ;;  %1673 = vmatpush.bf16.msra.mxu1 %v1646_v29 }
 0x190   :  { %v484_v34 = vsel %vm480_vm1, %v6084_v45, -inf }
 0x191   :  { %485 = vmax.xlane.f32.xlu0 %v484_v34 }
 0x193   :  { %1674 = vmatpush.bf16.msra.mxu1 %v6012_v10 }
 0x194   :  { %v2490_v13 = vpop.permute.xlu1 %2489  ;;  %v6095_v14 = vpop.permute.xlu0 %2809 }
 0x195   :  { %4756 = vmatmul.msk.bf16.gmra.mxu0 %vm426_vm0, %v5970_v47  ;;  %v1862_v47 = vsel %vm426_vm0, %v5940_v25, 0 }
 0x196   :  { %1424 = vmatpush.bf16.xpose.msra.mxu0 %v1410_v63 }
 0x197   :  { %1878 = vmatpush.bf16.xpose.msra.mxu2 %v1868_v12  ;;  %v6099_v57 = vpop.f32.mrf.mxu3 }
 0x198   :  { %v487_v15 = vsel %vm480_vm1, %v6099_v57, -inf }
 0x199   :  { %488 = vmax.xlane.f32.xlu0 %v487_v15 }
 0x19c   :  { %v6107_v10 = vpop.permute.xlu1 %2481  ;;  %v6109_v21 = vpop.permute.xlu0 %2483 }
 0x19e   :  { %1425 = vmatpush.bf16.xpose.msra.mxu0 %v1407_v55  ;;  %4764 = vmatmul.msk.bf16.gmra.mxu2 %vm426_vm0, %v6024_v53 }
 0x19f   :  { %1879 = vmatpush.bf16.xpose.msra.mxu2 %v1865_v58  ;;  %v6111_v27 = vpop.f32.mrf.mxu3 }
 0x1a0   :  { %v490_v35 = vsel %vm480_vm1, %v6111_v27, -inf }
 0x1a1   :  { %491 = vmax.xlane.f32.xlu2 %v490_v35 }
 0x1a4   :  { %v2808_v52 = vpop.permute.xlu1 %2807  ;;  %v2176_v29 = vpop.permute.xlu0 %2175 }
 0x1a5   :  { %4757 = vmatmul.msk.bf16.gmra.mxu0 %vm426_vm0, %v6026_v16  ;;  %v2828_v37 = vsel %vm426_vm0, %v2808_v52, 0 }
 0x1a7   :  { %1880 = vmatpush.bf16.xpose.msra.mxu2 %v1862_v47  ;;  %v6121_v31 = vpop.f32.mrf.mxu3 }
 0x1a8   :  { %v493_v33 = vsel %vm480_vm1, %v6121_v31, -inf }
 0x1a9   :  { %494 = vmax.xlane.f32.xlu2 %v493_v33 }
 0x1ac   :  { %v2492_v53 = vpop.permute.xlu1 %2491  ;;  %v6125_v38 = vpop.permute.xlu0 %2803 }
 0x1ad   :  { %v2513_v61 = vsel %vm426_vm0, %v2492_v53, 0 }
 0x1ae   :  { %4765 = vmatmul.msk.bf16.gmra.mxu2 %vm426_vm0, %v6042_v32 }
 0x1af   :  { %v6127_v25 = vpop.f32.mrf.mxu3 }
 0x1b0   :  { %v496_v39 = vsel %vm480_vm1, %v6127_v25, -inf }
 0x1b1   :  { %497 = vmax.xlane.f32.xlu0 %v496_v39 }
 0x1b4   :  { %v6133_v40 = vpop.permute.xlu1 %2801  ;;  %v2496_v16 = vpop.permute.xlu0 %2495 }
 0x1b5   :  { %4758 = vmatmul.msk.bf16.gmra.mxu0 %vm426_vm0, %v6059_v0  ;;  %v2519_v42 = vsel %vm426_vm0, %v2496_v16, 0 }
 0x1b6   :  { %2525 = vmatpush.bf16.xpose.msrb.mxu2 %v2519_v42 }
 0x1b7   :  { %v6138_v43 = vpop.f32.mrf.mxu3 }
 0x1b8   :  { %v499_v44 = vsel %vm480_vm1, %v6138_v43, -inf }
 0x1b9   :  { %500 = vmax.xlane.f32.xlu0 %v499_v44 }
 0x1bc   :  { %v2494_v32 = vpop.permute.xlu1 %2493 }
 0x1bd   :  { %v2516_v48 = vsel %vm426_vm0, %v2494_v32, 0 }
 0x1be   :  { %4766 = vmatmul.msk.bf16.gmra.mxu2 %vm426_vm0, %v6050_v41  ;;  %v2510_v41 = vsel %vm426_vm0, %v2490_v13, 0 }
 0x1bf   :  { %v6143_v49 = vpop.f32.mrf.mxu3  ;;  %2526 = vmatpush.bf16.xpose.msrb.mxu2 %v2516_v48 }
 0x1c0   :  { %v502_v50 = vsel %vm480_vm1, %v6143_v49, -inf }
 0x1c1   :  { %503 = vmax.xlane.f32.xlu1 %v502_v50 }
 0x1c4   :  { %v2812_v23 = vpop.permute.xlu1 %2811 }
 0x1c5   :  { %4771 = vmatmul.msk.bf16.vlgmr.msra.gmra.mxu0 %vm426_vm0, %v5936_v22  ;;  %v2198_v22 = vsel %vm426_vm0, %v2176_v29, 0  ;;  %v2834_v7 = vsel %vm426_vm0, %v2812_v23, 0 }
 0x1c7   :  { %2527 = vmatpush.bf16.xpose.msrb.mxu2 %v2513_v61 }
 0x1cc   :  { %v2178_v0 = vpop.permute.xlu1 %2177 }
 0x1cd   :  { %v2201_v1 = vsel %vm426_vm0, %v2178_v0, 0 }
 0x1ce   :  { %4779 = vmatmul.msk.bf16.vlgmr.msra.gmra.mxu2 %vm426_vm0, %v5938_v24  ;;  %2207 = vmatpush.bf16.xpose.msrb.mxu0 %v2201_v1  ;;  %v2814_v24 = vpop.permute.xlu0 %2813 }
 0x1cf   :  { %2528 = vmatpush.bf16.xpose.msrb.mxu2 %v2510_v41  ;;  %v2837_v46 = vsel %vm426_vm0, %v2814_v24, 0 }
 0x1d5   :  { %4772 = vmatmul.msk.bf16.gmra.mxu0 %vm426_vm0, %v6036_v20  ;;  %v2166_v20 = vpop.permute.xlu2 %2165 }
 0x1d6   :  { %2208 = vmatpush.bf16.xpose.msrb.mxu0 %v2198_v22  ;;  %v6185_v63 = vpop.permute.xlu0 %2487 }
 0x1de   :  { %4780 = vmatmul.msk.bf16.gmra.mxu2 %vm426_vm0, %v5972_v26  ;;  %2209 = vmatpush.bf16.xpose.msrb.mxu0 %v2195_v56  ;;  %v2168_v26 = vpop.permute.xlu2 %2167 }
 0x1e5   :  { %4773 = vmatmul.msk.bf16.gmra.mxu0 %vm426_vm0, %v6046_v28  ;;  %v2831_v28 = vsel %vm426_vm0, %v6095_v14, 0 }
 0x1e6   :  { %2210 = vmatpush.bf16.xpose.msrb.mxu0 %v2192_v6  ;;  %v2486_v36 = vpop.permute.xlu2 %2485 }
 0x1ee   :  { %2843 = vmatpush.bf16.xpose.msra.mxu0 %v2837_v46  ;;  %4781 = vmatmul.msk.bf16.gmra.mxu2 %vm426_vm0, %v6004_v9 }
 0x1f5   :  { %4774 = vmatmul.msk.bf16.gmra.mxu0 %vm426_vm0, %v6065_v18  ;;  %v2170_v18 = vpop.permute.xlu2 %2169 }
 0x1f6   :  { %2844 = vmatpush.bf16.xpose.msra.mxu0 %v2834_v7  ;;  %v6251_v7 = vpop.permute.xlu1 %2805 }
 0x1fd   :  { %v483_v13 = vpop.xlane.xlu2 %482 }
 0x1fe   :  { %2845 = vmatpush.bf16.xpose.msra.mxu0 %v2831_v28  ;;  %4782 = vmatmul.msk.bf16.gmra.mxu2 %vm426_vm0, %v6028_v19  ;;  %v505_v14 = vsub.f32 %v6070_v60, %v483_v13 }
 0x200   :  { %v513_v15 = vmul.f32 1.442695, %v505_v14 }
 0x202   :  { %v6181_v5 = vpop.f32.mrf.mxu0  ;;  %5170 = vpow2.f32 %v513_v15 }
 0x203   :  { %v811_v9 = vsel %vm480_vm1, %v6181_v5, -inf }
 0x204   :  { %812 = vmax.xlane.f32.xlu1 %v811_v9  ;;  %v486_v34 = vpop.xlane.xlu0 %485 }
 0x205   :  { %4787 = vmatmul.msk.bf16.vlgmr.msrb.gmra.mxu0 %vm426_vm0, %v6080_v4  ;;  %v506_v39 = vsub.f32 %v6084_v45, %v486_v34 }
 0x206   :  { %2846 = vmatpush.bf16.xpose.msra.mxu0 %v2828_v37 }
 0x207   :  { %v515_v32 = vmul.f32 1.442695, %v506_v39 }
 0x208   :  { %v6214_v53 = vpop.eup %5170 }
 0x209   :  { %v529_v44 = vsel %vm480_vm1, %v6214_v53, 0.0 }
 0x20a   :  { %v6189_v12 = vpop.f32.mrf.mxu0 }
 0x20b   :  { %v814_v19 = vsel %vm480_vm1, %v6189_v12, -inf }
 0x20c   :  { %815 = vmax.xlane.f32.xlu2 %v814_v19  ;;  %v489_v47 = vpop.xlane.xlu0 %488 }
 0x20d   :  { %v507_v52 = vsub.f32 %v6099_v57, %v489_v47 }
 0x20e   :  { %4795 = vmatmul.msk.bf16.vlgmr.msrb.gmra.mxu2 %vm426_vm0, %v6107_v10 }
 0x20f   :  { %v517_v33 = vmul.f32 1.442695, %v507_v52 }
 0x211   :  { %v6196_v55 = vpop.f32.mrf.mxu2  ;;  %5172 = vpow2.f32 %v517_v33 }
 0x212   :  { %v6198_v58 = vpop.f32.mrf.mxu0  ;;  %v1129_v4 = vsel %vm480_vm1, %v6196_v55, -inf  ;;  %5174 = vpow2.f32 %v515_v32 }
 0x213   :  { %1130 = vmax.xlane.f32.xlu1 %v1129_v4  ;;  %v817_v29 = vsel %vm480_vm1, %v6198_v58, -inf }
 0x214   :  { %v492_v0 = vpop.xlane.xlu2 %491 }
 0x215   :  { %4788 = vmatmul.msk.bf16.gmra.mxu0 %vm426_vm0, %v2166_v20  ;;  %v508_v22 = vsub.f32 %v6111_v27, %v492_v0 }
 0x217   :  { %v6228_v45 = vpop.eup %5172  ;;  %v519_v46 = vmul.f32 1.442695, %v508_v22 }
 0x218   :  { %v535_v61 = vsel %vm480_vm1, %v6228_v45, 0.0  ;;  %v6239_v1 = vpop.eup %5174 }
 0x219   :  { %v6203_v35 = vpop.f32.mrf.mxu2  ;;  %v532_v56 = vsel %vm480_vm1, %v6239_v1, 0.0  ;;  %5176 = vpow2.f32 %v519_v46 }
 0x21a   :  { %v6206_v10 = vpop.f32.mrf.mxu0  ;;  %v1132_v60 = vsel %vm480_vm1, %v6203_v35, -inf }
 0x21b   :  { %1133 = vmax.xlane.f32.xlu0 %v1132_v60  ;;  %818 = vmax.xlane.f32.xlu1 %v817_v29  ;;  %v820_v23 = vsel %vm480_vm1, %v6206_v10, -inf }
 0x21c   :  { %v495_v20 = vpop.xlane.xlu2 %494 }
 0x21e   :  { %4796 = vmatmul.msk.bf16.gmra.mxu2 %vm426_vm0, %v6109_v21 }
 0x21f   :  { %v6266_v34 = vpop.eup %5176 }
 0x221   :  { %v6217_v16 = vpop.f32.mrf.mxu2 }
 0x222   :  { %v6219_v57 = vpop.f32.mrf.mxu0  ;;  %v1135_v42 = vsel %vm480_vm1, %v6217_v16, -inf }
 0x223   :  { %1136 = vmax.xlane.f32.xlu2 %v1135_v42  ;;  %530 = vadd.xlane.f32.xlu0 %v529_v44  ;;  %v823_v21 = vsel %vm480_vm1, %v6219_v57, -inf }
 0x224   :  { %824 = vmax.xlane.f32.xlu1 %v823_v21  ;;  %v498_v6 = vpop.xlane.xlu0 %497 }
 0x225   :  { %4789 = vmatmul.msk.bf16.gmra.mxu0 %vm426_vm0, %v2168_v26  ;;  %v509_v26 = vsub.f32 %v6121_v31, %v495_v20  ;;  %v510_v13 = vsub.f32 %v6127_v25, %v498_v6  ;;  %v538_v25 = vsel %vm480_vm1, %v6266_v34, 0.0 }
 0x227   :  { %v523_v60 = vmul.f32 1.442695, %v510_v13 }
 0x229   :  { %v6230_v48 = vpop.f32.mrf.mxu2 }
 0x22a   :  { %v6232_v50 = vpop.f32.mrf.mxu0  ;;  %v1138_v37 = vsel %vm480_vm1, %v6230_v48, -inf }
 0x22b   :  { %821 = vmax.xlane.f32.xlu0 %v820_v23  ;;  %v826_v9 = vsel %vm480_vm1, %v6232_v50, -inf }
 0x22c   :  { %536 = vadd.xlane.f32.xlu1 %v535_v61  ;;  %v501_v19 = vpop.xlane.xlu0 %500 }
 0x22d   :  { %v511_v14 = vsub.f32 %v6138_v43, %v501_v19 }
 0x22e   :  { %4797 = vmatmul.msk.bf16.gmra.mxu2 %vm426_vm0, %v2486_v36 }
 0x22f   :  { %v525_v43 = vmul.f32 1.442695, %v511_v14 }
 0x231   :  { %v6241_v41 = vpop.f32.mrf.mxu2 }
 0x232   :  { %v6244_v3 = vpop.f32.mrf.mxu0  ;;  %v1141_v24 = vsel %vm480_vm1, %v6241_v41, -inf }
 0x233   :  { %533 = vadd.xlane.f32.xlu0 %v532_v56  ;;  %v829_v52 = vsel %vm480_vm1, %v6244_v3, -inf }
 0x234   :  { %1142 = vmax.xlane.f32.xlu1 %v1141_v24  ;;  %v504_v31 = vpop.xlane.xlu1 %503 }
 0x235   :  { %4790 = vmatmul.msk.bf16.gmra.mxu0 %vm426_vm0, %v2170_v18  ;;  %v521_v18 = vmul.f32 1.442695, %v509_v26  ;;  %v512_v15 = vsub.f32 %v6143_v49, %v504_v31 }
 0x237   :  { %5178 = vpow2.f32 %v521_v18  ;;  %v527_v49 = vmul.f32 1.442695, %v512_v15 }
 0x238   :  { %5180 = vpow2.f32 %v523_v60 }
 0x239   :  { %v6254_v27 = vpop.f32.mrf.mxu2  ;;  %5182 = vpow2.f32 %v525_v43 }
 0x23a   :  { %v6256_v28 = vpop.f32.mrf.mxu0  ;;  %v1144_v36 = vsel %vm480_vm1, %v6254_v27, -inf  ;;  %5184 = vpow2.f32 %v527_v49 }
 0x23b   :  { %1145 = vmax.xlane.f32.xlu2 %v1144_v36  ;;  %1139 = vmax.xlane.f32.xlu0 %v1138_v37  ;;  %v832_v44 = vsel %vm480_vm1, %v6256_v28, -inf }
 0x23c   :  { %827 = vmax.xlane.f32.xlu1 %v826_v9 }
 0x23d   :  { %v6283_v29 = vpop.eup %5178 }
 0x23e   :  { %4798 = vmatmul.msk.bf16.gmra.mxu2 %vm426_vm0, %v6185_v63  ;;  %v541_v42 = vsel %vm480_vm1, %v6283_v29, 0.0  ;;  %v6295_v21 = vpop.eup %5180 }
 0x23f   :  { %v6297_v32 = vpop.eup %5182  ;;  %v544_v22 = vsel %vm480_vm1, %v6295_v21, 0.0 }
 0x240   :  { %v6299_v23 = vpop.eup %5184  ;;  %v547_v56 = vsel %vm480_vm1, %v6297_v32, 0.0 }
 0x241   :  { %v6270_v4 = vpop.f32.mrf.mxu2  ;;  %v550_v24 = vsel %vm480_vm1, %v6299_v23, 0.0 }
 0x242   :  { %v6273_v47 = vpop.f32.mrf.mxu0  ;;  %v1147_v63 = vsel %vm480_vm1, %v6270_v4, -inf }
 0x243   :  { %830 = vmax.xlane.f32.xlu2 %v829_v52  ;;  %1148 = vmax.xlane.f32.xlu0 %v1147_v63  ;;  %v1447_v20 = vsel %vm480_vm1, %v6273_v47, -inf }
 0x244   :  { %539 = vadd.xlane.f32.xlu1 %v538_v25 }
 0x245   :  { %4803 = vmatmul.msk.bf16.vlgmr.msra.gmra.mxu0 %vm426_vm0, %v6158_v2 }
 0x249   :  { %v6285_v33 = vpop.f32.mrf.mxu2 }
 0x24a   :  { %v6287_v39 = vpop.f32.mrf.mxu0  ;;  %v1150_v2 = vsel %vm480_vm1, %v6285_v33, -inf }
 0x24b   :  { %542 = vadd.xlane.f32.xlu2 %v541_v42  ;;  %833 = vmax.xlane.f32.xlu0 %v832_v44  ;;  %v1450_v26 = vsel %vm480_vm1, %v6287_v39, -inf }
 0x24c   :  { %1151 = vmax.xlane.f32.xlu1 %v1150_v2 }
 0x251   :  { %v6301_v61 = vpop.f32.mrf.mxu2 }
 0x252   :  { %v6303_v0 = vpop.f32.mrf.mxu0 }
 0x253   :  { %545 = vadd.xlane.f32.xlu2 %v544_v22  ;;  %548 = vadd.xlane.f32.xlu0 %v547_v56  ;;  %v1453_v36 = vsel %vm480_vm1, %v6303_v0, -inf }
 0x254   :  { %551 = vadd.xlane.f32.xlu1 %v550_v24 }
 0x255   :  { %4804 = vmatmul.msk.bf16.gmra.mxu0 %vm426_vm0, %v6133_v40  ;;  %v1902_v40 = vsel %vm480_vm1, %v6301_v61, -inf }
 0x259   :  { %v6313_v6 = vpop.f32.mrf.mxu2 }
 0x25a   :  { %v6315_v46 = vpop.f32.mrf.mxu0  ;;  %v1905_v13 = vsel %vm480_vm1, %v6313_v6, -inf }
 0x25b   :  { %1448 = vmax.xlane.f32.xlu2 %v1447_v20  ;;  %1451 = vmax.xlane.f32.xlu0 %v1450_v26  ;;  %v1456_v63 = vsel %vm480_vm1, %v6315_v46, -inf }
 0x25c   :  { %1454 = vmax.xlane.f32.xlu1 %v1453_v36 }
 0x261   :  { %v6323_v37 = vpop.f32.mrf.mxu2 }
 0x262   :  { %v6325_v9 = vpop.f32.mrf.mxu0  ;;  %v1908_v18 = vsel %vm480_vm1, %v6323_v37, -inf }
 0x263   :  { %1903 = vmax.xlane.f32.xlu2 %v1902_v40  ;;  %v1459_v22 = vsel %vm480_vm1, %v6325_v9, -inf }
 0x264   :  { %1909 = vmax.xlane.f32.xlu1 %v1908_v18 }
 0x265   :  { %4805 = vmatmul.msk.bf16.gmra.mxu0 %vm426_vm0, %v6125_v38 }
 0x269   :  { %v6333_v19 = vpop.f32.mrf.mxu2 }
 0x26a   :  { %v6335_v31 = vpop.f32.mrf.mxu0  ;;  %v1911_v49 = vsel %vm480_vm1, %v6333_v19, -inf }
 0x26b   :  { %1906 = vmax.xlane.f32.xlu2 %v1905_v13  ;;  %v1462_v14 = vsel %vm480_vm1, %v6335_v31, -inf }
 0x26c   :  { %1463 = vmax.xlane.f32.xlu0 %v1462_v14 }
 0x271   :  { %v6341_v15 = vpop.f32.mrf.mxu2 }
 0x272   :  { %v6343_v52 = vpop.f32.mrf.mxu0  ;;  %v1914_v13 = vsel %vm480_vm1, %v6341_v15, -inf }
 0x273   :  { %1457 = vmax.xlane.f32.xlu2 %v1456_v63  ;;  %v1465_v56 = vsel %vm480_vm1, %v6343_v52, -inf }
 0x275   :  { %4806 = vmatmul.msk.bf16.gmra.mxu0 %vm426_vm0, %v6251_v7 }
 0x277   :  { %v813_v38 = vpop.xlane.xlu1 %812 }
 0x278   :  { %v835_v60 = vsub.f32 %v6181_v5, %v813_v38 }
 0x279   :  { %v6349_v25 = vpop.f32.mrf.mxu2 }
 0x27a   :  { %v6352_v43 = vpop.f32.mrf.mxu0  ;;  %v1917_v42 = vsel %vm480_vm1, %v6349_v25, -inf  ;;  %v843_v44 = vmul.f32 1.442695, %v835_v60 }
 0x27b   :  { %1912 = vmax.xlane.f32.xlu2 %v1911_v49  ;;  %1918 = vmax.xlane.f32.xlu1 %v1917_v42 }
 0x27c   :  { %5186 = vpow2.f32 %v843_v44 }
 0x27f   :  { %v816_v20 = vpop.xlane.xlu2 %815 }
 0x280   :  { %v836_v40 = vsub.f32 %v6189_v12, %v816_v20 }
 0x281   :  { %v6358_v2 = vpop.f32.mrf.mxu2 }
 0x282   :  { %9069 = vst [vmem:[#allocation12_spill] sm:$0xff] %v6358_v2  ;;  %v6360_v7 = vpop.f32.mrf.mxu0  ;;  %v1920_v5 = vsel %vm480_vm1, %v6358_v2, -inf  ;;  %v6368_v26 = vpop.eup %5186  ;;  %v845_v38 = vmul.f32 1.442695, %v836_v40 }
 0x283   :  { %9070 = vst [vmem:[#allocation13_spill] sm:$0xff] %v6360_v7  ;;  %1460 = vmax.xlane.f32.xlu2 %v1459_v22  ;;  %1921 = vmax.xlane.f32.xlu0 %v1920_v5  ;;  %v859_v14 = vsel %vm480_vm1, %v6368_v26, 0.0 }
 0x284   :  { %1466 = vmax.xlane.f32.xlu1 %v1465_v56  ;;  %9071 = vst [vmem:[#allocation14_spill] sm:$0xff] %v6368_v26  ;;  %5188 = vpow2.f32 %v845_v38  ;;  %v1468_v56 = vsel %vm480_vm1, %v6352_v43, -inf }
 0x286   :  { %v1131_v24 = vpop.xlane.xlu1 %1130 }
 0x289   :  { %v6370_v36 = vpop.f32.mrf.mxu2 }
 0x28a   :  { %v6373_v18 = vpop.f32.mrf.mxu0 }
 0x28b   :  { %1915 = vmax.xlane.f32.xlu2 %v1914_v13  ;;  %v2235_v63 = vsel %vm480_vm1, %v6373_v18, -inf }
 0x28c   :  { %860 = vadd.xlane.f32.xlu1 %v859_v14  ;;  %2236 = vmax.xlane.f32.xlu0 %v2235_v63  ;;  %v1153_v63 = vsub.f32 %v6196_v55, %v1131_v24 }
 0x28e   :  { %v1134_v60 = vpop.xlane.xlu0 %1133  ;;  %v819_v42 = vpop.xlane.xlu1 %818 }
 0x28f   :  { %v1154_v49 = vsub.f32 %v6203_v35, %v1134_v60  ;;  %v837_v22 = vsub.f32 %v6198_v58, %v819_v42  ;;  %v6396_v58 = vpop.eup %5188 }
 0x290   :  { %9074 = vst [vmem:[#allocation17_spill] sm:$0xff] %v6396_v58 }
 0x291   :  { %v1163_v12 = vmul.f32 1.442695, %v1154_v49  ;;  %v6382_v44 = vpop.f32.mrf.mxu2  ;;  %v847_v40 = vmul.f32 1.442695, %v837_v22  ;;  %v1923_v49 = vsel %vm480_vm1, %v6370_v36, -inf  ;;  %v862_v22 = vsel %vm480_vm1, %v6396_v58, 0.0 }
 0x292   :  { %9072 = vst [vmem:[#allocation15_spill] sm:$0xff] %v6382_v44  ;;  %v6385_v5 = vpop.f32.mrf.mxu0  ;;  %v2550_v20 = vsel %vm480_vm1, %v6382_v44, -inf }
 0x293   :  { %9073 = vst [vmem:[#allocation16_spill] sm:$0xff] %v6385_v5  ;;  %5190 = vpow2.f32 %v1163_v12  ;;  %1469 = vmax.xlane.f32.xlu2 %v1468_v56  ;;  %v1161_v56 = vmul.f32 1.442695, %v1153_v63 }
 0x294   :  { %2551 = vmax.xlane.f32.xlu1 %v2550_v20 }
 0x296   :  { %v1137_v35 = vpop.xlane.xlu2 %1136  ;;  %v6391_v13 = vpop.xlane.xlu0 %530 }
 0x297   :  { %5192 = vrcp.f32 %v6391_v13  ;;  %v6394_v14 = vpop.xlane.xlu1 %824  ;;  %v1155_v60 = vsub.f32 %v6217_v16, %v1137_v35  ;;  %vm558_vm3 = vweird.f32 %v6391_v13 }
 0x298   :  { %5194 = vpow2.f32 %v847_v40 }
 0x299   :  { %v6399_v38 = vpop.eup %5190  ;;  %v1165_v24 = vmul.f32 1.442695, %v1155_v60  ;;  %v6412_v20 = vpop.f32.mrf.mxu2  ;;  %5196 = vpow2.f32 %v1161_v56 }
 0x29a   :  { %9075 = vst [vmem:[#allocation18_spill] sm:$0xff] %v6399_v38  ;;  %v1180_v42 = vsel %vm480_vm1, %v6399_v38, 0.0  ;;  %v6406_v12 = vpop.f32.mrf.mxu0  ;;  %v2553_v63 = vsel %vm480_vm1, %v6412_v20, -inf }
 0x29b   :  { %1924 = vmax.xlane.f32.xlu2 %v1923_v49  ;;  %1181 = vadd.xlane.f32.xlu0 %v1180_v42  ;;  %9076 = vst [vmem:[#allocation19_spill] sm:$0xff] %v6412_v20  ;;  %5198 = vpow2.f32 %v1165_v24  ;;  %v2232_v42 = vsel %vm480_vm1, %v6360_v7, -inf }
 0x29c   :  { %863 = vadd.xlane.f32.xlu1 %v862_v22 }
 0x29d   :  { %v6410_v55 = vpop.eup %5192 }
 0x29e   :  { %v822_v16 = vpop.xlane.xlu0 %821  ;;  %v6416_v35 = vpop.eup %5194  ;;  %v554_v49 = vmul.f32 %v6410_v55, %v6391_v13  ;;  %vm559_vm2 = vweird.f32 %v6410_v55 }
 0x29f   :  { %v6414_v40 = vpop.xlane.xlu1 %536  ;;  %9077 = vst [vmem:[#allocation20_spill] sm:$0xff] %v6416_v35  ;;  %v865_v60 = vsel %vm480_vm1, %v6416_v35, 0.0  ;;  %v6428_v56 = vpop.eup %5196  ;;  %v838_v20 = vsub.f32 %v6206_v10, %v822_v16  ;;  %vm6449_vm4 = vmor %vm558_vm3, %vm559_vm2 }
 0x2a0   :  { %v555_v22 = vsub.f32 1.0, %v554_v49  ;;  %9078 = vst [vmem:[#allocation21_spill] sm:$0xff] %v6428_v56  ;;  %v1177_v49 = vsel %vm480_vm1, %v6428_v56, 0.0  ;;  %vm588_vm11 = vweird.f32 %v6414_v40 }
 0x2a1   :  { %v6430_v38 = vpop.eup %5198  ;;  %v849_v35 = vmul.f32 1.442695, %v838_v20  ;;  %v6444_v16 = vpop.f32.mrf.mxu2 }
 0x2a2   :  { %v6426_v59 = vpop.f32.mrf.mxu0  ;;  %9079 = vst [vmem:[#allocation22_spill] sm:$0xff] %v6430_v38  ;;  %v556_v51 = vmul.f32 %v6410_v55, %v555_v22  ;;  %v562_v22 = vand.u32 2147483647, %v6391_v13 }
 0x2a3   :  { %2233 = vmax.xlane.f32.xlu2 %v2232_v42  ;;  %2554 = vmax.xlane.f32.xlu0 %v2553_v63  ;;  %v1183_v63 = vsel %vm480_vm1, %v6430_v38, 0.0 }
 0x2a4   :  { %866 = vadd.xlane.f32.xlu1 %v865_v60  ;;  %v557_v60 = vadd.f32 %v6410_v55, %v556_v51  ;;  %v839_v51 = vsub.f32 %v6219_v57, %v6394_v14  ;;  %vm563_vm5 = vcmp.eq.f32.partialorder %v562_v22, 8.507059e+37 }
 0x2a6   :  { %v534_v11 = vpop.xlane.xlu0 %533 }
 0x2a7   :  { %5200 = vrcp.f32 %v534_v11  ;;  %v1143_v24 = vpop.xlane.xlu1 %1142  ;;  %v579_v2 = vand.u32 2147483648, %v534_v11  ;;  %vm573_vm7 = vweird.f32 %v534_v11 }
 0x2a8   :  { %v1157_v42 = vsub.f32 %v6241_v41, %v1143_v24  ;;  %5202 = vrcp.f32 %v6414_v40  ;;  %v564_v41 = vand.u32 2147483648, %v6391_v13  ;;  %v561_v13 = vsel %vm6449_vm4, %v6410_v55, %v557_v60 }
 0x2a9   :  { %5204 = vpow2.f32 %v849_v35 }
 0x2aa   :  { %v1169_v24 = vmul.f32 1.442695, %v1157_v42  ;;  %v6455_v20 = vpop.f32.mrf.mxu0  ;;  %v2238_v42 = vsel %vm480_vm1, %v6385_v5, -inf  ;;  %v565_v44 = vor.u32 1.1754944e-38, %v564_v41 }
 0x2ab   :  { %1184 = vadd.xlane.f32.xlu0 %v1183_v63  ;;  %1178 = vadd.xlane.f32.xlu2 %v1177_v49 }
 0x2ac   :  { %5206 = vpow2.f32 %v1169_v24  ;;  %v566_v5 = vsel %vm563_vm5, %v565_v44, %v561_v13 }
 0x2ad   :  { %v5201_v10 = vpop.eup %5200 }
 0x2ae   :  { %v569_v38 = vmul.f32 %v5201_v10, %v534_v11  ;;  %v6447_v56 = vpop.xlane.xlu2 %1145  ;;  %v1140_v63 = vpop.xlane.xlu0 %1139  ;;  %vm574_vm6 = vweird.f32 %v5201_v10 }
 0x2af   :  { %v1156_v62 = vsub.f32 %v6230_v48, %v1140_v63  ;;  %v828_v58 = vpop.xlane.xlu1 %827  ;;  %v6463_v7 = vpop.eup %5202  ;;  %v577_v48 = vand.u32 2147483647, %v534_v11  ;;  %v2556_v63 = vsel %vm480_vm1, %v6444_v16, -inf  ;;  %vm575_vm8 = vmor %vm573_vm7, %vm574_vm6 }
 0x2b0   :  { %v570_v26 = vsub.f32 1.0, %v569_v38  ;;  %v584_v55 = vmul.f32 %v6463_v7, %v6414_v40  ;;  %v580_v38 = vor.u32 1.1754944e-38, %v579_v2  ;;  %v6469_v60 = vpop.eup %5204  ;;  %v840_v11 = vsub.f32 %v6232_v50, %v828_v58 }
 0x2b1   :  { %v1167_v57 = vmul.f32 1.442695, %v1156_v62  ;;  %v851_v62 = vmul.f32 1.442695, %v839_v51  ;;  %vm578_vm9 = vcmp.eq.f32.partialorder %v577_v48, 8.507059e+37  ;;  %vm589_vm10 = vweird.f32 %v6463_v7 }
 0x2b2   :  { %v571_v14 = vmul.f32 %v5201_v10, %v570_v26  ;;  %v6471_v24 = vpop.eup %5206  ;;  %v585_v13 = vsub.f32 1.0, %v584_v55  ;;  %v853_v58 = vmul.f32 1.442695, %v840_v11  ;;  %v2247_v11 = vsel %vm480_vm1, %v6455_v20, -inf  ;;  %vm6521_vm12 = vmor %vm588_vm11, %vm589_vm10 }
 0x2b3   :  { %2557 = vmax.xlane.f32.xlu0 %v2556_v63  ;;  %2239 = vmax.xlane.f32.xlu2 %v2238_v42  ;;  %5208 = vpow2.f32 %v1167_v57  ;;  %v567_v42 = vmul.f32 %v6214_v53, %v566_v5  ;;  %v6479_v57 = vpop.f32.mrf.mxu0  ;;  %v1189_v53 = vsel %vm480_vm1, %v6471_v24, 0.0  ;;  %v1158_v63 = vsub.f32 %v6254_v27, %v6447_v56 }
 0x2b4   :  { %v572_v35 = vadd.f32 %v5201_v10, %v571_v14  ;;  %v868_v14 = vsel %vm480_vm1, %v6469_v60, 0.0  ;;  %v2241_v56 = vsel %vm480_vm1, %v6406_v12, -inf }
 0x2b6   :  { %v576_v26 = vsel %vm575_vm8, %v5201_v10, %v572_v35  ;;  %v831_v22 = vpop.xlane.xlu2 %830  ;;  %v1149_v41 = vpop.xlane.xlu0 %1148 }
 0x2b7   :  { %v581_v44 = vsel %vm578_vm9, %v580_v38, %v576_v26  ;;  %v6473_v49 = vpop.xlane.xlu1 %539  ;;  %v1159_v10 = vsub.f32 %v6270_v4, %v1149_v41 }
 0x2b8   :  { %5210 = vrcp.f32 %v6473_v49  ;;  %v582_v2 = vmul.f32 %v6239_v1, %v581_v44  ;;  %v586_v1 = vmul.f32 %v6463_v7, %v585_v13  ;;  %v841_v44 = vsub.f32 %v6244_v3, %v831_v22 }
 0x2b9   :  { %v6482_v51 = vpop.eup %5208  ;;  %5212 = vpow2.f32 %v851_v62  ;;  %v1173_v4 = vmul.f32 1.442695, %v1159_v10  ;;  %v1171_v13 = vmul.f32 1.442695, %v1158_v63  ;;  %vm603_vm14 = vweird.f32 %v6473_v49 }
 0x2ba   :  { %v673_v5 = vpack.c.bf16 %v582_v2, %v567_v42  ;;  %v1186_v50 = vsel %vm480_vm1, %v6482_v51, 0.0  ;;  %v587_v41 = vadd.f32 %v6463_v7, %v586_v1  ;;  %v594_v42 = vand.u32 2147483648, %v6414_v40 }
 0x2bb   :  { %869 = vadd.xlane.f32.xlu2 %v868_v14  ;;  %1190 = vadd.xlane.f32.xlu0 %v1189_v53  ;;  %v6515_v10 = vpop.f32.mrf.mxu0  ;;  %v592_v14 = vand.u32 2147483647, %v6414_v40  ;;  %v609_v53 = vand.u32 2147483648, %v6473_v49  ;;  %v855_v1 = vmul.f32 1.442695, %v841_v44  ;;  %v2244_v22 = vsel %vm480_vm1, %v6426_v59, -inf }
 0x2bc   :  { %1187 = vadd.xlane.f32.xlu1 %v1186_v50  ;;  %4751 = vmatmul.msk.bf16.vlgmr.msra.gmra.mxu3 %vm480_vm1, %v673_v5  ;;  %v591_v5 = vsel %vm6521_vm12, %v6463_v7, %v587_v41 }
 0x2bd   :  { %2138 = vmatpush.bf16.msra.mxu3 %v5942_v30  ;;  %vm593_vm15 = vcmp.eq.f32.partialorder %v592_v14, 8.507059e+37  ;;  %v610_v44 = vor.u32 1.1754944e-38, %v609_v53 }
 0x2be   :  { %v5211_v48 = vpop.eup %5210  ;;  %v6495_v55 = vpop.xlane.xlu2 %542 }
 0x2bf   :  { %v599_v35 = vmul.f32 %v5211_v48, %v6473_v49  ;;  %5214 = vrcp.f32 %v6495_v55  ;;  %v6499_v38 = vpop.xlane.xlu0 %833  ;;  %v6501_v62 = vpop.xlane.xlu1 %1151  ;;  %vm604_vm13 = vweird.f32 %v5211_v48  ;;  %vm618_vm6 = vweird.f32 %v6495_v55 }
 0x2c0   :  { %v6503_v26 = vpop.eup %5212  ;;  %5216 = vpow2.f32 %v853_v58  ;;  %vm605_vm2 = vmor %vm603_vm14, %vm604_vm13 }
 0x2c1   :  { %5218 = vpow2.f32 %v1173_v4  ;;  %v600_v27 = vsub.f32 1.0, %v599_v35  ;;  %2139 = vmatpush.bf16.msra.mxu3 %v5899_v54  ;;  %v871_v3 = vsel %vm480_vm1, %v6503_v26, 0.0  ;;  %v607_v4 = vand.u32 2147483647, %v6473_v49 }
 0x2c2   :  { %5220 = vpow2.f32 %v1171_v13 }
 0x2c3   :  { %v601_v2 = vmul.f32 %v5211_v48, %v600_v27  ;;  %2242 = vmax.xlane.f32.xlu2 %v2241_v56  ;;  %2248 = vmax.xlane.f32.xlu0 %v2247_v11  ;;  %v595_v27 = vor.u32 1.1754944e-38, %v594_v42  ;;  %vm608_vm3 = vcmp.eq.f32.partialorder %v607_v4, 8.507059e+37 }
 0x2c4   :  { %872 = vadd.xlane.f32.xlu1 %v871_v3 }
 0x2c5   :  { %v6530_v50 = vpop.eup %5214  ;;  %2140 = vmatpush.bf16.msra.mxu3 %v5866_v8  ;;  %v602_v58 = vadd.f32 %v5211_v48, %v601_v2  ;;  %v596_v41 = vsel %vm593_vm15, %v595_v27, %v591_v5 }
 0x2c6   :  { %v6534_v63 = vpop.eup %5216  ;;  %v614_v40 = vmul.f32 %v6530_v50, %v6495_v55  ;;  %v6538_v35 = vpop.xlane.xlu2 %545  ;;  %v597_v14 = vmul.f32 %v6228_v45, %v596_v41  ;;  %v842_v41 = vsub.f32 %v6256_v28, %v6499_v38  ;;  %vm619_vm4 = vweird.f32 %v6530_v50 }
 0x2c7   :  { %v6540_v56 = vpop.eup %5218  ;;  %5222 = vrcp.f32 %v6538_v35  ;;  %v6544_v7 = vpop.xlane.xlu1 %551  ;;  %v606_v2 = vsel %vm605_vm2, %v5211_v48, %v602_v58  ;;  %v874_v42 = vsel %vm480_vm1, %v6534_v63, 0.0  ;;  %v637_v28 = vand.u32 2147483647, %v6538_v35  ;;  %vm6595_vm8 = vmor %vm618_vm6, %vm619_vm4 }
 0x2c8   :  { %9084 = vst [vmem:[#allocation23_spill] sm:$0xff] %v6540_v56  ;;  %5224 = vpow2.f32 %v855_v1  ;;  %v615_v13 = vsub.f32 1.0, %v614_v40  ;;  %v6546_v11 = vpop.xlane.xlu0 %548  ;;  %v1195_v49 = vsel %vm480_vm1, %v6540_v56, 0.0  ;;  %v611_v3 = vsel %vm608_vm3, %v610_v44, %v606_v2  ;;  %v6558_v48 = vpop.eup %5220 }
 0x2c9   :  { %2141 = vmatpush.bf16.msra.mxu3 %v5814_v17  ;;  %5226 = vrcp.f32 %v6544_v7  ;;  %v612_v53 = vmul.f32 %v6266_v34, %v611_v3  ;;  %v6562_v58 = vpop.f32.mrf.mxu0  ;;  %v624_v34 = vand.u32 2147483648, %v6495_v55  ;;  %vm633_vm7 = vweird.f32 %v6538_v35 }
 0x2ca   :  { %5228 = vrcp.f32 %v6546_v11  ;;  %v616_v1 = vmul.f32 %v6530_v50, %v615_v13  ;;  %v1192_v13 = vsel %vm480_vm1, %v6558_v48, 0.0  ;;  %vm638_vm10 = vcmp.eq.f32.partialorder %v637_v28, 8.507059e+37 }
 0x2cb   :  { %1196 = vadd.xlane.f32.xlu0 %v1195_v49  ;;  %875 = vadd.xlane.f32.xlu2 %v874_v42  ;;  %v674_v4 = vpack.c.bf16 %v612_v53, %v597_v14  ;;  %v639_v49 = vand.u32 2147483648, %v6538_v35  ;;  %v2868_v42 = vsel %vm480_vm1, %v6562_v58, -inf  ;;  %vm648_vm12 = vweird.f32 %v6546_v11 }
 0x2cc   :  { %2245 = vmax.xlane.f32.xlu1 %v2244_v22  ;;  %v617_v3 = vadd.f32 %v6530_v50, %v616_v1  ;;  %v622_v1 = vand.u32 2147483647, %v6495_v55  ;;  %vm663_vm14 = vweird.f32 %v6544_v7 }
 0x2cd   :  { %v5223_v5 = vpop.eup %5222  ;;  %4752 = vmatmul.msk.bf16.gmra.mxu3 %vm480_vm1, %v674_v4  ;;  %v640_v55 = vor.u32 1.1754944e-38, %v639_v49 }
 0x2ce   :  { %v629_v40 = vmul.f32 %v5223_v5, %v6538_v35  ;;  %v1449_v27 = vpop.xlane.xlu2 %1448  ;;  %v6565_v44 = vpop.eup %5224  ;;  %vm634_vm5 = vweird.f32 %v5223_v5  ;;  %vm623_vm11 = vcmp.eq.f32.partialorder %v622_v1, 8.507059e+37 }
 0x2cf   :  { %v6568_v45 = vpop.eup %5226  ;;  %v1471_v53 = vsub.f32 %v6273_v47, %v1449_v27  ;;  %v877_v4 = vsel %vm480_vm1, %v6565_v44, 0.0  ;;  %vm635_vm9 = vmor %vm633_vm7, %vm634_vm5  ;;  %v2250_v47 = vsel %vm480_vm1, %v6479_v57, -inf }
 0x2d0   :  { %v630_v2 = vsub.f32 1.0, %v629_v40  ;;  %v6580_v22 = vpop.eup %5228  ;;  %v659_v38 = vmul.f32 %v6568_v45, %v6544_v7  ;;  %v1160_v40 = vsub.f32 %v6285_v33, %v6501_v62  ;;  %v621_v33 = vsel %vm6595_vm8, %v6530_v50, %v617_v3 }
 0x2d1   :  { %v1479_v62 = vmul.f32 1.442695, %v1471_v53  ;;  %vm664_vm13 = vweird.f32 %v6568_v45  ;;  %vm649_vm15 = vweird.f32 %v6580_v22 }
 0x2d2   :  { %v631_v14 = vmul.f32 %v5223_v5, %v630_v2  ;;  %v857_v2 = vmul.f32 1.442695, %v842_v41  ;;  %v660_v54 = vsub.f32 1.0, %v659_v38  ;;  %v1175_v3 = vmul.f32 1.442695, %v1160_v40  ;;  %vm6641_vm2 = vmor %vm663_vm14, %vm664_vm13 }
 0x2d3   :  { %2869 = vmax.xlane.f32.xlu0 %v2868_v42  ;;  %1193 = vadd.xlane.f32.xlu2 %v1192_v13  ;;  %v644_v42 = vmul.f32 %v6580_v22, %v6546_v11  ;;  %v6601_v13 = vpop.xlane.xlu1 %1454  ;;  %vm650_vm3 = vmor %vm648_vm12, %vm649_vm15 }
 0x2d4   :  { %878 = vadd.xlane.f32.xlu1 %v877_v4  ;;  %v632_v27 = vadd.f32 %v5223_v5, %v631_v14  ;;  %v625_v4 = vor.u32 1.1754944e-38, %v624_v34  ;;  %v6607_v14 = vpop.f32.mrf.mxu0  ;;  %5230 = vpow2.f32 %v857_v2  ;;  %v661_v34 = vmul.f32 %v6568_v45, %v660_v54 }
 0x2d5   :  { %v645_v8 = vsub.f32 1.0, %v644_v42  ;;  %5232 = vpow2.f32 %v1479_v62  ;;  %v667_v42 = vand.u32 2147483647, %v6544_v7  ;;  %v654_v62 = vand.u32 2147483648, %v6546_v11 }
 0x2d6   :  { %v1904_v35 = vpop.xlane.xlu2 %1903  ;;  %v636_v17 = vsel %vm635_vm9, %v5223_v5, %v632_v27  ;;  %v626_v56 = vsel %vm623_vm11, %v625_v4, %v621_v33  ;;  %v2871_v5 = vsel %vm480_vm1, %v6607_v14, -inf  ;;  %5234 = vpow2.f32 %v1175_v3 }
 0x2d7   :  { %v641_v41 = vsel %vm638_vm10, %v640_v55, %v636_v17  ;;  %v1926_v49 = vsub.f32 %v6301_v61, %v1904_v35  ;;  %v2253_v17 = vsel %vm480_vm1, %v6515_v10, -inf  ;;  %v627_v53 = vmul.f32 %v6283_v29, %v626_v56 }
 0x2d8   :  { %v642_v50 = vmul.f32 %v6295_v21, %v641_v41  ;;  %v646_v28 = vmul.f32 %v6580_v22, %v645_v8  ;;  %v1452_v21 = vpop.xlane.xlu0 %1451  ;;  %v662_v2 = vadd.f32 %v6568_v45, %v661_v34  ;;  %v669_v8 = vand.u32 2147483648, %v6544_v7 }
 0x2d9   :  { %v1934_v1 = vmul.f32 1.442695, %v1926_v49  ;;  %v1472_v56 = vsub.f32 %v6287_v39, %v1452_v21  ;;  %v1473_v33 = vsub.f32 %v6303_v0, %v6601_v13  ;;  %v652_v7 = vand.u32 2147483647, %v6546_v11 }
 0x2da   :  { %v675_v38 = vpack.c.bf16 %v642_v50, %v627_v53  ;;  %v6620_v40 = vpop.eup %5230  ;;  %v647_v55 = vadd.f32 %v6580_v22, %v646_v28  ;;  %v666_v13 = vsel %vm6641_vm2, %v6568_v45, %v662_v2  ;;  %vm668_vm4 = vcmp.eq.f32.partialorder %v667_v42, 8.507059e+37 }
 0x2db   :  { %2872 = vmax.xlane.f32.xlu0 %v2871_v5  ;;  %2251 = vmax.xlane.f32.xlu2 %v2250_v47  ;;  %v1910_v54 = vpop.xlane.xlu1 %1909  ;;  %v6627_v29 = vpop.eup %5232  ;;  %5236 = vpow2.f32 %v1934_v1  ;;  %v880_v4 = vsel %vm480_vm1, %v6620_v40, 0.0  ;;  %v670_v47 = vor.u32 1.1754944e-38, %v669_v8  ;;  %v1483_v50 = vmul.f32 1.442695, %v1473_v33 }
 0x2dc   :  { %2254 = vmax.xlane.f32.xlu1 %v2253_v17  ;;  %v1928_v35 = vsub.f32 %v6323_v37, %v1910_v54  ;;  %v1495_v0 = vsel %vm480_vm1, %v6627_v29, 0.0  ;;  %v6651_v41 = vpop.eup %5234  ;;  %v1481_v37 = vmul.f32 1.442695, %v1472_v56  ;;  %v651_v3 = vsel %vm650_vm3, %v6580_v22, %v647_v55 }
 0x2dd   :  { %4753 = vmatmul.msk.bf16.gmra.mxu3 %vm480_vm1, %v675_v38  ;;  %v655_v34 = vor.u32 1.1754944e-38, %v654_v62  ;;  %v671_v17 = vsel %vm668_vm4, %v670_v47, %v666_v13  ;;  %vm653_vm5 = vcmp.eq.f32.partialorder %v652_v7, 8.507059e+37 }
 0x2de   :  { %v1907_v61 = vpop.xlane.xlu2 %1906  ;;  %v1938_v49 = vmul.f32 1.442695, %v1928_v35  ;;  %v672_v38 = vmul.f32 %v6299_v23, %v671_v17  ;;  %v6700_v17 = vpop.f32.mrf.mxu0 }
 0x2df   :  { %v1927_v27 = vsub.f32 %v6313_v6, %v1907_v61  ;;  %v656_v45 = vsel %vm653_vm5, %v655_v34, %v651_v3  ;;  %v1198_v61 = vsel %vm480_vm1, %v6651_v41, 0.0  ;;  %v6694_v3 = vpop.f32.mrf.mxu2  ;;  %9090 = vst [vmem:[#allocation25_spill] sm:$0xff] %v6700_v17 }
 0x2e0   :  { %v1464_v53 = vpop.xlane.xlu0 %1463 }
 0x2e1   :  { %v1936_v6 = vmul.f32 1.442695, %v1927_v27  ;;  %v6656_v28 = vpop.eup %5236  ;;  %v1476_v22 = vsub.f32 %v6335_v31, %v1464_v53  ;;  %v657_v27 = vmul.f32 %v6297_v32, %v656_v45 }
 0x2e2   :  { %v1950_v54 = vsel %vm480_vm1, %v6656_v28, 0.0 }
 0x2e3   :  { %5238 = vpow2.f32 %v1936_v6  ;;  %881 = vadd.xlane.f32.xlu2 %v880_v4  ;;  %v676_v2 = vpack.c.bf16 %v672_v38, %v657_v27  ;;  %v1489_v8 = vmul.f32 1.442695, %v1476_v22 }
 0x2e4   :  { %1496 = vadd.xlane.f32.xlu1 %v1495_v0  ;;  %5240 = vpow2.f32 %v1481_v37 }
 0x2e5   :  { %5242 = vpow2.f32 %v1483_v50 }
 0x2e6   :  { %v1458_v5 = vpop.xlane.xlu2 %1457  ;;  %5244 = vpow2.f32 %v1938_v49 }
 0x2e7   :  { %v1474_v11 = vsub.f32 %v6315_v46, %v1458_v5 }
 0x2e9   :  { %v6658_v21 = vpop.eup %5238  ;;  %v1485_v46 = vmul.f32 1.442695, %v1474_v11 }
 0x2ea   :  { %v1953_v1 = vsel %vm480_vm1, %v6658_v21, 0.0  ;;  %v6670_v23 = vpop.eup %5240 }
 0x2eb   :  { %1954 = vadd.xlane.f32.xlu0 %v1953_v1  ;;  %1199 = vadd.xlane.f32.xlu2 %v1198_v61  ;;  %v6672_v42 = vpop.eup %5242  ;;  %5246 = vpow2.f32 %v1485_v46  ;;  %v1498_v32 = vsel %vm480_vm1, %v6670_v23, 0.0 }
 0x2ec   :  { %1951 = vadd.xlane.f32.xlu1 %v1950_v54  ;;  %v6675_v33 = vpop.eup %5244  ;;  %5248 = vpow2.f32 %v1489_v8  ;;  %v1501_v55 = vsel %vm480_vm1, %v6672_v42, 0.0  ;;  %v6720_v8 = vpop.f32.mrf.mxu2 }
 0x2ed   :  { %4754 = vmatmul.msk.bf16.gmra.mxu3 %vm480_vm1, %v676_v2  ;;  %v1956_v62 = vsel %vm480_vm1, %v6675_v33, 0.0 }
 0x2ee   :  { %v1913_v31 = vpop.xlane.xlu2 %1912  ;;  %v1919_v56 = vpop.xlane.xlu1 %1918 }
 0x2ef   :  { %v1929_v6 = vsub.f32 %v6333_v19, %v1913_v31  ;;  %v1931_v45 = vsub.f32 %v6349_v25, %v1919_v56  ;;  %v6722_v31 = vpop.f32.mrf.mxu0 }
 0x2f1   :  { %v1940_v35 = vmul.f32 1.442695, %v1929_v6  ;;  %v6684_v39 = vpop.eup %5246  ;;  %v1944_v61 = vmul.f32 1.442695, %v1931_v45  ;;  %v2562_v45 = vsel %vm480_vm1, %v6720_v8, -inf }
 0x2f2   :  { %v6687_v7 = vpop.eup %5248  ;;  %v1504_v47 = vsel %vm480_vm1, %v6684_v39, 0.0 }
 0x2f3   :  { %1499 = vadd.xlane.f32.xlu2 %v1498_v32  ;;  %1502 = vadd.xlane.f32.xlu0 %v1501_v55  ;;  %9089 = vst [vmem:[#allocation24_spill] sm:$0xff] %v6687_v7  ;;  %5250 = vpow2.f32 %v1940_v35  ;;  %v1510_v50 = vsel %vm480_vm1, %v6687_v7, 0.0 }
 0x2f4   :  { %1957 = vadd.xlane.f32.xlu1 %v1956_v62 }
 0x2f6   :  { %v1461_v4 = vpop.xlane.xlu2 %1460 }
 0x2f7   :  { %v1475_v0 = vsub.f32 %v6325_v9, %v1461_v4  ;;  %v1467_v19 = vpop.xlane.xlu1 %1466  ;;  %v6696_v9 = vpop.xlane.xlu0 %1921 }
 0x2f8   :  { %v1477_v37 = vsub.f32 %v6343_v52, %v1467_v19 }
 0x2f9   :  { %v1487_v13 = vmul.f32 1.442695, %v1475_v0  ;;  %v6698_v34 = vpop.eup %5250 }
 0x2fa   :  { %v1491_v49 = vmul.f32 1.442695, %v1477_v37  ;;  %v1959_v1 = vsel %vm480_vm1, %v6698_v34, 0.0 }
 0x2fb   :  { %5252 = vpow2.f32 %v1487_v13  ;;  %1505 = vadd.xlane.f32.xlu0 %v1504_v47 }
 0x2fc   :  { %1511 = vadd.xlane.f32.xlu1 %v1510_v50  ;;  %5254 = vpow2.f32 %v1491_v49 }
 0x2fe   :  { %v1916_v5 = vpop.xlane.xlu2 %1915 }
 0x2ff   :  { %v1930_v52 = vsub.f32 %v6341_v15, %v1916_v5  ;;  %v6703_v53 = vpop.xlane.xlu1 %860  ;;  %v2237_v15 = vpop.xlane.xlu0 %2236 }
 0x300   :  { %v2257_v49 = vsub.f32 %v6373_v18, %v2237_v15  ;;  %vm888_vm7 = vweird.f32 %v6703_v53 }
 0x301   :  { %v6706_v11 = vpop.eup %5252  ;;  %v1942_v38 = vmul.f32 1.442695, %v1930_v52  ;;  %v6748_v52 = vpop.f32.mrf.mxu2 }
 0x302   :  { %v1507_v22 = vsel %vm480_vm1, %v6706_v11, 0.0  ;;  %v6713_v27 = vpop.eup %5254  ;;  %9095 = vst [vmem:[#allocation30_spill] sm:$0xff] %v6748_v52  ;;  %v2266_v18 = vmul.f32 1.442695, %v2257_v49  ;;  %v892_v49 = vand.u32 2147483647, %v6703_v53 }
 0x303   :  { %5256 = vpow2.f32 %v1942_v38  ;;  %1508 = vadd.xlane.f32.xlu2 %v1507_v22  ;;  %1960 = vadd.xlane.f32.xlu0 %v1959_v1  ;;  %9091 = vst [vmem:[#allocation26_spill] sm:$0xff] %v6713_v27  ;;  %v1513_v32 = vsel %vm480_vm1, %v6713_v27, 0.0 }
 0x304   :  { %5258 = vrcp.f32 %v6703_v53  ;;  %vm893_vm10 = vcmp.eq.f32.partialorder %v892_v49, 8.507059e+37 }
 0x305   :  { %5260 = vpow2.f32 %v1944_v61 }
 0x306   :  { %v1470_v54 = vpop.xlane.xlu2 %1469 }
 0x307   :  { %v1478_v25 = vsub.f32 %v6352_v43, %v1470_v54  ;;  %v6716_v46 = vpop.xlane.xlu1 %2551 }
 0x309   :  { %v6718_v2 = vpop.eup %5256  ;;  %v1493_v56 = vmul.f32 1.442695, %v1478_v25 }
 0x30a   :  { %9092 = vst [vmem:[#allocation27_spill] sm:$0xff] %v6718_v2  ;;  %v1962_v6 = vsel %vm480_vm1, %v6718_v2, 0.0  ;;  %v6728_v55 = vpop.eup %5258  ;;  %v9104_v2 = vld [vmem:[#allocation13_spill] sm:$0xff] }
 0x30b   :  { %5262 = vpow2.f32 %v1493_v56  ;;  %1963 = vadd.xlane.f32.xlu0 %v1962_v6  ;;  %1514 = vadd.xlane.f32.xlu2 %v1513_v32  ;;  %v6730_v43 = vpop.eup %5260  ;;  %v884_v62 = vmul.f32 %v6728_v55, %v6703_v53  ;;  %v9098_v56 = vld [vmem:[#allocation12_spill] sm:$0xff]  ;;  %vm889_vm6 = vweird.f32 %v6728_v55 }
 0x30c   :  { %9093 = vst [vmem:[#allocation28_spill] sm:$0xff] %v6730_v43  ;;  %v1965_v47 = vsel %vm480_vm1, %v6730_v43, 0.0  ;;  %v1932_v6 = vsub.f32 %v9098_v56, %v6696_v9  ;;  %vm6785_vm8 = vmor %vm888_vm7, %vm889_vm6 }
 0x30d   :  { %v885_v50 = vsub.f32 1.0, %v884_v62  ;;  %v2559_v62 = vsel %vm480_vm1, %v6694_v3, -inf }
 0x30e   :  { %v1925_v35 = vpop.xlane.xlu2 %1924  ;;  %v6734_v4 = vpop.xlane.xlu0 %1181 }
 0x30f   :  { %v1933_v0 = vsub.f32 %v6370_v36, %v1925_v35  ;;  %v6737_v19 = vpop.xlane.xlu1 %863  ;;  %v6750_v36 = vpop.f32.mrf.mxu0  ;;  %v886_v22 = vmul.f32 %v6728_v55, %v885_v50  ;;  %v2874_v35 = vsel %vm480_vm1, %v6700_v17, -inf  ;;  %vm1221_vm15 = vweird.f32 %v6734_v4 }
 0x310   :  { %5264 = vrcp.f32 %v6737_v19  ;;  %9096 = vst [vmem:[#allocation31_spill] sm:$0xff] %v6750_v36  ;;  %v909_v56 = vand.u32 2147483648, %v6737_v19  ;;  %vm903_vm11 = vweird.f32 %v6737_v19 }
 0x311   :  { %v6740_v13 = vpop.eup %5262  ;;  %v1948_v37 = vmul.f32 1.442695, %v1933_v0  ;;  %5266 = vrcp.f32 %v6734_v4  ;;  %v887_v0 = vadd.f32 %v6728_v55, %v886_v22 }
 0x312   :  { %9094 = vst [vmem:[#allocation29_spill] sm:$0xff] %v6740_v13  ;;  %v1516_v5 = vsel %vm480_vm1, %v6740_v13, 0.0  ;;  %v910_v17 = vor.u32 1.1754944e-38, %v909_v56  ;;  %v9106_v56 = vld [vmem:[#allocation17_spill] sm:$0xff] }
 0x313   :  { %5268 = vpow2.f32 %v1948_v37  ;;  %1517 = vadd.xlane.f32.xlu1 %v1516_v5  ;;  %1966 = vadd.xlane.f32.xlu0 %v1965_v47  ;;  %v894_v47 = vand.u32 2147483648, %v6703_v53  ;;  %v907_v53 = vand.u32 2147483647, %v6737_v19 }
 0x314   :  { %2563 = vmax.xlane.f32.xlu2 %v2562_v45  ;;  %5270 = vpow2.f32 %v2266_v18  ;;  %v6779_v45 = vpop.f32.mrf.mxu2  ;;  %v1946_v18 = vmul.f32 1.442695, %v1932_v6  ;;  %v891_v6 = vsel %vm6785_vm8, %v6728_v55, %v887_v0  ;;  %v2565_v0 = vsel %vm480_vm1, %v6748_v52, -inf }
 0x315   :  { %vm908_vm13 = vcmp.eq.f32.partialorder %v907_v53, 8.507059e+37 }
 0x316   :  { %v5265_v38 = vpop.eup %5264  ;;  %v2234_v1 = vpop.xlane.xlu2 %2233 }
 0x317   :  { %v6755_v61 = vpop.xlane.xlu0 %2554  ;;  %v899_v15 = vmul.f32 %v5265_v38, %v6737_v19  ;;  %v6758_v54 = vpop.eup %5266  ;;  %vm904_vm9 = vweird.f32 %v5265_v38 }
 0x318   :  { %v1217_v9 = vmul.f32 %v6758_v54, %v6734_v4  ;;  %v6777_v5 = vpop.xlane.xlu1 %866  ;;  %v6781_v22 = vpop.f32.mrf.mxu0  ;;  %vm905_vm12 = vmor %vm903_vm11, %vm904_vm9  ;;  %vm1222_vm14 = vweird.f32 %v6758_v54 }
 0x319   :  { %v6760_v25 = vpop.eup %5268  ;;  %v900_v32 = vsub.f32 1.0, %v899_v15  ;;  %9099 = vst [vmem:[#allocation12_spill] sm:$0xff] %v6781_v22  ;;  %5272 = vrcp.f32 %v6777_v5  ;;  %v2256_v15 = vsub.f32 %v9104_v2, %v2234_v1  ;;  %v9105_v2 = vld [vmem:[#allocation14_spill] sm:$0xff]  ;;  %vm6838_vm2 = vmor %vm1221_vm15, %vm1222_vm14  ;;  %vm918_vm9 = vweird.f32 %v6777_v5 }
 0x31a   :  { %9097 = vst [vmem:[#allocation32_spill] sm:$0xff] %v6760_v25  ;;  %v1971_v37 = vsel %vm480_vm1, %v6760_v25, 0.0  ;;  %v1218_v25 = vsub.f32 1.0, %v1217_v9  ;;  %v6799_v27 = vpop.eup %5270 }
 0x31b   :  { %v901_v50 = vmul.f32 %v5265_v38, %v900_v32  ;;  %2560 = vmax.xlane.f32.xlu1 %v2559_v62  ;;  %2875 = vmax.xlane.f32.xlu0 %v2874_v35  ;;  %9102 = vst [vmem:[#allocation33_spill] sm:$0xff] %v6799_v27  ;;  %v2283_v19 = vsel %vm480_vm1, %v6799_v27, 0.0 }
 0x31c   :  { %1972 = vadd.xlane.f32.xlu2 %v1971_v37  ;;  %v895_v37 = vor.u32 1.1754944e-38, %v894_v47  ;;  %v2877_v47 = vsel %vm480_vm1, %v6722_v31, -inf }
 0x31d   :  { %v902_v32 = vadd.f32 %v5265_v38, %v901_v50  ;;  %v9103_v50 = vld [vmem:[#allocation15_spill] sm:$0xff] }
 0x31e   :  { %v6793_v35 = vpop.xlane.xlu2 %1178  ;;  %v2574_v13 = vsub.f32 %v9103_v50, %v6716_v46  ;;  %v896_v55 = vsel %vm893_vm10, %v895_v37, %v891_v6  ;;  %v1219_v46 = vmul.f32 %v6758_v54, %v1218_v25  ;;  %v2264_v37 = vmul.f32 1.442695, %v2256_v15 }
 0x31f   :  { %v6791_v62 = vpop.xlane.xlu0 %1184  ;;  %5274 = vrcp.f32 %v6793_v35  ;;  %v906_v9 = vsel %vm905_vm12, %v5265_v38, %v902_v32  ;;  %v897_v1 = vmul.f32 %v9105_v2, %v896_v55  ;;  %v6815_v6 = vpop.eup %5272  ;;  %v1227_v15 = vand.u32 2147483648, %v6734_v4 }
 0x320   :  { %5276 = vpow2.f32 %v1946_v18  ;;  %v911_v49 = vsel %vm908_vm13, %v910_v17, %v906_v9  ;;  %v2582_v18 = vmul.f32 1.442695, %v2574_v13  ;;  %v6824_v17 = vpop.f32.mrf.mxu2  ;;  %v1220_v13 = vadd.f32 %v6758_v54, %v1219_v46 }
 0x321   :  { %v912_v53 = vmul.f32 %v9106_v56, %v911_v49  ;;  %5278 = vrcp.f32 %v6791_v62  ;;  %9108 = vst [vmem:[#allocation13_spill] sm:$0xff] %v6824_v17  ;;  %v914_v9 = vmul.f32 %v6815_v6, %v6777_v5  ;;  %v9110_v49 = vld [vmem:[#allocation11_spill] sm:$0xff]  ;;  %vm1206_vm5 = vweird.f32 %v6793_v35 }
 0x322   :  { %5280 = vpow2.f32 %v2582_v18  ;;  %v1212_v18 = vand.u32 2147483648, %v6793_v35  ;;  %vm919_vm8 = vweird.f32 %v6815_v6  ;;  %vm1236_vm14 = vweird.f32 %v6791_v62 }
 0x323   :  { %2566 = vmax.xlane.f32.xlu1 %v2565_v0  ;;  %2878 = vmax.xlane.f32.xlu0 %v2877_v47  ;;  %v1003_v32 = vpack.c.bf16 %v912_v53, %v897_v1  ;;  %v6829_v47 = vpop.f32.mrf.mxu0  ;;  %5282 = vpow2.f32 %v2264_v37  ;;  %v2880_v1 = vsel %vm480_vm1, %v6750_v36, -inf  ;;  %v2571_v53 = vsel %vm480_vm1, %v6824_v17, -inf  ;;  %v9113_v17 = vld [vmem:[#allocation10_spill] sm:$0xff]  ;;  %vm6913_vm10 = vmor %vm918_vm9, %vm919_vm8 }
 0x324   :  { %2284 = vadd.xlane.f32.xlu2 %v2283_v19  ;;  %9109 = vst [vmem:[#allocation14_spill] sm:$0xff] %v6829_v47  ;;  %v1225_v19 = vand.u32 2147483647, %v6734_v4  ;;  %v1224_v37 = vsel %vm6838_vm2, %v6758_v54, %v1220_v13  ;;  %v915_v27 = vsub.f32 1.0, %v914_v9  ;;  %v1213_v13 = vor.u32 1.1754944e-38, %v1212_v18  ;;  %v9118_v18 = vld [vmem:[#allocation16_spill] sm:$0xff] }
 0x325   :  { %v5275_v38 = vpop.eup %5274  ;;  %4759 = vmatmul.msk.bf16.vlgmr.msrb.gmra.mxu1 %vm480_vm1, %v1003_v32 }
 0x326   :  { %v6820_v50 = vpop.xlane.xlu2 %2239  ;;  %v6822_v0 = vpop.eup %5276  ;;  %v1202_v55 = vmul.f32 %v5275_v38, %v6793_v35  ;;  %2456 = vmatpush.bf16.msrb.mxu1 %v9110_v49  ;;  %vm1207_vm3 = vweird.f32 %v5275_v38  ;;  %v1228_v49 = vor.u32 1.1754944e-38, %v1227_v15  ;;  %vm1226_vm4 = vcmp.eq.f32.partialorder %v1225_v19, 8.507059e+37 }
 0x327   :  { %v6818_v25 = vpop.xlane.xlu0 %2557  ;;  %9107 = vst [vmem:[#allocation15_spill] sm:$0xff] %v6822_v0  ;;  %v1968_v56 = vsel %vm480_vm1, %v6822_v0, 0.0  ;;  %v6849_v4 = vpop.eup %5278  ;;  %vm1208_vm6 = vmor %vm1206_vm5, %vm1207_vm3 }
 0x328   :  { %v1203_v46 = vsub.f32 1.0, %v1202_v55  ;;  %v1210_v55 = vand.u32 2147483647, %v6793_v35  ;;  %v6857_v36 = vpop.eup %5280  ;;  %v1229_v43 = vsel %vm1226_vm4, %v1228_v49, %v1224_v37  ;;  %v1232_v54 = vmul.f32 %v6849_v4, %v6791_v62  ;;  %v9119_v49 = vld [vmem:[#allocation9_spill] sm:$0xff] }
 0x329   :  { %9114 = vst [vmem:[#allocation17_spill] sm:$0xff] %v6857_v36  ;;  %v6865_v15 = vpop.eup %5282  ;;  %vm1237_vm12 = vweird.f32 %v6849_v4 }
 0x32a   :  { %v1204_v32 = vmul.f32 %v5275_v38, %v1203_v46  ;;  %2457 = vmatpush.bf16.msrb.mxu1 %v9113_v17  ;;  %9115 = vst [vmem:[#allocation11_spill] sm:$0xff] %v6865_v15  ;;  %vm1211_vm7 = vcmp.eq.f32.partialorder %v1210_v55, 8.507059e+37  ;;  %v916_v17 = vmul.f32 %v6815_v6, %v915_v27  ;;  %v1233_v52 = vsub.f32 1.0, %v1232_v54  ;;  %vm6941_vm15 = vmor %vm1236_vm14, %vm1237_vm12 }
 0x32b   :  { %2881 = vmax.xlane.f32.xlu1 %v2880_v1  ;;  %1969 = vadd.xlane.f32.xlu0 %v1968_v56  ;;  %v9116_v1 = vld [vmem:[#allocation18_spill] sm:$0xff]  ;;  %v2280_v27 = vsel %vm480_vm1, %v6865_v15, 0.0 }
 0x32c   :  { %2572 = vmax.xlane.f32.xlu2 %v2571_v53  ;;  %v1205_v0 = vadd.f32 %v5275_v38, %v1204_v32  ;;  %v1230_v56 = vmul.f32 %v9116_v1, %v1229_v43  ;;  %v9117_v53 = vld [vmem:[#allocation21_spill] sm:$0xff]  ;;  %v2258_v32 = vsub.f32 %v9118_v18, %v6820_v50  ;;  %v2598_v43 = vsel %vm480_vm1, %v6857_v36, 0.0 }
 0x32d   :  { %v2886_v50 = vsel %vm480_vm1, %v6829_v47, -inf  ;;  %v2883_v18 = vsel %vm480_vm1, %v6781_v22, -inf  ;;  %v1242_v36 = vand.u32 2147483648, %v6791_v62 }
 0x32e   :  { %v6861_v46 = vpop.xlane.xlu2 %869  ;;  %v1209_v9 = vsel %vm1208_vm6, %v5275_v38, %v1205_v0  ;;  %2458 = vmatpush.bf16.msrb.mxu1 %v9119_v49  ;;  %v6877_v38 = vpop.f32.mrf.mxu0  ;;  %v9121_v0 = vld [vmem:[#allocation19_spill] sm:$0xff]  ;;  %v2268_v1 = vmul.f32 1.442695, %v2258_v32 }
 0x32f   :  { %v6863_v2 = vpop.xlane.xlu0 %1190  ;;  %5284 = vrcp.f32 %v6861_v46  ;;  %v6868_v35 = vpop.xlane.xlu1 %1187  ;;  %v1214_v19 = vsel %vm1211_vm7, %v1213_v13, %v1209_v9  ;;  %9120 = vst [vmem:[#allocation10_spill] sm:$0xff] %v6877_v38  ;;  %v2575_v55 = vsub.f32 %v9121_v0, %v6755_v61  ;;  %v924_v13 = vand.u32 2147483648, %v6777_v5 }
 0x330   :  { %v1215_v37 = vmul.f32 %v9117_v53, %v1214_v19  ;;  %5286 = vrcp.f32 %v6868_v35  ;;  %v922_v19 = vand.u32 2147483647, %v6777_v5  ;;  %v917_v61 = vadd.f32 %v6815_v6, %v916_v17  ;;  %v9122_v53 = vld [vmem:[#allocation8_spill] sm:$0xff] }
 0x331   :  { %v1234_v17 = vmul.f32 %v6849_v4, %v1233_v52  ;;  %5288 = vrcp.f32 %v6863_v2  ;;  %vm933_vm3 = vweird.f32 %v6861_v46  ;;  %v1243_v52 = vor.u32 1.1754944e-38, %v1242_v36 }
 0x332   :  { %v1321_v9 = vpack.c.bf16 %v1230_v56, %v1215_v37  ;;  %2459 = vmatpush.bf16.msrb.mxu1 %v9122_v53  ;;  %v2889_v56 = vsel %vm480_vm1, %v6877_v38, -inf  ;;  %v2584_v37 = vmul.f32 1.442695, %v2575_v55  ;;  %vm6917_vm11 = vcmp.eq.f32.partialorder %v922_v19, 8.507059e+37 }
 0x333   :  { %2281 = vadd.xlane.f32.xlu0 %v2280_v27  ;;  %2599 = vadd.xlane.f32.xlu1 %v2598_v43  ;;  %v925_v55 = vor.u32 1.1754944e-38, %v924_v13  ;;  %v1235_v22 = vadd.f32 %v6849_v4, %v1234_v17  ;;  %vm1251_vm5 = vweird.f32 %v6868_v35  ;;  %v1255_v36 = vand.u32 2147483647, %v6868_v35 }
 0x334   :  { %2887 = vmax.xlane.f32.xlu2 %v2886_v50  ;;  %4767 = vmatmul.msk.bf16.vlgmr.msrb.gmra.mxu3 %vm480_vm1, %v1321_v9  ;;  %vm1266_vm12 = vweird.f32 %v6863_v2 }
 0x335   :  { %v6891_v54 = vpop.eup %5284  ;;  %vm1256_vm9 = vcmp.eq.f32.partialorder %v1255_v36, 8.507059e+37 }
 0x336   :  { %v929_v49 = vmul.f32 %v6891_v54, %v6861_v46  ;;  %v2243_v0 = vpop.xlane.xlu2 %2242  ;;  %v6905_v27 = vpop.eup %5286  ;;  %vm934_vm13 = vweird.f32 %v6891_v54 }
 0x337   :  { %v6903_v32 = vpop.xlane.xlu0 %2248  ;;  %v2259_v43 = vsub.f32 %v6406_v12, %v2243_v0  ;;  %v6909_v50 = vpop.xlane.xlu1 %872  ;;  %v1247_v53 = vmul.f32 %v6905_v27, %v6868_v35  ;;  %v921_v12 = vsel %vm6913_vm10, %v6815_v6, %v917_v61  ;;  %v1240_v0 = vand.u32 2147483647, %v6791_v62  ;;  %vm6961_vm4 = vmor %vm933_vm3, %vm934_vm13 }
 0x338   :  { %v930_v9 = vsub.f32 1.0, %v929_v49  ;;  %5290 = vrcp.f32 %v6909_v50  ;;  %v926_v5 = vsel %vm6917_vm11, %v925_v55, %v921_v12  ;;  %v939_v6 = vand.u32 2147483648, %v6861_v46  ;;  %v6939_v17 = vpop.eup %5288 }
 0x339   :  { %5292 = vpow2.f32 %v2268_v1  ;;  %v2270_v19 = vmul.f32 1.442695, %v2259_v43  ;;  %v1248_v49 = vsub.f32 1.0, %v1247_v53  ;;  %vm6945_vm2 = vcmp.eq.f32.partialorder %v1240_v0, 8.507059e+37  ;;  %v9131_v53 = vld [vmem:[#allocation20_spill] sm:$0xff] }
 0x33a   :  { %v931_v13 = vmul.f32 %v6891_v54, %v930_v9  ;;  %v937_v62 = vand.u32 2147483647, %v6861_v46  ;;  %v1257_v55 = vand.u32 2147483648, %v6868_v35  ;;  %v927_v12 = vmul.f32 %v9131_v53, %v926_v5 }
 0x33b   :  { %5294 = vpow2.f32 %v2270_v19  ;;  %2884 = vmax.xlane.f32.xlu0 %v2883_v18  ;;  %2890 = vmax.xlane.f32.xlu1 %v2889_v56  ;;  %v1249_v61 = vmul.f32 %v6905_v27, %v1248_v49  ;;  %v1239_v46 = vsel %vm6941_vm15, %v6849_v4, %v1235_v22  ;;  %vm1252_vm6 = vweird.f32 %v6905_v27 }
 0x33c   :  { %v932_v1 = vadd.f32 %v6891_v54, %v931_v13  ;;  %5296 = vpow2.f32 %v2584_v37  ;;  %v940_v22 = vor.u32 1.1754944e-38, %v939_v6  ;;  %v1262_v43 = vmul.f32 %v6939_v17, %v6863_v2  ;;  %vm1253_vm8 = vmor %vm1251_vm5, %vm1252_vm6 }
 0x33d   :  { %v1250_v53 = vadd.f32 %v6905_v27, %v1249_v61  ;;  %vm938_vm7 = vcmp.eq.f32.partialorder %v937_v62, 8.507059e+37  ;;  %v1258_v38 = vor.u32 1.1754944e-38, %v1257_v55  ;;  %v1244_v62 = vsel %vm6945_vm2, %v1243_v52, %v1239_v46 }
 0x33e   :  { %v6951_v56 = vpop.eup %5290  ;;  %v6956_v37 = vpop.xlane.xlu2 %875  ;;  %v936_v5 = vsel %vm6961_vm4, %v6891_v54, %v932_v1  ;;  %v2261_v35 = vsub.f32 %v6455_v20, %v6903_v32  ;;  %v954_v20 = vand.u32 2147483648, %v6909_v50  ;;  %vm948_vm11 = vweird.f32 %v6909_v50 }
 0x33f   :  { %v6954_v9 = vpop.xlane.xlu0 %1196  ;;  %v6968_v19 = vpop.eup %5292  ;;  %v944_v13 = vmul.f32 %v6951_v56, %v6909_v50  ;;  %5298 = vrcp.f32 %v6956_v37  ;;  %v941_v1 = vsel %vm938_vm7, %v940_v22, %v936_v5  ;;  %v1254_v55 = vsel %vm1253_vm8, %v6905_v27, %v1250_v53 }
 0x340   :  { %v2246_v49 = vpop.xlane.xlu1 %2245  ;;  %v2286_v54 = vsel %vm480_vm1, %v6968_v19, 0.0  ;;  %v1259_v5 = vsel %vm1256_vm9, %v1258_v38, %v1254_v55  ;;  %vm949_vm10 = vweird.f32 %v6951_v56  ;;  %v2274_v46 = vmul.f32 1.442695, %v2261_v35 }
 0x341   :  { %v6980_v4 = vpop.eup %5294  ;;  %v945_v47 = vsub.f32 1.0, %v944_v13  ;;  %v2260_v15 = vsub.f32 %v6426_v59, %v2246_v49  ;;  %v942_v59 = vmul.f32 %v6469_v60, %v941_v1  ;;  %v1263_v13 = vsub.f32 1.0, %v1262_v43  ;;  %vm7024_vm13 = vmor %vm948_vm11, %vm949_vm10 }
 0x342   :  { %v2289_v61 = vsel %vm480_vm1, %v6980_v4, 0.0  ;;  %v6989_v0 = vpop.eup %5296  ;;  %v969_v36 = vand.u32 2147483648, %v6956_v37  ;;  %vm1267_vm15 = vweird.f32 %v6939_v17  ;;  %vm963_vm2 = vweird.f32 %v6956_v37 }
 0x343   :  { %v946_v6 = vmul.f32 %v6951_v56, %v945_v47  ;;  %v2272_v7 = vmul.f32 1.442695, %v2260_v15  ;;  %2287 = vadd.xlane.f32.xlu0 %v2286_v54  ;;  %2290 = vadd.xlane.f32.xlu2 %v2289_v61  ;;  %v1004_v49 = vpack.c.bf16 %v942_v59, %v927_v12  ;;  %v9134_v47 = vld [vmem:[#allocation22_spill] sm:$0xff]  ;;  %v1260_v54 = vmul.f32 %v6482_v51, %v1259_v5  ;;  %vm7054_vm6 = vmor %vm1266_vm12, %vm1267_vm15 }
 0x344   :  { %v1245_v15 = vmul.f32 %v9134_v47, %v1244_v62  ;;  %v2568_v51 = vsel %vm480_vm1, %v6779_v45, -inf  ;;  %v1264_v27 = vmul.f32 %v6939_v17, %v1263_v13  ;;  %v952_v12 = vand.u32 2147483647, %v6909_v50 }
 0x345   :  { %5300 = vpow2.f32 %v2272_v7  ;;  %v5299_v22 = vpop.eup %5298  ;;  %4760 = vmatmul.msk.bf16.gmra.mxu1 %vm480_vm1, %v1004_v49  ;;  %v947_v38 = vadd.f32 %v6951_v56, %v946_v6  ;;  %v2601_v53 = vsel %vm480_vm1, %v6989_v0, 0.0  ;;  %v967_v50 = vand.u32 2147483647, %v6956_v37 }
 0x346   :  { %v7004_v60 = vpop.xlane.xlu2 %1193  ;;  %v959_v18 = vmul.f32 %v5299_v22, %v6956_v37  ;;  %v1322_v32 = vpack.c.bf16 %v1260_v54, %v1245_v15  ;;  %vm964_vm14 = vweird.f32 %v5299_v22  ;;  %v1270_v62 = vand.u32 2147483647, %v6863_v2 }
 0x347   :  { %v7002_v61 = vpop.xlane.xlu0 %2869  ;;  %5302 = vrcp.f32 %v7004_v60  ;;  %v951_v59 = vsel %vm7024_vm13, %v6951_v56, %v947_v38  ;;  %v955_v13 = vor.u32 1.1754944e-38, %v954_v20  ;;  %v1265_v5 = vadd.f32 %v6939_v17, %v1264_v27  ;;  %vm7042_vm4 = vmor %vm963_vm2, %vm964_vm14 }
 0x348   :  { %v7009_v7 = vpop.xlane.xlu1 %878  ;;  %v960_v52 = vsub.f32 1.0, %v959_v18  ;;  %4768 = vmatmul.msk.bf16.gmra.mxu3 %vm480_vm1, %v1322_v32  ;;  %vm953_vm3 = vcmp.eq.f32.partialorder %v952_v12, 8.507059e+37  ;;  %v1272_v47 = vand.u32 2147483648, %v6863_v2  ;;  %v970_v15 = vor.u32 1.1754944e-38, %v969_v36 }
 0x349   :  { %v956_v38 = vsel %vm953_vm3, %v955_v13, %v951_v59  ;;  %5304 = vpow2.f32 %v2274_v46  ;;  %vm968_vm5 = vcmp.eq.f32.partialorder %v967_v50, 8.507059e+37  ;;  %v1269_v2 = vsel %vm7054_vm6, %v6939_v17, %v1265_v5 }
 0x34a   :  { %v961_v6 = vmul.f32 %v5299_v22, %v960_v52  ;;  %5306 = vrcp.f32 %v6954_v9  ;;  %v957_v36 = vmul.f32 %v6503_v26, %v956_v38  ;;  %v2892_v43 = vsub.f32 %v6562_v58, %v7002_v61 }
 0x34b   :  { %v7028_v1 = vpop.eup %5300  ;;  %2569 = vmax.xlane.f32.xlu0 %v2568_v51  ;;  %v1287_v59 = vand.u32 2147483648, %v7004_v60  ;;  %5308 = vrcp.f32 %v7009_v7  ;;  %vm1281_vm8 = vweird.f32 %v7004_v60  ;;  %v1273_v58 = vor.u32 1.1754944e-38, %v1272_v47 }
 0x34c   :  { %v2292_v55 = vsel %vm480_vm1, %v7028_v1, 0.0  ;;  %v962_v35 = vadd.f32 %v5299_v22, %v961_v6  ;;  %vm1271_vm10 = vcmp.eq.f32.partialorder %v1270_v62, 8.507059e+37  ;;  %v2900_v13 = vmul.f32 1.442695, %v2892_v43 }
 0x34d   :  { %v5303_v49 = vpop.eup %5302  ;;  %2293 = vadd.xlane.f32.xlu2 %v2292_v55  ;;  %vm1296_vm14 = vweird.f32 %v6954_v9  ;;  %vm978_vm3 = vweird.f32 %v7009_v7 }
 0x34e   :  { %v1277_v54 = vmul.f32 %v5303_v49, %v7004_v60  ;;  %v2252_v18 = vpop.xlane.xlu2 %2251  ;;  %v966_v37 = vsel %vm7042_vm4, %v5299_v22, %v962_v35  ;;  %vm1282_vm7 = vweird.f32 %v5303_v49 }
 0x34f   :  { %v2262_v20 = vsub.f32 %v6479_v57, %v2252_v18  ;;  %v2873_v52 = vpop.xlane.xlu0 %2872  ;;  %v971_v46 = vsel %vm968_vm5, %v970_v15, %v966_v37  ;;  %v7072_v17 = vpop.eup %5304  ;;  %vm1283_vm9 = vmor %vm1281_vm8, %vm1282_vm7 }
 0x350   :  { %v2255_v32 = vpop.xlane.xlu1 %2254  ;;  %v1278_v27 = vsub.f32 1.0, %v1277_v54  ;;  %v972_v22 = vmul.f32 %v6534_v63, %v971_v46  ;;  %v1285_v63 = vand.u32 2147483647, %v7004_v60  ;;  %v7074_v61 = vpop.eup %5306  ;;  %v1274_v60 = vsel %vm1271_vm10, %v1273_v58, %v1269_v2 }
 0x351   :  { %v2263_v12 = vsub.f32 %v6515_v10, %v2255_v32  ;;  %v2276_v57 = vmul.f32 1.442695, %v2262_v20  ;;  %v2893_v10 = vsub.f32 %v6607_v14, %v2873_v52  ;;  %v1288_v14 = vor.u32 1.1754944e-38, %v1287_v59  ;;  %v7080_v56 = vpop.eup %5308 }
 0x352   :  { %v1279_v6 = vmul.f32 %v5303_v49, %v1278_v27  ;;  %v1005_v26 = vpack.c.bf16 %v972_v22, %v957_v36  ;;  %vm1286_vm11 = vcmp.eq.f32.partialorder %v1285_v63, 8.507059e+37  ;;  %v2295_v62 = vsel %vm480_vm1, %v7072_v17, 0.0 }
 0x353   :  { %v2278_v50 = vmul.f32 1.442695, %v2263_v12  ;;  %2602 = vadd.xlane.f32.xlu0 %v2601_v53  ;;  %5310 = vpow2.f32 %v2276_v57  ;;  %v2902_v53 = vmul.f32 1.442695, %v2893_v10  ;;  %v1292_v32 = vmul.f32 %v7074_v61, %v6954_v9 }
 0x354   :  { %v1280_v55 = vadd.f32 %v5303_v49, %v1279_v6  ;;  %vm1297_vm12 = vweird.f32 %v7074_v61  ;;  %vm979_vm13 = vweird.f32 %v7080_v56 }
 0x355   :  { %5312 = vpow2.f32 %v2278_v50  ;;  %4761 = vmatmul.msk.bf16.gmra.mxu1 %vm480_vm1, %v1005_v26  ;;  %v1293_v46 = vsub.f32 1.0, %v1292_v32  ;;  %vm7149_vm15 = vmor %vm1296_vm14, %vm1297_vm12 }
 0x356   :  { %v1284_v5 = vsel %vm1283_vm9, %v5303_v49, %v1280_v55  ;;  %v7076_v35 = vpop.xlane.xlu2 %881  ;;  %v1275_v49 = vmul.f32 %v6471_v24, %v1274_v60  ;;  %v1302_v60 = vand.u32 2147483648, %v6954_v9  ;;  %vm7164_vm5 = vmor %vm978_vm3, %vm979_vm13 }
 0x357   :  { %5314 = vrcp.f32 %v7076_v35  ;;  %v1289_v47 = vsel %vm1286_vm11, %v1288_v14, %v1284_v5  ;;  %v1294_v43 = vmul.f32 %v7074_v61, %v1293_v46  ;;  %vm993_vm6 = vweird.f32 %v7076_v35 }
 0x358   :  { %5316 = vpow2.f32 %v2900_v13  ;;  %v1290_v54 = vmul.f32 %v6558_v48, %v1289_v47  ;;  %v7090_v38 = vpop.xlane.xlu1 %1496  ;;  %v974_v48 = vmul.f32 %v7080_v56, %v7009_v7  ;;  %v1300_v13 = vand.u32 2147483647, %v6954_v9 }
 0x359   :  { %v7082_v15 = vpop.eup %5310  ;;  %5318 = vpow2.f32 %v2902_v53  ;;  %v1295_v14 = vadd.f32 %v7074_v61, %v1294_v43  ;;  %vm1524_vm11 = vweird.f32 %v7090_v38 }
 0x35a   :  { %v2298_v20 = vsel %vm480_vm1, %v7082_v15, 0.0  ;;  %v1323_v51 = vpack.c.bf16 %v1290_v54, %v1275_v49  ;;  %5320 = vrcp.f32 %v7090_v38  ;;  %v975_v22 = vsub.f32 1.0, %v974_v48 }
 0x35b   :  { %v7088_v18 = vpop.eup %5312  ;;  %2296 = vadd.xlane.f32.xlu0 %v2295_v62  ;;  %2299 = vadd.xlane.f32.xlu2 %v2298_v20  ;;  %v984_v49 = vand.u32 2147483648, %v7009_v7  ;;  %v2576_v20 = vsub.f32 %v6444_v16, %v6818_v25  ;;  %vm7153_vm2 = vcmp.eq.f32.partialorder %v1300_v13, 8.507059e+37  ;;  %v999_v16 = vand.u32 2147483648, %v7076_v35 }
 0x35c   :  { %v2301_v37 = vsel %vm480_vm1, %v7088_v18, 0.0  ;;  %4769 = vmatmul.msk.bf16.gmra.mxu3 %vm480_vm1, %v1323_v51  ;;  %v976_v10 = vmul.f32 %v7080_v56, %v975_v22  ;;  %v982_v51 = vand.u32 2147483647, %v7009_v7  ;;  %v1299_v46 = vsel %vm7149_vm15, %v7074_v61, %v1295_v14 }
 0x35d   :  { %v7098_v24 = vpop.eup %5314  ;;  %2302 = vadd.xlane.f32.xlu1 %v2301_v37  ;;  %v1303_v22 = vor.u32 1.1754944e-38, %v1302_v60  ;;  %v997_v7 = vand.u32 2147483647, %v7076_v35  ;;  %v985_v61 = vor.u32 1.1754944e-38, %v984_v49 }
 0x35e   :  { %v7103_v27 = vpop.xlane.xlu0 %1954  ;;  %v7105_v52 = vpop.xlane.xlu2 %1199  ;;  %v989_v57 = vmul.f32 %v7098_v24, %v7076_v35  ;;  %v977_v62 = vadd.f32 %v7080_v56, %v976_v10  ;;  %vm994_vm4 = vweird.f32 %v7098_v24  ;;  %vm983_vm8 = vcmp.eq.f32.partialorder %v982_v51, 8.507059e+37 }
 0x35f   :  { %v7108_v12 = vpop.eup %5316  ;;  %5322 = vrcp.f32 %v7105_v52  ;;  %vm7187_vm7 = vmor %vm993_vm6, %vm994_vm4  ;;  %v1304_v35 = vsel %vm7153_vm2, %v1303_v22, %v1299_v46  ;;  %vm998_vm9 = vcmp.eq.f32.partialorder %v997_v7, 8.507059e+37  ;;  %vm1311_vm13 = vweird.f32 %v7105_v52 }
 0x360   :  { %v7113_v36 = vpop.eup %5318  ;;  %v2916_v2 = vsel %vm480_vm1, %v7108_v12, 0.0  ;;  %v990_v6 = vsub.f32 1.0, %v989_v57  ;;  %v7123_v26 = vpop.xlane.xlu1 %1951  ;;  %5324 = vrcp.f32 %v7103_v27  ;;  %v981_v43 = vsel %vm7164_vm5, %v7080_v56, %v977_v62 }
 0x361   :  { %v2919_v50 = vsel %vm480_vm1, %v7113_v36, 0.0  ;;  %v7120_v59 = vpop.eup %5320  ;;  %v1000_v56 = vor.u32 1.1754944e-38, %v999_v16  ;;  %v986_v60 = vsel %vm983_vm8, %v985_v61, %v981_v43  ;;  %v1315_v16 = vand.u32 2147483647, %v7105_v52 }
 0x362   :  { %v991_v53 = vmul.f32 %v7098_v24, %v990_v6  ;;  %v1520_v47 = vmul.f32 %v7120_v59, %v7090_v38  ;;  %vm1525_vm12 = vweird.f32 %v7120_v59  ;;  %v1530_v61 = vand.u32 2147483648, %v7090_v38 }
 0x363   :  { %2917 = vadd.xlane.f32.xlu2 %v2916_v2  ;;  %vm7240_vm2 = vmor %vm1524_vm11, %vm1525_vm12  ;;  %vm1316_vm3 = vcmp.eq.f32.partialorder %v1315_v16, 8.507059e+37  ;;  %vm1979_vm12 = vweird.f32 %v7123_v26 }
 0x364   :  { %v992_v9 = vadd.f32 %v7098_v24, %v991_v53  ;;  %v1521_v2 = vsub.f32 1.0, %v1520_v47 }
 0x365   :  { %2920 = vadd.xlane.f32.xlu1 %v2919_v50  ;;  %v7125_v55 = vpop.eup %5322 }
 0x366   :  { %v7128_v63 = vpop.xlane.xlu2 %1499  ;;  %v7130_v58 = vpop.xlane.xlu0 %1502  ;;  %v1307_v5 = vmul.f32 %v7125_v55, %v7105_v52  ;;  %v996_v47 = vsel %vm7187_vm7, %v7098_v24, %v992_v9  ;;  %v1522_v62 = vmul.f32 %v7120_v59, %v1521_v2  ;;  %vm1312_vm10 = vweird.f32 %v7125_v55 }
 0x367   :  { %5326 = vrcp.f32 %v7128_v63  ;;  %v7159_v48 = vpop.eup %5324  ;;  %v1001_v37 = vsel %vm998_vm9, %v1000_v56, %v996_v47  ;;  %v1317_v24 = vand.u32 2147483648, %v7105_v52  ;;  %v987_v9 = vmul.f32 %v6565_v44, %v986_v60  ;;  %vm7217_vm14 = vmor %vm1311_vm13, %vm1312_vm10 }
 0x368   :  { %5328 = vrcp.f32 %v7123_v26  ;;  %v1308_v54 = vsub.f32 1.0, %v1307_v5  ;;  %v2586_v5 = vmul.f32 1.442695, %v2576_v20  ;;  %v1990_v49 = vmul.f32 %v7159_v48, %v7103_v27  ;;  %v7209_v51 = vpop.xlane.xlu1 %1957 }
 0x369   :  { %v1002_v25 = vmul.f32 %v6620_v40, %v1001_v37  ;;  %v1523_v46 = vadd.f32 %v7120_v59, %v1522_v62  ;;  %v1318_v14 = vor.u32 1.1754944e-38, %v1317_v24  ;;  %v1545_v56 = vand.u32 2147483648, %v7128_v63 }
 0x36a   :  { %v1309_v50 = vmul.f32 %v7125_v55, %v1308_v54  ;;  %v1991_v22 = vsub.f32 1.0, %v1990_v49  ;;  %vm1539_vm4 = vweird.f32 %v7128_v63  ;;  %v1543_v60 = vand.u32 2147483647, %v7128_v63 }
 0x36b   :  { %v1006_v40 = vpack.c.bf16 %v1002_v25, %v987_v9  ;;  %v1527_v47 = vsel %vm7240_vm2, %v7120_v59, %v1523_v46  ;;  %v1531_v9 = vor.u32 1.1754944e-38, %v1530_v61  ;;  %v1546_v16 = vor.u32 1.1754944e-38, %v1545_v56  ;;  %v9157_v46 = vld [vmem:[#allocation7_spill] sm:$0xff] }
 0x36c   :  { %v1310_v20 = vadd.f32 %v7125_v55, %v1309_v50  ;;  %vm1544_vm7 = vcmp.eq.f32.partialorder %v1543_v60, 8.507059e+37  ;;  %vm1995_vm8 = vweird.f32 %v7159_v48  ;;  %vm1994_vm10 = vweird.f32 %v7103_v27 }
 0x36d   :  { %v7171_v57 = vpop.eup %5326  ;;  %4762 = vmatmul.msk.bf16.gmra.mxu1 %vm480_vm1, %v1006_v40  ;;  %v1985_v56 = vand.u32 2147483648, %v7123_v26  ;;  %vm7298_vm11 = vmor %vm1994_vm10, %vm1995_vm8 }
 0x36e   :  { %v7177_v6 = vpop.eup %5328  ;;  %v1535_v10 = vmul.f32 %v7171_v57, %v7128_v63  ;;  %v7183_v13 = vpop.xlane.xlu0 %1505  ;;  %v1314_v44 = vsel %vm7217_vm14, %v7125_v55, %v1310_v20  ;;  %vm1540_vm15 = vweird.f32 %v7171_v57  ;;  %v1992_v63 = vmul.f32 %v7159_v48, %v1991_v22 }
 0x36f   :  { %2752 = vrot.lane.b32.xlu0 %v5942_v30, %s5537_s9  ;;  %v1975_v54 = vmul.f32 %v7177_v6, %v7123_v26  ;;  %5330 = vrcp.f32 %v7183_v13  ;;  %vm7252_vm5 = vmor %vm1539_vm4, %vm1540_vm15  ;;  %v7273_v22 = vpop.f32.mrf.mxu3  ;;  %vm1980_vm9 = vweird.f32 %v7177_v6  ;;  %vm1569_vm4 = vweird.f32 %v7183_v13 }
 0x370   :  { %v1536_v53 = vsub.f32 1.0, %v1535_v10  ;;  %5332 = vrcp.f32 %v7130_v58  ;;  %v1528_v10 = vand.u32 2147483647, %v7090_v38  ;;  %v9156_v38 = vld [vmem:[#allocation23_spill] sm:$0xff]  ;;  %v7277_v7 = vpop.xlane.xlu1 %1511  ;;  %vm7310_vm14 = vmor %vm1979_vm12, %vm1980_vm9  ;;  %vm2009_vm9 = vweird.f32 %v7209_v51 }
 0x371   :  { %v1976_v2 = vsub.f32 1.0, %v1975_v54  ;;  %5334 = vrcp.f32 %v7209_v51  ;;  %v1305_v49 = vmul.f32 %v9156_v38, %v1304_v35  ;;  %v1319_v54 = vsel %vm1316_vm3, %v1318_v14, %v1314_v44 }
 0x372   :  { %v1537_v32 = vmul.f32 %v7171_v57, %v1536_v53  ;;  %v9151_v53 = vld [vmem:[#allocation6_spill] sm:$0xff]  ;;  %v1320_v37 = vmul.f32 %v6651_v41, %v1319_v54  ;;  %5336 = vpow2.f32 %v2586_v5  ;;  %vm1529_vm6 = vcmp.eq.f32.partialorder %v1528_v10, 8.507059e+37 }
 0x373   :  { %v1998_v41 = vand.u32 2147483647, %v7103_v27  ;;  %v2000_v14 = vand.u32 2147483648, %v7103_v27  ;;  %v1573_v27 = vand.u32 2147483647, %v7183_v13 }
 0x374   :  { %v1538_v52 = vadd.f32 %v7171_v57, %v1537_v32  ;;  %v1977_v32 = vmul.f32 %v7177_v6, %v1976_v2  ;;  %v1324_v25 = vpack.c.bf16 %v1320_v37, %v1305_v49  ;;  %v1993_v2 = vadd.f32 %v7159_v48, %v1992_v63 }
 0x375   :  { %v7258_v20 = vpop.eup %5330  ;;  %vm1999_vm13 = vcmp.eq.f32.partialorder %v1998_v41, 8.507059e+37  ;;  %v2001_v63 = vor.u32 1.1754944e-38, %v2000_v14  ;;  %vm1574_vm12 = vcmp.eq.f32.partialorder %v1573_v27, 8.507059e+37 }
 0x376   :  { %v7227_v43 = vpop.xlane.xlu2 %1508  ;;  %v7229_v50 = vpop.xlane.xlu0 %1960  ;;  %v1542_v59 = vsel %vm7252_vm5, %v7171_v57, %v1538_v52  ;;  %v1565_v35 = vmul.f32 %v7258_v20, %v7183_v13  ;;  %v1532_v57 = vsel %vm1529_vm6, %v1531_v9, %v1527_v47  ;;  %v1978_v44 = vadd.f32 %v7177_v6, %v1977_v32  ;;  %4770 = vmatmul.msk.bf16.gmra.mxu3 %vm480_vm1, %v1324_v25 }
 0x377   :  { %2748 = vrot.lane.b32.xlu0 %v9151_v53, %s5537_s9  ;;  %v7266_v24 = vpop.eup %5332  ;;  %5338 = vrcp.f32 %v7229_v50  ;;  %v1547_v5 = vsel %vm1544_vm7, %v1546_v16, %v1542_v59  ;;  %v1533_v38 = vmul.f32 %v6627_v29, %v1532_v57  ;;  %v1986_v32 = vor.u32 1.1754944e-38, %v1985_v56  ;;  %v7336_v41 = vpop.f32.mrf.mxu3 }
 0x378   :  { %v1550_v52 = vmul.f32 %v7266_v24, %v7130_v58  ;;  %v7291_v61 = vpop.eup %5334  ;;  %v1548_v60 = vmul.f32 %v6670_v23, %v1547_v5  ;;  %v1566_v47 = vsub.f32 1.0, %v1565_v35  ;;  %v1982_v23 = vsel %vm7310_vm14, %v7177_v6, %v1978_v44 }
 0x379   :  { %v7305_v62 = vpop.eup %5336  ;;  %v2005_v29 = vmul.f32 %v7291_v61, %v7209_v51  ;;  %5340 = vrcp.f32 %v7227_v43  ;;  %v1558_v5 = vand.u32 2147483647, %v7130_v58  ;;  %vm1570_vm2 = vweird.f32 %v7258_v20 }
 0x37a   :  { %v1551_v54 = vsub.f32 1.0, %v1550_v52  ;;  %v1639_v37 = vpack.c.bf16 %v1548_v60, %v1533_v38  ;;  %v1567_v9 = vmul.f32 %v7258_v20, %v1566_v47  ;;  %5342 = vrcp.f32 %v7277_v7  ;;  %vm7368_vm7 = vmor %vm1569_vm4, %vm1570_vm2 }
 0x37b   :  { %2750 = vrot.lane.b32.xlu2 %v9157_v46, %s5537_s9  ;;  %v2006_v35 = vsub.f32 1.0, %v2005_v29  ;;  %v7344_v14 = vsel %vm480_vm1, %v7305_v62, 0.0  ;;  %vm1555_vm3 = vweird.f32 %v7266_v24  ;;  %v2013_v60 = vand.u32 2147483647, %v7209_v51 }
 0x37c   :  { %v1552_v6 = vmul.f32 %v7266_v24, %v1551_v54  ;;  %v1568_v55 = vadd.f32 %v7258_v20, %v1567_v9  ;;  %v1575_v47 = vand.u32 2147483648, %v7183_v13  ;;  %vm1554_vm5 = vweird.f32 %v7130_v58 }
 0x37d   :  { %v7314_v49 = vpop.eup %5338  ;;  %4775 = vmatmul.msk.bf16.vlgmr.msra.gmra.mxu1 %vm480_vm1, %v1639_v37  ;;  %vm7364_vm6 = vcmp.eq.f32.partialorder %v1558_v5, 8.507059e+37  ;;  %vm7382_vm8 = vmor %vm1554_vm5, %vm1555_vm3  ;;  %vm2010_vm10 = vweird.f32 %v7291_v61  ;;  %vm1599_vm3 = vweird.f32 %v7277_v7  ;;  %vm1584_vm5 = vweird.f32 %v7227_v43 }
 0x37e   :  { %3070 = vrot.lane.b32.xlu1 %v5942_v30, %s5539_s11  ;;  %v7287_v40 = vpop.xlane.xlu0 %1963  ;;  %v7289_v10 = vpop.xlane.xlu2 %1514  ;;  %v1983_v30 = vand.u32 2147483647, %v7123_v26  ;;  %v1997_v26 = vsel %vm7298_vm11, %v7159_v48, %v1993_v2  ;;  %v2020_v59 = vmul.f32 %v7314_v49, %v7229_v50  ;;  %v1560_v2 = vand.u32 2147483648, %v7130_v58  ;;  %vm7420_vm14 = vmor %vm2009_vm9, %vm2010_vm10 }
 0x37f   :  { %v2002_v48 = vsel %vm1999_vm13, %v2001_v63, %v1997_v26  ;;  %v2015_v63 = vand.u32 2147483648, %v7209_v51  ;;  %v1572_v58 = vsel %vm7368_vm7, %v7258_v20, %v1568_v55  ;;  %v1576_v37 = vor.u32 1.1754944e-38, %v1575_v47  ;;  %v9170_v20 = vld [vmem:[#allocation5_spill] sm:$0xff] }
 0x380   :  { %vm1984_vm15 = vcmp.eq.f32.partialorder %v1983_v30, 8.507059e+37  ;;  %v2021_v44 = vsub.f32 1.0, %v2020_v59  ;;  %v2003_v56 = vmul.f32 %v6658_v21, %v2002_v48  ;;  %v7351_v30 = vpop.eup %5340  ;;  %v2007_v21 = vmul.f32 %v7291_v61, %v2006_v35 }
 0x381   :  { %v1987_v16 = vsel %vm1984_vm15, %v1986_v32, %v1982_v23  ;;  %v7357_v38 = vpop.eup %5342  ;;  %v1580_v13 = vmul.f32 %v7351_v30, %v7227_v43  ;;  %v1561_v59 = vor.u32 1.1754944e-38, %v1560_v2  ;;  %vm7391_vm11 = vcmp.eq.f32.partialorder %v2013_v60, 8.507059e+37  ;;  %v7405_v2 = vpop.f32.mrf.mxu3 }
 0x382   :  { %v2022_v54 = vmul.f32 %v7314_v49, %v2021_v44  ;;  %v1595_v9 = vmul.f32 %v7357_v38, %v7277_v7  ;;  %v2008_v48 = vadd.f32 %v7291_v61, %v2007_v21  ;;  %vm2025_vm13 = vweird.f32 %v7314_v49 }
 0x383   :  { %v2016_v55 = vor.u32 1.1754944e-38, %v2015_v63  ;;  %v1603_v60 = vand.u32 2147483647, %v7277_v7  ;;  %v1581_v47 = vsub.f32 1.0, %v1580_v13  ;;  %v2028_v21 = vand.u32 2147483647, %v7229_v50 }
 0x384   :  { %v2023_v44 = vadd.f32 %v7314_v49, %v2022_v54  ;;  %v1596_v54 = vsub.f32 1.0, %v1595_v9  ;;  %vm2024_vm15 = vweird.f32 %v7229_v50  ;;  %v1605_v63 = vand.u32 2147483648, %v7277_v7 }
 0x385   :  { %vm7431_vm2 = vmor %vm2024_vm15, %vm2025_vm13  ;;  %v2012_v26 = vsel %vm7420_vm14, %v7291_v61, %v2008_v48  ;;  %vm2029_vm4 = vcmp.eq.f32.partialorder %v2028_v21, 8.507059e+37  ;;  %v1588_v61 = vand.u32 2147483647, %v7227_v43  ;;  %vm7467_vm7 = vcmp.eq.f32.partialorder %v1603_v60, 8.507059e+37 }
 0x386   :  { %3068 = vrot.lane.b32.xlu1 %v9157_v46, %s5539_s11  ;;  %v7332_v25 = vpop.xlane.xlu0 %1966  ;;  %v7334_v57 = vpop.xlane.xlu1 %1517  ;;  %v1988_v46 = vmul.f32 %v6656_v28, %v1987_v16  ;;  %v1553_v28 = vadd.f32 %v7266_v24, %v1552_v6  ;;  %v2017_v21 = vsel %vm7391_vm11, %v2016_v55, %v2012_v26  ;;  %v2043_v55 = vand.u32 2147483647, %v7287_v40 }
 0x387   :  { %v7340_v52 = vpop.xlane.xlu2 %2563  ;;  %5344 = vrcp.f32 %v7332_v25  ;;  %vm7479_vm9 = vcmp.eq.f32.partialorder %v1588_v61, 8.507059e+37  ;;  %vm2039_vm11 = vweird.f32 %v7287_v40  ;;  %v1618_v61 = vand.u32 2147483647, %v7289_v10 }
 0x388   :  { %5346 = vrcp.f32 %v7287_v40  ;;  %v2094_v29 = vpack.c.bf16 %v2003_v56, %v1988_v46  ;;  %v1557_v6 = vsel %vm7382_vm8, %v7266_v24, %v1553_v28  ;;  %v2030_v56 = vand.u32 2147483648, %v7229_v50 }
 0x389   :  { %v1577_v46 = vsel %vm1574_vm12, %v1576_v37, %v1572_v58  ;;  %5348 = vrcp.f32 %v7334_v57  ;;  %v1582_v37 = vmul.f32 %v7351_v30, %v1581_v47  ;;  %v7475_v13 = vpop.f32.mrf.mxu3  ;;  %vm1600_vm8 = vweird.f32 %v7357_v38 }
 0x38a   :  { %4783 = vmatmul.msk.bf16.vlgmr.msra.gmra.mxu3 %vm480_vm1, %v2094_v29  ;;  %v1562_v29 = vsel %vm7364_vm6, %v1561_v59, %v1557_v6  ;;  %5350 = vrcp.f32 %v7289_v10  ;;  %v1578_v50 = vmul.f32 %v6684_v39, %v1577_v46  ;;  %v2031_v58 = vor.u32 1.1754944e-38, %v2030_v56  ;;  %vm7503_vm12 = vmor %vm1599_vm3, %vm1600_vm8 }
 0x38b   :  { %v2027_v59 = vsel %vm7431_vm2, %v7314_v49, %v2023_v44  ;;  %v1563_v39 = vmul.f32 %v6672_v42, %v1562_v29  ;;  %v1597_v6 = vmul.f32 %v7357_v38, %v1596_v54  ;;  %v1590_v56 = vand.u32 2147483648, %v7227_v43 }
 0x38c   :  { %v2032_v48 = vsel %vm2029_vm4, %v2031_v58, %v2027_v59  ;;  %vm1585_vm6 = vweird.f32 %v7351_v30  ;;  %v1583_v29 = vadd.f32 %v7351_v30, %v1582_v37  ;;  %v2058_v7 = vand.u32 2147483647, %v7332_v25 }
 0x38d   :  { %v7403_v5 = vpop.eup %5344  ;;  %v1640_v44 = vpack.c.bf16 %v1578_v50, %v1563_v39  ;;  %v1598_v16 = vadd.f32 %v7357_v38, %v1597_v6  ;;  %v2018_v50 = vmul.f32 %v6675_v33, %v2017_v21  ;;  %vm7494_vm10 = vmor %vm1584_vm5, %vm1585_vm6  ;;  %vm7523_vm13 = vcmp.eq.f32.partialorder %v2043_v55, 8.507059e+37 }
 0x38e   :  { %2746 = vrot.lane.b32.xlu1 %v9170_v20, %s5537_s9  ;;  %v7401_v35 = vpop.xlane.xlu0 %2875  ;;  %v2561_v28 = vpop.xlane.xlu1 %2560  ;;  %v2050_v51 = vmul.f32 %v7403_v5, %v7332_v25  ;;  %v1587_v43 = vsel %vm7494_vm10, %v7351_v30, %v1583_v29  ;;  %vm2055_vm14 = vweird.f32 %v7403_v5  ;;  %vm2054_vm2 = vweird.f32 %v7332_v25 }
 0x38f   :  { %v7412_v24 = vpop.xlane.xlu2 %1972  ;;  %v7414_v27 = vpop.eup %5346  ;;  %v2577_v32 = vsub.f32 %v6694_v3, %v2561_v28  ;;  %v7454_v3 = vor.u32 1.1754944e-38, %v1605_v63  ;;  %4776 = vmatmul.msk.bf16.gmra.mxu1 %vm480_vm1, %v1640_v44  ;;  %v2033_v63 = vmul.f32 %v6698_v34, %v2032_v48  ;;  %v1602_v6 = vsel %vm7503_vm12, %v7357_v38, %v1598_v16  ;;  %vm7545_vm4 = vmor %vm2054_vm2, %vm2055_vm14 }
 0x390   :  { %v2035_v9 = vmul.f32 %v7414_v27, %v7287_v40  ;;  %v2051_v49 = vsub.f32 1.0, %v2050_v51  ;;  %v7459_v47 = vpop.eup %5348  ;;  %5352 = vrcp.f32 %v7412_v24  ;;  %v2578_v48 = vsub.f32 %v6720_v8, %v7340_v52 }
 0x391   :  { %v2588_v42 = vmul.f32 1.442695, %v2577_v32  ;;  %v7465_v23 = vpop.eup %5350  ;;  %v1625_v51 = vmul.f32 %v7459_v47, %v7334_v57  ;;  %v1591_v32 = vor.u32 1.1754944e-38, %v1590_v56  ;;  %v2095_v39 = vpack.c.bf16 %v2033_v63, %v2018_v50  ;;  %v7561_v50 = vpop.f32.mrf.mxu3  ;;  %v9191_v63 = vld [vmem:[#allocation28_spill] sm:$0xff] }
 0x392   :  { %v2052_v60 = vmul.f32 %v7403_v5, %v2051_v49  ;;  %v1610_v59 = vmul.f32 %v7465_v23, %v7289_v10  ;;  %v2060_v8 = vand.u32 2147483648, %v7332_v25  ;;  %vm2040_vm15 = vweird.f32 %v7414_v27 }
 0x393   :  { %5354 = vpow2.f32 %v2588_v42  ;;  %v1626_v38 = vsub.f32 1.0, %v1625_v51  ;;  %v1592_v52 = vsel %vm7479_vm9, %v1591_v32, %v1587_v43  ;;  %vm1614_vm3 = vweird.f32 %v7289_v10  ;;  %vm7567_vm5 = vmor %vm2039_vm11, %vm2040_vm15 }
 0x394   :  { %v2053_v44 = vadd.f32 %v7403_v5, %v2052_v60  ;;  %v1611_v42 = vsub.f32 1.0, %v1610_v59  ;;  %v2590_v16 = vmul.f32 1.442695, %v2578_v48  ;;  %v1607_v25 = vsel %vm7467_vm7, %v7454_v3, %v1602_v6 }
 0x395   :  { %v1627_v55 = vmul.f32 %v7459_v47, %v1626_v38  ;;  %v1593_v60 = vmul.f32 %v6706_v11, %v1592_v52  ;;  %vm1615_vm6 = vweird.f32 %v7465_v23  ;;  %vm2059_vm7 = vcmp.eq.f32.partialorder %v2058_v7, 8.507059e+37 }
 0x396   :  { %3066 = vrot.lane.b32.xlu1 %v9151_v53, %s5539_s11  ;;  %v2879_v46 = vpop.xlane.xlu0 %2878  ;;  %v2036_v53 = vsub.f32 1.0, %v2035_v9  ;;  %v2045_v9 = vand.u32 2147483648, %v7287_v40  ;;  %v7519_v56 = vpop.xlane.xlu1 %2566  ;;  %v2057_v51 = vsel %vm7545_vm4, %v7403_v5, %v2053_v44  ;;  %v2061_v11 = vor.u32 1.1754944e-38, %v2060_v8  ;;  %v9190_v44 = vld [vmem:[#allocation30_spill] sm:$0xff] }
 0x397   :  { %v2895_v28 = vsub.f32 %v6722_v31, %v2879_v46  ;;  %v7488_v26 = vpop.xlane.xlu2 %2284  ;;  %v7521_v49 = vpop.eup %5352  ;;  %v1633_v5 = vand.u32 2147483647, %v7334_v57  ;;  %v1635_v43 = vand.u32 2147483648, %v7334_v57  ;;  %vm1630_vm8 = vweird.f32 %v7459_v47 }
 0x398   :  { %v2037_v37 = vmul.f32 %v7414_v27, %v2036_v53  ;;  %v1620_v53 = vand.u32 2147483648, %v7289_v10  ;;  %v2080_v31 = vmul.f32 %v7521_v49, %v7412_v24  ;;  %v2579_v38 = vsub.f32 %v9190_v44, %v7519_v56  ;;  %v9201_v10 = vld [vmem:[#allocation25_spill] sm:$0xff] }
 0x399   :  { %v2906_v34 = vmul.f32 1.442695, %v2895_v28  ;;  %v2046_v28 = vor.u32 1.1754944e-38, %v2045_v9  ;;  %v7539_v29 = vpop.eup %5354  ;;  %v2062_v9 = vsel %vm2059_vm7, %v2061_v11, %v2057_v51  ;;  %vm1629_vm9 = vweird.f32 %v7334_v57  ;;  %v9200_v51 = vld [vmem:[#allocation27_spill] sm:$0xff] }
 0x39a   :  { %4784 = vmatmul.msk.bf16.gmra.mxu3 %vm480_vm1, %v2095_v39  ;;  %v2038_v21 = vadd.f32 %v7414_v27, %v2037_v37  ;;  %v2607_v59 = vsel %vm480_vm1, %v7539_v29, 0.0  ;;  %v2081_v37 = vsub.f32 1.0, %v2080_v31  ;;  %v1628_v39 = vadd.f32 %v7459_v47, %v1627_v55  ;;  %vm7614_vm11 = vmor %vm1629_vm9, %vm1630_vm8 }
 0x39b   :  { %5356 = vpow2.f32 %v2906_v34  ;;  %v9189_v34 = vld [vmem:[#allocation24_spill] sm:$0xff]  ;;  %vm7608_vm10 = vcmp.eq.f32.partialorder %v1618_v61, 8.507059e+37  ;;  %v1621_v30 = vor.u32 1.1754944e-38, %v1620_v53  ;;  %vm7618_vm12 = vcmp.eq.f32.partialorder %v1633_v5, 8.507059e+37 }
 0x39c   :  { %v1608_v58 = vmul.f32 %v9189_v34, %v1607_v25  ;;  %v2042_v40 = vsel %vm7567_vm5, %v7414_v27, %v2038_v21  ;;  %v2082_v25 = vmul.f32 %v7521_v49, %v2081_v37  ;;  %v1632_v53 = vsel %vm7614_vm11, %v7459_v47, %v1628_v39  ;;  %v7650_v37 = vpop.f32.mrf.mxu3 }
 0x39d   :  { %v2047_v8 = vsel %vm7523_vm13, %v2046_v28, %v2042_v40  ;;  %vm7627_vm13 = vmor %vm1614_vm3, %vm1615_vm6  ;;  %v1636_v55 = vor.u32 1.1754944e-38, %v1635_v43  ;;  %v2894_v5 = vsub.f32 %v9201_v10, %v7401_v35  ;;  %v2090_v47 = vand.u32 2147483648, %v7412_v24 }
 0x39e   :  { %v7530_v46 = vpop.xlane.xlu0 %1969  ;;  %v1641_v6 = vpack.c.bf16 %v1608_v58, %v1593_v60  ;;  %v2048_v3 = vmul.f32 %v9200_v51, %v2047_v8  ;;  %v2592_v58 = vmul.f32 1.442695, %v2579_v38  ;;  %vm2085_vm15 = vweird.f32 %v7521_v49  ;;  %v9208_v51 = vld [vmem:[#allocation26_spill] sm:$0xff] }
 0x39f   :  { %5358 = vrcp.f32 %v7530_v46  ;;  %v7577_v32 = vpop.xlane.xlu2 %2572  ;;  %v2075_v35 = vand.u32 2147483648, %v7530_v46  ;;  %vm2069_vm2 = vweird.f32 %v7530_v46  ;;  %v2073_v39 = vand.u32 2147483647, %v7530_v46 }
 0x3a0   :  { %5360 = vrcp.f32 %v7488_v26  ;;  %4777 = vmatmul.msk.bf16.gmra.mxu1 %vm480_vm1, %v1641_v6  ;;  %v9202_v6 = vld [vmem:[#allocation31_spill] sm:$0xff]  ;;  %vm2084_vm3 = vweird.f32 %v7412_v24  ;;  %v2088_v8 = vand.u32 2147483647, %v7412_v24  ;;  %v2904_v28 = vmul.f32 1.442695, %v2894_v5 }
 0x3a1   :  { %2605 = vadd.xlane.f32.xlu0 %v7344_v14  ;;  %v1612_v14 = vmul.f32 %v7465_v23, %v1611_v42  ;;  %v7573_v54 = vpop.eup %5356  ;;  %5362 = vpow2.f32 %v2590_v16  ;;  %v2882_v42 = vpop.xlane.xlu1 %2881  ;;  %v2063_v16 = vmul.f32 %v9191_v63, %v2062_v9  ;;  %v1637_v9 = vsel %vm7618_vm12, %v1636_v55, %v1632_v53  ;;  %vm7677_vm5 = vmor %vm2084_vm3, %vm2085_vm15  ;;  %v9207_v53 = vld [vmem:[#allocation29_spill] sm:$0xff] }
 0x3a2   :  { %v2925_v31 = vsel %vm480_vm1, %v7573_v54, 0.0  ;;  %v1638_v55 = vmul.f32 %v9207_v53, %v1637_v9  ;;  %vm2074_vm6 = vcmp.eq.f32.partialorder %v2073_v39, 8.507059e+37  ;;  %vm2089_vm7 = vcmp.eq.f32.partialorder %v2088_v8, 8.507059e+37 }
 0x3a3   :  { %v1613_v48 = vadd.f32 %v7465_v23, %v1612_v14  ;;  %vm2324_vm11 = vweird.f32 %v7488_v26 }
 0x3a4   :  { %2608 = vadd.xlane.f32.xlu2 %v2607_v59  ;;  %v2096_v59 = vpack.c.bf16 %v2063_v16, %v2048_v3  ;;  %v7709_v9 = vpop.f32.mrf.mxu3 }
 0x3a5   :  { %v7584_v33 = vpop.eup %5358  ;;  %v1617_v11 = vsel %vm7627_vm13, %v7465_v23, %v1613_v48  ;;  %v2083_v23 = vadd.f32 %v7521_v49, %v2082_v25  ;;  %v2076_v25 = vor.u32 1.1754944e-38, %v2075_v35 }
 0x3a6   :  { %v2065_v7 = vmul.f32 %v7584_v33, %v7530_v46  ;;  %v7591_v27 = vpop.xlane.xlu0 %2281  ;;  %v7599_v52 = vpop.eup %5360  ;;  %vm2070_vm14 = vweird.f32 %v7584_v33  ;;  %v1622_v24 = vsel %vm7608_vm10, %v1621_v30, %v1617_v11 }
 0x3a7   :  { %5364 = vrcp.f32 %v7591_v27  ;;  %v7636_v14 = vpop.eup %5362  ;;  %v2320_v34 = vmul.f32 %v7599_v52, %v7488_v26  ;;  %v7663_v44 = vpop.xlane.xlu2 %2887  ;;  %vm7671_vm4 = vmor %vm2069_vm2, %vm2070_vm14  ;;  %v2087_v57 = vsel %vm7677_vm5, %v7521_v49, %v2083_v23  ;;  %v1623_v3 = vmul.f32 %v9208_v51, %v1622_v24  ;;  %v9209_v49 = vld [vmem:[#allocation13_spill] sm:$0xff] }
 0x3a8   :  { %v2066_v21 = vsub.f32 1.0, %v2065_v7  ;;  %v2896_v7 = vsub.f32 %v9202_v6, %v2882_v42  ;;  %5366 = vpow2.f32 %v2592_v58  ;;  %vm2325_vm8 = vweird.f32 %v7599_v52 }
 0x3a9   :  { %2926 = vadd.xlane.f32.xlu0 %v2925_v31  ;;  %v2610_v31 = vsel %vm480_vm1, %v7636_v14, 0.0  ;;  %v7691_v61 = vpop.xlane.xlu1 %2599  ;;  %5368 = vpow2.f32 %v2904_v28  ;;  %v1642_v58 = vpack.c.bf16 %v1638_v55, %v1623_v3  ;;  %v2315_v6 = vand.u32 2147483648, %v7591_v27  ;;  %vm7737_vm13 = vmor %vm2324_vm11, %vm2325_vm8  ;;  %v7748_v55 = vpop.f32.mrf.mxu1 }
 0x3aa   :  { %v2067_v60 = vmul.f32 %v7584_v33, %v2066_v21  ;;  %4785 = vmatmul.msk.bf16.gmra.mxu3 %vm480_vm1, %v2096_v59  ;;  %v2321_v21 = vsub.f32 1.0, %v2320_v34  ;;  %v2581_v34 = vsub.f32 %v9209_v49, %v7577_v32  ;;  %vm2309_vm10 = vweird.f32 %v7591_v27  ;;  %v9217_v49 = vld [vmem:[#allocation11_spill] sm:$0xff] }
 0x3ab   :  { %v2316_v28 = vor.u32 1.1754944e-38, %v2315_v6 }
 0x3ac   :  { %v2068_v40 = vadd.f32 %v7584_v33, %v2067_v60  ;;  %v2091_v60 = vor.u32 1.1754944e-38, %v2090_v47  ;;  %v2322_v30 = vmul.f32 %v7599_v52, %v2321_v21  ;;  %v2330_v21 = vand.u32 2147483648, %v7488_v26 }
 0x3ad   :  { %v7648_v43 = vpop.eup %5364  ;;  %v2596_v42 = vmul.f32 1.442695, %v2581_v34 }
 0x3ae   :  { %v2305_v48 = vmul.f32 %v7648_v43, %v7591_v27  ;;  %v7665_v38 = vpop.xlane.xlu0 %2884  ;;  %v2072_v63 = vsel %vm7671_vm4, %v7584_v33, %v2068_v40  ;;  %v2908_v33 = vmul.f32 1.442695, %v2896_v7  ;;  %v2092_v10 = vsel %vm2089_vm7, %v2091_v60, %v2087_v57  ;;  %v7697_v5 = vpop.eup %5366  ;;  %v9210_v40 = vld [vmem:[#allocation15_spill] sm:$0xff]  ;;  %v9211_v7 = vld [vmem:[#allocation32_spill] sm:$0xff] }
 0x3af   :  { %v2077_v11 = vsel %vm2074_vm6, %v2076_v25, %v2072_v63  ;;  %vm2310_vm9 = vweird.f32 %v7648_v43  ;;  %v2323_v39 = vadd.f32 %v7599_v52, %v2322_v30  ;;  %v2093_v32 = vmul.f32 %v9211_v7, %v2092_v10  ;;  %v7733_v24 = vpop.eup %5368 }
 0x3b0   :  { %v2306_v16 = vsub.f32 1.0, %v2305_v48  ;;  %5370 = vpow2.f32 %v2908_v33  ;;  %v2078_v59 = vmul.f32 %v9210_v40, %v2077_v11  ;;  %v2313_v48 = vand.u32 2147483647, %v7591_v27  ;;  %4778 = vmatmul.msk.bf16.gmra.mxu1 %vm480_vm1, %v1642_v58  ;;  %vm7725_vm12 = vmor %vm2309_vm10, %vm2310_vm9 }
 0x3b1   :  { %2611 = vadd.xlane.f32.xlu0 %v2610_v31  ;;  %v2613_v8 = vsel %vm480_vm1, %v7697_v5, 0.0  ;;  %v2328_v27 = vand.u32 2147483647, %v7488_v26  ;;  %v2891_v57 = vpop.xlane.xlu1 %2890  ;;  %v2327_v26 = vsel %vm7737_vm13, %v7599_v52, %v2323_v39  ;;  %v9218_v39 = vld [vmem:[#allocation14_spill] sm:$0xff] }
 0x3b2   :  { %v2307_v56 = vmul.f32 %v7648_v43, %v2306_v16  ;;  %v2097_v16 = vpack.c.bf16 %v2093_v32, %v2078_v59  ;;  %vm2314_vm14 = vcmp.eq.f32.partialorder %v2313_v48, 8.507059e+37  ;;  %v7768_v59 = vpop.f32.mrf.mxu3  ;;  %v2898_v6 = vsub.f32 %v9218_v39, %v7663_v44 }
 0x3b3   :  { %vm2329_vm15 = vcmp.eq.f32.partialorder %v2328_v27, 8.507059e+37 }
 0x3b4   :  { %v2308_v47 = vadd.f32 %v7648_v43, %v2307_v56  ;;  %v9216_v56 = vld [vmem:[#allocation10_spill] sm:$0xff] }
 0x3b5   :  { %v2899_v30 = vsub.f32 %v9216_v56, %v2891_v57 }
 0x3b6   :  { %v7705_v23 = vpop.xlane.xlu0 %2287  ;;  %v7707_v35 = vpop.xlane.xlu2 %2290  ;;  %v2312_v63 = vsel %vm7725_vm12, %v7648_v43, %v2308_v47  ;;  %v2331_v43 = vor.u32 1.1754944e-38, %v2330_v21 }
 0x3b7   :  { %5372 = vrcp.f32 %v7705_v23  ;;  %v7741_v25 = vpop.eup %5370  ;;  %v2317_v60 = vsel %vm2314_vm14, %v2316_v28, %v2312_v63  ;;  %v2912_v63 = vmul.f32 1.442695, %v2898_v6  ;;  %v7784_v28 = vpop.f32.mrf.mxu1  ;;  %vm2339_vm4 = vweird.f32 %v7705_v23 }
 0x3b8   :  { %5374 = vrcp.f32 %v7707_v35  ;;  %v2332_v3 = vsel %vm2329_vm15, %v2331_v43, %v2327_v26  ;;  %v2318_v34 = vmul.f32 %v9217_v49, %v2317_v60  ;;  %v2928_v40 = vsel %vm480_vm1, %v7741_v25, 0.0 }
 0x3b9   :  { %2614 = vadd.xlane.f32.xlu0 %v2613_v8  ;;  %5376 = vpow2.f32 %v2596_v42  ;;  %v2914_v8 = vmul.f32 1.442695, %v2899_v30  ;;  %v2345_v57 = vand.u32 2147483648, %v7705_v23  ;;  %v2360_v26 = vand.u32 2147483648, %v7707_v35 }
 0x3ba   :  { %4786 = vmatmul.msk.bf16.gmra.mxu3 %vm480_vm1, %v2097_v16  ;;  %v2343_v30 = vand.u32 2147483647, %v7705_v23  ;;  %vm2354_vm6 = vweird.f32 %v7707_v35 }
 0x3bc   :  { %3064 = vrot.lane.b32.xlu2 %v9170_v20, %s5539_s11  ;;  %v2922_v20 = vsel %vm480_vm1, %v7733_v24, 0.0  ;;  %vm2344_vm8 = vcmp.eq.f32.partialorder %v2343_v30, 8.507059e+37 }
 0x3bd   :  { %v7746_v53 = vpop.eup %5372 }
 0x3be   :  { %v7752_v33 = vpop.eup %5374  ;;  %v2335_v52 = vmul.f32 %v7746_v53, %v7705_v23  ;;  %v2570_v51 = vpop.xlane.xlu0 %2569  ;;  %vm2340_vm2 = vweird.f32 %v7746_v53 }
 0x3bf   :  { %v2350_v11 = vmul.f32 %v7752_v33, %v7707_v35  ;;  %v2580_v10 = vsub.f32 %v6779_v45, %v2570_v51  ;;  %v9219_v45 = vld [vmem:[#allocation33_spill] sm:$0xff]  ;;  %v7776_v27 = vpop.eup %5376  ;;  %vm2355_vm3 = vweird.f32 %v7752_v33  ;;  %vm7793_vm5 = vmor %vm2339_vm4, %vm2340_vm2 }
 0x3c0   :  { %v2336_v58 = vsub.f32 1.0, %v2335_v52  ;;  %v7764_v47 = vpop.xlane.xlu2 %2293  ;;  %2923 = vadd.xlane.f32.xlu1 %v2922_v20  ;;  %v2333_v48 = vmul.f32 %v9219_v45, %v2332_v3  ;;  %v2619_v43 = vsel %vm480_vm1, %v7776_v27, 0.0  ;;  %v2358_v52 = vand.u32 2147483647, %v7707_v35  ;;  %vm2356_vm7 = vmor %vm2354_vm6, %vm2355_vm3  ;;  %v7805_v3 = vpop.f32.mrf.mxu3 }
 0x3c1   :  { %v2351_v7 = vsub.f32 1.0, %v2350_v11  ;;  %v2594_v32 = vmul.f32 1.442695, %v2580_v10  ;;  %2929 = vadd.xlane.f32.xlu0 %v2928_v40  ;;  %5378 = vrcp.f32 %v7764_v47  ;;  %v2346_v10 = vor.u32 1.1754944e-38, %v2345_v57 }
 0x3c2   :  { %v2337_v21 = vmul.f32 %v7746_v53, %v2336_v58  ;;  %v2424_v42 = vpack.c.bf16 %v2333_v48, %v2318_v34  ;;  %v2361_v20 = vor.u32 1.1754944e-38, %v2360_v26  ;;  %vm2359_vm9 = vcmp.eq.f32.partialorder %v2358_v52, 8.507059e+37 }
 0x3c3   :  { %v2352_v46 = vmul.f32 %v7752_v33, %v2351_v7  ;;  %5380 = vpow2.f32 %v2594_v32  ;;  %vm2369_vm11 = vweird.f32 %v7764_v47  ;;  %v2375_v30 = vand.u32 2147483648, %v7764_v47 }
 0x3c4   :  { %5382 = vpow2.f32 %v2914_v8  ;;  %v2338_v44 = vadd.f32 %v7746_v53, %v2337_v21  ;;  %4791 = vmatmul.msk.bf16.vlgmr.msrb.gmra.mxu1 %vm480_vm1, %v2424_v42 }
 0x3c5   :  { %v2353_v16 = vadd.f32 %v7752_v33, %v2352_v46  ;;  %5384 = vpow2.f32 %v2912_v63  ;;  %v9222_v46 = vld [vmem:[#allocation12_spill] sm:$0xff] }
 0x3c6   :  { %v7782_v31 = vpop.xlane.xlu0 %2602  ;;  %v2342_v11 = vsel %vm7793_vm5, %v7746_v53, %v2338_v44  ;;  %v7819_v53 = vpop.f32.mrf.mxu1  ;;  %v2897_v42 = vsub.f32 %v9222_v46, %v7665_v38 }
 0x3c7   :  { %v7791_v60 = vpop.eup %5378  ;;  %v2357_v23 = vsel %vm2356_vm7, %v7752_v33, %v2353_v16  ;;  %v2347_v58 = vsel %vm2344_vm8, %v2346_v10, %v2342_v11  ;;  %v2373_v11 = vand.u32 2147483647, %v7764_v47 }
 0x3c8   :  { %2620 = vadd.xlane.f32.xlu1 %v2619_v43  ;;  %v2365_v34 = vmul.f32 %v7791_v60, %v7764_v47  ;;  %v2362_v40 = vsel %vm2359_vm9, %v2361_v20, %v2357_v23  ;;  %v2348_v45 = vmul.f32 %v6968_v19, %v2347_v58  ;;  %v7834_v63 = vpop.f32.mrf.mxu3  ;;  %v2910_v57 = vmul.f32 1.442695, %v2897_v42 }
 0x3c9   :  { %v7801_v51 = vpop.eup %5380  ;;  %v2363_v48 = vmul.f32 %v6980_v4, %v2362_v40  ;;  %vm2370_vm10 = vweird.f32 %v7791_v60  ;;  %vm2374_vm2 = vcmp.eq.f32.partialorder %v2373_v11, 8.507059e+37 }
 0x3ca   :  { %v2616_v35 = vsel %vm480_vm1, %v7801_v51, 0.0  ;;  %v7813_v49 = vpop.eup %5382  ;;  %v2366_v32 = vsub.f32 1.0, %v2365_v34  ;;  %vm7850_vm13 = vmor %vm2369_vm11, %vm2370_vm10 }
 0x3cb   :  { %2617 = vadd.xlane.f32.xlu0 %v2616_v35  ;;  %v7817_v6 = vpop.eup %5384  ;;  %v2937_v7 = vsel %vm480_vm1, %v7813_v49, 0.0  ;;  %v2425_v44 = vpack.c.bf16 %v2363_v48, %v2348_v45 }
 0x3cc   :  { %v2934_v21 = vsel %vm480_vm1, %v7817_v6, 0.0  ;;  %v2367_v19 = vmul.f32 %v7791_v60, %v2366_v32  ;;  %v2376_v32 = vor.u32 1.1754944e-38, %v2375_v30 }
 0x3ce   :  { %v2297_v39 = vpop.xlane.xlu0 %2296  ;;  %v7821_v33 = vpop.xlane.xlu2 %2299  ;;  %v2368_v43 = vadd.f32 %v7791_v60, %v2367_v19 }
 0x3cf   :  { %5386 = vrcp.f32 %v2297_v39  ;;  %v7847_v52 = vpop.f32.mrf.mxu1  ;;  %v2390_v35 = vand.u32 2147483648, %v2297_v39  ;;  %vm2384_vm14 = vweird.f32 %v2297_v39  ;;  %v2388_v20 = vand.u32 2147483647, %v2297_v39 }
 0x3d0   :  { %2938 = vadd.xlane.f32.xlu1 %v2937_v7  ;;  %v7827_v8 = vpop.xlane.xlu1 %2302  ;;  %5388 = vrcp.f32 %v7821_v33  ;;  %v2372_v58 = vsel %vm7850_vm13, %v7791_v60, %v2368_v43  ;;  %v7863_v45 = vpop.f32.mrf.mxu3  ;;  %vm2399_vm6 = vweird.f32 %v7821_v33 }
 0x3d1   :  { %5390 = vrcp.f32 %v7827_v8  ;;  %vm2389_vm3 = vcmp.eq.f32.partialorder %v2388_v20, 8.507059e+37  ;;  %vm2414_vm8 = vweird.f32 %v7827_v8 }
 0x3d2   :  { %5392 = vpow2.f32 %v2910_v57 }
 0x3d3   :  { %2935 = vadd.xlane.f32.xlu0 %v2934_v21  ;;  %5394 = vrcp.f32 %v7782_v31  ;;  %v2377_v21 = vsel %vm2374_vm2, %v2376_v32, %v2372_v58  ;;  %vm2627_vm2 = vweird.f32 %v7691_v61 }
 0x3d4   :  { %4792 = vmatmul.msk.bf16.gmra.mxu1 %vm480_vm1, %v2425_v44  ;;  %5396 = vrcp.f32 %v7691_v61 }
 0x3d5   :  { %v5387_v4 = vpop.eup %5386 }
 0x3d6   :  { %v2380_v16 = vmul.f32 %v5387_v4, %v2297_v39  ;;  %v7838_v26 = vpop.eup %5388  ;;  %vm2385_vm12 = vweird.f32 %v5387_v4  ;;  %v7854_v34 = vpop.xlane.xlu2 %2917  ;;  %v2391_v39 = vor.u32 1.1754944e-38, %v2390_v35 }
 0x3d7   :  { %v7843_v56 = vpop.eup %5390  ;;  %v2395_v47 = vmul.f32 %v7838_v26, %v7821_v33  ;;  %vm2386_vm15 = vmor %vm2384_vm14, %vm2385_vm12  ;;  %v7871_v43 = vpop.f32.mrf.mxu1  ;;  %vm2400_vm4 = vweird.f32 %v7838_v26  ;;  %vm2642_vm14 = vweird.f32 %v7782_v31  ;;  %5398 = vrcp.f32 %v7854_v34 }
 0x3d8   :  { %v2381_v38 = vsub.f32 1.0, %v2380_v16  ;;  %v2410_v7 = vmul.f32 %v7843_v56, %v7827_v8  ;;  %v7866_v19 = vpop.eup %5392  ;;  %v2378_v16 = vmul.f32 %v7028_v1, %v2377_v21  ;;  %v7886_v20 = vpop.f32.mrf.mxu3  ;;  %vm2415_vm5 = vweird.f32 %v7843_v56  ;;  %vm7905_vm7 = vmor %vm2399_vm6, %vm2400_vm4 }
 0x3d9   :  { %v2396_v46 = vsub.f32 1.0, %v2395_v47  ;;  %v7875_v11 = vpop.eup %5394  ;;  %v2931_v10 = vsel %vm480_vm1, %v7866_v19, 0.0  ;;  %vm2416_vm9 = vmor %vm2414_vm8, %vm2415_vm5  ;;  %vm2945_vm8 = vweird.f32 %v7854_v34 }
 0x3da   :  { %v2382_v23 = vmul.f32 %v5387_v4, %v2381_v38  ;;  %v2411_v60 = vsub.f32 1.0, %v2410_v7  ;;  %v7881_v1 = vpop.eup %5396  ;;  %vm2643_vm12 = vweird.f32 %v7875_v11 }
 0x3db   :  { %v2623_v7 = vmul.f32 %v7881_v1, %v7691_v61  ;;  %vm2628_vm13 = vweird.f32 %v7881_v1 }
 0x3dc   :  { %v2383_v40 = vadd.f32 %v5387_v4, %v2382_v23  ;;  %v2412_v38 = vmul.f32 %v7843_v56, %v2411_v60  ;;  %v5050_v23 = vpack.i.bf16 %v7784_v28, %v7748_v55  ;;  %v2638_v55 = vmul.f32 %v7875_v11, %v7782_v31 }
 0x3de   :  { %v2387_v48 = vsel %vm2386_vm15, %v5387_v4, %v2383_v40  ;;  %v2397_v4 = vmul.f32 %v7838_v26, %v2396_v46  ;;  %v2751_v35 = vpop.permute.xlu2 %2750  ;;  %v2413_v58 = vadd.f32 %v7843_v56, %v2412_v38  ;;  %v7894_v40 = vpop.xlane.xlu1 %2920  ;;  %v2639_v21 = vsub.f32 1.0, %v2638_v55  ;;  %vm2644_vm15 = vmor %vm2642_vm14, %vm2643_vm12 }
 0x3df   :  { %v2392_v42 = vsel %vm2389_vm3, %v2391_v39, %v2387_v48  ;;  %v2403_v48 = vand.u32 2147483647, %v7821_v33  ;;  %v2418_v39 = vand.u32 2147483647, %v7827_v8  ;;  %vm2629_vm3 = vmor %vm2627_vm2, %vm2628_vm13  ;;  %5400 = vrcp.f32 %v7894_v40 }
 0x3e0   :  { %v2393_v57 = vmul.f32 %v7072_v17, %v2392_v42  ;;  %v5055_v17 = vpack.i.bf16 %v7834_v63, %v7805_v3  ;;  %v2398_v28 = vadd.f32 %v7838_v26, %v2397_v4  ;;  %v2405_v3 = vand.u32 2147483648, %v7821_v33  ;;  %v7918_v33 = vpop.f32.mrf.mxu3 }
 0x3e1   :  { %v2753_v44 = vpop.permute.xlu0 %2752  ;;  %v2420_v63 = vand.u32 2147483648, %v7827_v8  ;;  %v2417_v60 = vsel %vm2416_vm9, %v7843_v56, %v2413_v58  ;;  %vm2404_vm10 = vcmp.eq.f32.partialorder %v2403_v48, 8.507059e+37  ;;  %vm2419_vm11 = vcmp.eq.f32.partialorder %v2418_v39, 8.507059e+37 }
 0x3e2   :  { %2774 = vmatpush.bf16.msrb.mxu3 %v2753_v44  ;;  %v2426_v30 = vpack.c.bf16 %v2393_v57, %v2378_v16  ;;  %v2402_v46 = vsel %vm7905_vm7, %v7838_v26, %v2398_v28  ;;  %v2406_v42 = vor.u32 1.1754944e-38, %v2405_v3  ;;  %v7916_v16 = vpop.f32.mrf.mxu1  ;;  %v2624_v57 = vsub.f32 1.0, %v2623_v7 }
 0x3e3   :  { %v2421_v44 = vor.u32 1.1754944e-38, %v2420_v63  ;;  %v2640_v38 = vmul.f32 %v7875_v11, %v2639_v21  ;;  %v2646_v28 = vand.u32 2147483647, %v7782_v31  ;;  %v5065_v39 = vpack.i.bf16 %v7847_v52, %v7819_v53 }
 0x3e4   :  { %4793 = vmatmul.msk.bf16.gmra.mxu1 %vm480_vm1, %v2426_v30  ;;  %v2407_v4 = vsel %vm2404_vm10, %v2406_v42, %v2402_v46  ;;  %v9227_v46 = vld [vmem:[#allocation17_spill] sm:$0xff]  ;;  %vm2960_vm10 = vweird.f32 %v7894_v40 }
 0x3e5   :  { %2932 = vadd.xlane.f32.xlu2 %v2931_v10  ;;  %v2422_v8 = vsel %vm2419_vm11, %v2421_v44, %v2417_v60  ;;  %v2408_v26 = vmul.f32 %v7082_v15, %v2407_v4  ;;  %v2648_v10 = vand.u32 2147483648, %v7782_v31  ;;  %v2633_v15 = vand.u32 2147483648, %v7691_v61 }
 0x3e6   :  { %2775 = vmatpush.bf16.msrb.mxu3 %v2751_v35  ;;  %v2423_v56 = vmul.f32 %v7088_v18, %v2422_v8  ;;  %v2641_v35 = vadd.f32 %v7875_v11, %v2640_v38  ;;  %v2631_v18 = vand.u32 2147483647, %v7691_v61  ;;  %vm2647_vm4 = vcmp.eq.f32.partialorder %v2646_v28, 8.507059e+37 }
 0x3e7   :  { %5051 = vrot.lane.b32.xlu0 %v5050_v23, %s5539_s11  ;;  %v2625_v23 = vmul.f32 %v7881_v1, %v2624_v57  ;;  %v2634_v32 = vor.u32 1.1754944e-38, %v2633_v15  ;;  %v5399_v57 = vpop.eup %5398  ;;  %v2951_v15 = vand.u32 2147483648, %v7854_v34 }
 0x3e8   :  { %v2427_v58 = vpack.c.bf16 %v2423_v56, %v2408_v26  ;;  %v2645_v3 = vsel %vm2644_vm15, %v7875_v11, %v2641_v35  ;;  %v7938_v7 = vpop.f32.mrf.mxu3  ;;  %vm2632_vm5 = vcmp.eq.f32.partialorder %v2631_v18, 8.507059e+37  ;;  %v5401_v4 = vpop.eup %5400  ;;  %v2941_v52 = vmul.f32 %v5399_v57, %v7854_v34 }
 0x3e9   :  { %5056 = vrot.lane.b32.xlu1 %v5055_v17, %s5537_s9  ;;  %v2749_v47 = vpop.permute.xlu0 %2748  ;;  %v2626_v55 = vadd.f32 %v7881_v1, %v2625_v23  ;;  %v2956_v8 = vmul.f32 %v5401_v4, %v7894_v40  ;;  %vm2946_vm6 = vweird.f32 %v5399_v57  ;;  %vm2961_vm7 = vweird.f32 %v5401_v4 }
 0x3ea   :  { %2776 = vmatpush.bf16.msrb.mxu3 %v2749_v47  ;;  %v7928_v17 = vpop.f32.mrf.mxu1  ;;  %v2649_v47 = vor.u32 1.1754944e-38, %v2648_v10  ;;  %v2942_v23 = vsub.f32 1.0, %v2941_v52  ;;  %v2966_v18 = vand.u32 2147483648, %v7894_v40  ;;  %vm7958_vm9 = vmor %vm2945_vm8, %vm2946_vm6 }
 0x3eb   :  { %v2630_v31 = vsel %vm2629_vm3, %v7881_v1, %v2626_v55  ;;  %v2957_v26 = vsub.f32 1.0, %v2956_v8  ;;  %vm2962_vm11 = vmor %vm2960_vm10, %vm2961_vm7 }
 0x3ec   :  { %v2650_v48 = vsel %vm2647_vm4, %v2649_v47, %v2645_v3  ;;  %v2635_v61 = vsel %vm2632_vm5, %v2634_v32, %v2630_v31  ;;  %v2943_v10 = vmul.f32 %v5399_v57, %v2942_v23  ;;  %v2949_v47 = vand.u32 2147483647, %v7854_v34 }
 0x3ed   :  { %v2651_v21 = vmul.f32 %v6989_v0, %v2650_v48  ;;  %v2636_v1 = vmul.f32 %v9227_v46, %v2635_v61  ;;  %v2958_v55 = vmul.f32 %v5401_v4, %v2957_v26  ;;  %v2964_v31 = vand.u32 2147483647, %v7894_v40 }
 0x3ee   :  { %v2944_v28 = vadd.f32 %v5399_v57, %v2943_v10  ;;  %v5070_v48 = vpack.i.bf16 %v7886_v20, %v7863_v45  ;;  %v2967_v46 = vor.u32 1.1754944e-38, %v2966_v18  ;;  %vm2950_vm12 = vcmp.eq.f32.partialorder %v2949_v47, 8.507059e+37 }
 0x3ef   :  { %v2742_v44 = vpack.c.bf16 %v2651_v21, %v2636_v1  ;;  %v2952_v21 = vor.u32 1.1754944e-38, %v2951_v15  ;;  %vm2965_vm13 = vcmp.eq.f32.partialorder %v2964_v31, 8.507059e+37  ;;  %v5085_v18 = vpack.i.bf16 %v7938_v7, %v7918_v33 }
 0x3f0   :  { %v3071_v30 = vpop.permute.xlu1 %3070 }
 0x3f1   :  { %3092 = vmatpush.bf16.msra.mxu1 %v3071_v30 }
 0x3f2   :  { %v7944_v11 = vpop.f32.mrf.mxu1 }
 0x3f4   :  { %4794 = vmatmul.msk.bf16.gmra.mxu1 %vm480_vm1, %v2427_v58  ;;  %v2959_v58 = vadd.f32 %v5401_v4, %v2958_v55 }
 0x3f6   :  { %v2963_v61 = vsel %vm2962_vm11, %v5401_v4, %v2959_v58  ;;  %v5080_v4 = vpack.i.bf16 %v7916_v16, %v7871_v43 }
 0x3f7   :  { %v2968_v40 = vsel %vm2965_vm13, %v2967_v46, %v2963_v61 }
 0x3f8   :  { %v3069_v63 = vpop.permute.xlu1 %3068  ;;  %v2969_v20 = vmul.f32 %v7113_v36, %v2968_v40 }
 0x3f9   :  { %3093 = vmatpush.bf16.msra.mxu1 %v3069_v63  ;;  %v1373_v42 = vpop.f32.mrf.mxu3 }
 0x3fa   :  { %v1676_v53 = vpop.f32.mrf.mxu1 }
 0x3fd   :  { %5066 = vrot.lane.b32.xlu2 %v5065_v39, %s5539_s11  ;;  %v2948_v39 = vsel %vm7958_vm9, %v5399_v57, %v2944_v28 }
 0x3fe   :  { %v2953_v34 = vsel %vm2950_vm12, %v2952_v21, %v2948_v39 }
 0x3ff   :  { %v2954_v45 = vmul.f32 %v7108_v12, %v2953_v34  ;;  %v5095_v34 = vpack.i.bf16 %v7944_v11, %v7928_v17 }
 0x400   :  { %v2747_v60 = vpop.permute.xlu1 %2746 }
 0x401   :  { %2777 = vmatpush.bf16.msrb.mxu3 %v2747_v60  ;;  %v1375_v38 = vpop.f32.mrf.mxu3  ;;  %v3060_v23 = vpack.c.bf16 %v2969_v20, %v2954_v45 }
 0x402   :  { %v5100_v30 = vpack.i.bf16 %v1375_v38, %v1373_v42  ;;  %v1678_v56 = vpop.f32.mrf.mxu1 }
 0x403   :  { %v5060_v35 = vpack.i.bf16 %v1678_v56, %v1676_v53 }
 0x404   :  { %4799 = vmatmul.msk.bf16.vlgmr.msrb.gmra.mxu3 %vm480_vm1, %v2742_v44 }
 0x405   :  { %5101 = vrot.lane.b32.xlu2 %v5100_v30, %s5537_s9  ;;  %5061 = vrot.lane.b32.xlu0 %v5060_v35, %s5538_s10 }
 0x408   :  { %v3067_v0 = vpop.permute.xlu1 %3066 }
 0x409   :  { %3094 = vmatpush.bf16.msra.mxu1 %v3067_v0 }
 0x40c   :  { %v1681_v32 = vpop.f32.mrf.mxu1 }
 0x40d   :  { %5071 = vrot.lane.b32.xlu0 %v5070_v48, %s5537_s9 }
 0x414   :  { %v2606_v3 = vpop.xlane.xlu0 %2605  ;;  %v1683_v57 = vpop.f32.mrf.mxu1 }
 0x415   :  { %5402 = vrcp.f32 %v2606_v3  ;;  %v5075_v53 = vpack.i.bf16 %v1683_v57, %v1681_v32  ;;  %5081 = vrot.lane.b32.xlu0 %v5080_v4, %s5539_s11  ;;  %v2663_v26 = vand.u32 2147483648, %v2606_v3  ;;  %vm2657_vm15 = vweird.f32 %v2606_v3 }
 0x416   :  { %v2661_v36 = vand.u32 2147483647, %v2606_v3 }
 0x417   :  { %v2609_v1 = vpop.xlane.xlu2 %2608  ;;  %5076 = vrot.lane.b32.xlu1 %v5075_v53, %s5538_s10  ;;  %v2664_v58 = vor.u32 1.1754944e-38, %v2663_v26 }
 0x418   :  { %5404 = vrcp.f32 %v2609_v1  ;;  %v2676_v16 = vand.u32 2147483647, %v2609_v1  ;;  %v2678_v35 = vand.u32 2147483648, %v2609_v1  ;;  %vm2662_vm4 = vcmp.eq.f32.partialorder %v2661_v36, 8.507059e+37 }
 0x419   :  { %vm2672_vm5 = vweird.f32 %v2609_v1 }
 0x41a   :  { %v2679_v63 = vor.u32 1.1754944e-38, %v2678_v35  ;;  %vm2677_vm7 = vcmp.eq.f32.partialorder %v2676_v16, 8.507059e+37 }
 0x41b   :  { %v5403_v60 = vpop.eup %5402 }
 0x41c   :  { %v2653_v42 = vmul.f32 %v5403_v60, %v2606_v3  ;;  %v7970_v44 = vpop.xlane.xlu0 %2926  ;;  %vm2658_vm14 = vweird.f32 %v5403_v60 }
 0x41d   :  { %vm7978_vm2 = vmor %vm2657_vm15, %vm2658_vm14  ;;  %5406 = vrcp.f32 %v7970_v44  ;;  %v1686_v15 = vpop.f32.mrf.mxu1  ;;  %vm2990_vm10 = vweird.f32 %v7970_v44  ;;  %v2994_v16 = vand.u32 2147483647, %v7970_v44  ;;  %v2996_v35 = vand.u32 2147483648, %v7970_v44 }
 0x41e   :  { %v2654_v52 = vsub.f32 1.0, %v2653_v42  ;;  %v5405_v8 = vpop.eup %5404 }
 0x41f   :  { %v2668_v38 = vmul.f32 %v5405_v8, %v2609_v1  ;;  %v3065_v30 = vpop.permute.xlu2 %3064  ;;  %vm2673_vm3 = vweird.f32 %v5405_v8  ;;  %5086 = vrot.lane.b32.xlu1 %v5085_v18, %s5537_s9 }
 0x420   :  { %v2655_v0 = vmul.f32 %v5403_v60, %v2654_v52  ;;  %3095 = vmatpush.bf16.msra.mxu1 %v3065_v30  ;;  %vm2674_vm6 = vmor %vm2672_vm5, %vm2673_vm3  ;;  %v8011_v30 = vpop.f32.mrf.mxu3 }
 0x421   :  { %v2669_v56 = vsub.f32 1.0, %v2668_v38 }
 0x422   :  { %v2656_v12 = vadd.f32 %v5403_v60, %v2655_v0 }
 0x423   :  { %v2670_v55 = vmul.f32 %v5405_v8, %v2669_v56  ;;  %4807 = vmatmul.msk.bf16.vlgmr.msra.gmra.mxu1 %vm480_vm1, %v3060_v23  ;;  %v7992_v48 = vpop.eup %5406 }
 0x424   :  { %v2660_v10 = vsel %vm7978_vm2, %v5403_v60, %v2656_v12  ;;  %v7986_v28 = vpop.xlane.xlu0 %2611  ;;  %v2986_v40 = vmul.f32 %v7992_v48, %v7970_v44  ;;  %vm2991_vm12 = vweird.f32 %v7992_v48 }
 0x425   :  { %5408 = vrcp.f32 %v7986_v28  ;;  %v2671_v3 = vadd.f32 %v5405_v8, %v2670_v55  ;;  %v2665_v47 = vsel %vm2662_vm4, %v2664_v58, %v2660_v10  ;;  %v1688_v1 = vpop.f32.mrf.mxu1  ;;  %vm2687_vm11 = vweird.f32 %v7986_v28  ;;  %vm8039_vm2 = vmor %vm2990_vm10, %vm2991_vm12  ;;  %v5001_v55 = vld [vmem:[%s9022_s2 + $0x30] sm:$0xff] }
 0x426   :  { %v2666_v39 = vmul.f32 %v7305_v62, %v2665_v47  ;;  %v5090_v60 = vpack.i.bf16 %v1688_v1, %v1686_v15  ;;  %v2987_v62 = vsub.f32 1.0, %v2986_v40  ;;  %v2691_v23 = vand.u32 2147483647, %v7986_v28 }
 0x427   :  { %v2675_v31 = vsel %vm2674_vm6, %v5405_v8, %v2671_v3  ;;  %5096 = vrot.lane.b32.xlu1 %v5095_v34, %s5539_s11  ;;  %v2693_v8 = vand.u32 2147483648, %v7986_v28  ;;  %vm2995_vm6 = vcmp.eq.f32.partialorder %v2994_v16, 8.507059e+37 }
 0x428   :  { %v2680_v32 = vsel %vm2677_vm7, %v2679_v63, %v2675_v31  ;;  %5091 = vrot.lane.b32.xlu0 %v5090_v60, %s5538_s10  ;;  %v2988_v11 = vmul.f32 %v7992_v48, %v2987_v62  ;;  %vm2692_vm3 = vcmp.eq.f32.partialorder %v2691_v23, 8.507059e+37  ;;  %v8052_v62 = vpop.f32.mrf.mxu3 }
 0x429   :  { %v2681_v61 = vmul.f32 %v7539_v29, %v2680_v32  ;;  %v2694_v15 = vor.u32 1.1754944e-38, %v2693_v8 }
 0x42a   :  { %v2989_v36 = vadd.f32 %v7992_v48, %v2988_v11 }
 0x42b   :  { %v5409_v21 = vpop.eup %5408  ;;  %v2743_v46 = vpack.c.bf16 %v2681_v61, %v2666_v39 }
 0x42c   :  { %v2683_v33 = vmul.f32 %v5409_v21, %v7986_v28  ;;  %v2615_v7 = vpop.xlane.xlu0 %2614  ;;  %vm2688_vm8 = vweird.f32 %v5409_v21  ;;  %v2993_v32 = vsel %vm8039_vm2, %v7992_v48, %v2989_v36 }
 0x42d   :  { %5410 = vrcp.f32 %v2615_v7  ;;  %4800 = vmatmul.msk.bf16.gmra.mxu3 %vm480_vm1, %v2743_v46  ;;  %v1691_v17 = vpop.f32.mrf.mxu1  ;;  %v2708_v38 = vand.u32 2147483648, %v2615_v7  ;;  %v2706_v26 = vand.u32 2147483647, %v2615_v7  ;;  %vm8018_vm13 = vmor %vm2687_vm11, %vm2688_vm8  ;;  %vm2702_vm14 = vweird.f32 %v2615_v7 }
 0x42e   :  { %v2684_v42 = vsub.f32 1.0, %v2683_v33  ;;  %v2997_v46 = vor.u32 1.1754944e-38, %v2996_v35 }
 0x42f   :  { %v2709_v3 = vor.u32 1.1754944e-38, %v2708_v38  ;;  %vm2707_vm4 = vcmp.eq.f32.partialorder %v2706_v26, 8.507059e+37 }
 0x430   :  { %v2685_v45 = vmul.f32 %v5409_v21, %v2684_v42  ;;  %v2998_v42 = vsel %vm2995_vm6, %v2997_v46, %v2993_v32  ;;  %v5000_v32 = vld [vmem:[%s9022_s2 + $0x28] sm:$0xff] }
 0x431   :  { %v2999_v8 = vmul.f32 %v7573_v54, %v2998_v42 }
 0x432   :  { %v2686_v52 = vadd.f32 %v5409_v21, %v2685_v45 }
 0x433   :  { %v5411_v29 = vpop.eup %5410  ;;  %v8004_v20 = vpop.xlane.xlu1 %2923 }
 0x434   :  { %v2698_v57 = vmul.f32 %v5411_v29, %v2615_v7  ;;  %5412 = vrcp.f32 %v8004_v20  ;;  %v8008_v53 = vpop.xlane.xlu0 %2929  ;;  %vm2703_vm9 = vweird.f32 %v5411_v29  ;;  %v2690_v10 = vsel %vm8018_vm13, %v5409_v21, %v2686_v52 }
 0x435   :  { %vm8027_vm15 = vmor %vm2702_vm14, %vm2703_vm9  ;;  %v1693_v47 = vpop.f32.mrf.mxu1  ;;  %v2695_v21 = vsel %vm2692_vm3, %v2694_v15, %v2690_v10  ;;  %v2981_v44 = vand.u32 2147483648, %v8004_v20  ;;  %v2979_v1 = vand.u32 2147483647, %v8004_v20  ;;  %vm2975_vm7 = vweird.f32 %v8004_v20 }
 0x436   :  { %v2699_v4 = vsub.f32 1.0, %v2698_v57  ;;  %v5105_v39 = vpack.i.bf16 %v1693_v47, %v1691_v17  ;;  %v2696_v48 = vmul.f32 %v7636_v14, %v2695_v21 }
 0x437   :  { %v2982_v45 = vor.u32 1.1754944e-38, %v2981_v44  ;;  %vm2980_vm9 = vcmp.eq.f32.partialorder %v2979_v1, 8.507059e+37 }
 0x438   :  { %v2700_v0 = vmul.f32 %v5411_v29, %v2699_v4  ;;  %5106 = vrot.lane.b32.xlu0 %v5105_v39, %s5538_s10 }
 0x43a   :  { %v5413_v12 = vpop.eup %5412  ;;  %v2701_v43 = vadd.f32 %v5411_v29, %v2700_v0 }
 0x43b   :  { %v2971_v28 = vmul.f32 %v5413_v12, %v8004_v20  ;;  %v8032_v58 = vpop.xlane.xlu1 %2620  ;;  %vm2976_vm5 = vweird.f32 %v5413_v12 }
 0x43c   :  { %v2705_v18 = vsel %vm8027_vm15, %v5411_v29, %v2701_v43  ;;  %5414 = vrcp.f32 %v8032_v58  ;;  %vm2977_vm8 = vmor %vm2975_vm7, %vm2976_vm5  ;;  %v2738_v38 = vand.u32 2147483648, %v8032_v58  ;;  %v2736_v23 = vand.u32 2147483647, %v8032_v58  ;;  %v5002_v43 = vld [vmem:[%s9022_s2 + $0x38] sm:$0xff] }
 0x43d   :  { %v2972_v31 = vsub.f32 1.0, %v2971_v28  ;;  %v2710_v33 = vsel %vm2707_vm4, %v2709_v3, %v2705_v18  ;;  %vm2732_vm11 = vweird.f32 %v8032_v58  ;;  %3310 = vmatpush.bf16.msra.mxu2 %v5002_v43  ;;  %vm3005_vm5 = vweird.f32 %v8008_v53 }
 0x43e   :  { %v2618_v61 = vpop.xlane.xlu0 %2617  ;;  %v2711_v40 = vmul.f32 %v7697_v5, %v2710_v33  ;;  %v2739_v10 = vor.u32 1.1754944e-38, %v2738_v38  ;;  %vm2737_vm14 = vcmp.eq.f32.partialorder %v2736_v23, 8.507059e+37 }
 0x43f   :  { %v2973_v7 = vmul.f32 %v5413_v12, %v2972_v31  ;;  %5416 = vrcp.f32 %v2618_v61  ;;  %v2723_v56 = vand.u32 2147483648, %v2618_v61  ;;  %v2721_v16 = vand.u32 2147483647, %v2618_v61 }
 0x440   :  { %v2744_v17 = vpack.c.bf16 %v2711_v40, %v2696_v48  ;;  %5418 = vrcp.f32 %v8008_v53  ;;  %vm2717_vm15 = vweird.f32 %v2618_v61 }
 0x441   :  { %v2974_v34 = vadd.f32 %v5413_v12, %v2973_v7  ;;  %v2461_v4 = vpop.f32.mrf.mxu1  ;;  %v2724_v15 = vor.u32 1.1754944e-38, %v2723_v56  ;;  %vm2722_vm3 = vcmp.eq.f32.partialorder %v2721_v16, 8.507059e+37  ;;  %3311 = vmatpush.bf16.msra.mxu2 %v5001_v55  ;;  %v4999_v7 = vld [vmem:[%s9022_s2 + $0x20] sm:$0xff] }
 0x442   :  { %v5415_v60 = vpop.eup %5414  ;;  %4801 = vmatmul.msk.bf16.gmra.mxu3 %vm480_vm1, %v2744_v17  ;;  %v4996_v17 = vld [vmem:[%s9022_s2 + $0x8] sm:$0xff] }
 0x443   :  { %v2978_v29 = vsel %vm2977_vm8, %v5413_v12, %v2974_v34  ;;  %v2728_v57 = vmul.f32 %v5415_v60, %v8032_v58  ;;  %vm2733_vm10 = vweird.f32 %v5415_v60  ;;  %v8075_v58 = vpop.f32.mrf.mxu3  ;;  %v8095_v48 = vpop.xlane.xlu1 %2938 }
 0x444   :  { %v2983_v20 = vsel %vm2980_vm9, %v2982_v45, %v2978_v29  ;;  %vm8064_vm12 = vmor %vm2732_vm11, %vm2733_vm10 }
 0x445   :  { %v5417_v11 = vpop.eup %5416  ;;  %v2729_v52 = vsub.f32 1.0, %v2728_v57  ;;  %v2984_v5 = vmul.f32 %v7733_v24, %v2983_v20  ;;  %3312 = vmatpush.bf16.msra.mxu2 %v5000_v32 }
 0x446   :  { %v2713_v14 = vmul.f32 %v5417_v11, %v2618_v61  ;;  %vm2718_vm13 = vweird.f32 %v5417_v11  ;;  %v5419_v21 = vpop.eup %5418  ;;  %v8088_v1 = vpop.xlane.xlu0 %2935 }
 0x447   :  { %v2730_v0 = vmul.f32 %v5415_v60, %v2729_v52  ;;  %v3061_v12 = vpack.c.bf16 %v2999_v8, %v2984_v5  ;;  %vm2719_vm2 = vmor %vm2717_vm15, %vm2718_vm13  ;;  %v3001_v44 = vmul.f32 %v5419_v21, %v8008_v53  ;;  %5420 = vrcp.f32 %v8088_v1 }
 0x448   :  { %v2714_v26 = vsub.f32 1.0, %v2713_v14  ;;  %vm3006_vm4 = vweird.f32 %v5419_v21  ;;  %v3011_v5 = vand.u32 2147483648, %v8008_v53 }
 0x449   :  { %v2731_v36 = vadd.f32 %v5415_v60, %v2730_v0  ;;  %4808 = vmatmul.msk.bf16.gmra.mxu1 %vm480_vm1, %v3061_v12  ;;  %v2463_v18 = vpop.f32.mrf.mxu1  ;;  %3313 = vmatpush.bf16.msra.mxu2 %v4999_v7  ;;  %vm8112_vm6 = vmor %vm3005_vm5, %vm3006_vm4  ;;  %v3009_v0 = vand.u32 2147483647, %v8008_v53  ;;  %v4995_v53 = vld [vmem:[%s9022_s2] sm:$0xff]  ;;  %v3041_v7 = vand.u32 2147483648, %v8088_v1 }
 0x44a   :  { %v2715_v54 = vmul.f32 %v5417_v11, %v2714_v26  ;;  %v5110_v47 = vpack.i.bf16 %v2463_v18, %v2461_v4 }
 0x44b   :  { %v2735_v35 = vsel %vm8064_vm12, %v5415_v60, %v2731_v36  ;;  %v8090_v34 = vpop.f32.mrf.mxu3  ;;  %v4997_v60 = vld [vmem:[%s9022_s2 + $0x10] sm:$0xff]  ;;  %vm3010_vm8 = vcmp.eq.f32.partialorder %v3009_v0, 8.507059e+37 }
 0x44c   :  { %v2716_v28 = vadd.f32 %v5417_v11, %v2715_v54  ;;  %v2740_v3 = vsel %vm2737_vm14, %v2739_v10, %v2735_v35  ;;  %5111 = vrot.lane.b32.xlu1 %v5110_v47, %s5539_s11  ;;  %v3012_v54 = vor.u32 1.1754944e-38, %v3011_v5  ;;  %vm3035_vm14 = vweird.f32 %v8088_v1 }
 0x44d   :  { %v2741_v61 = vmul.f32 %v7776_v27, %v2740_v3  ;;  %v4998_v27 = vld [vmem:[%s9022_s2 + $0x18] sm:$0xff]  ;;  %v8102_v57 = vpop.eup %5420 }
 0x44e   :  { %v2720_v63 = vsel %vm2719_vm2, %v5417_v11, %v2716_v28  ;;  %3314 = vmatpush.bf16.msra.mxu2 %v4998_v27  ;;  %v3031_v38 = vmul.f32 %v8102_v57, %v8088_v1  ;;  %vm3036_vm12 = vweird.f32 %v8102_v57  ;;  %vm3050_vm2 = vweird.f32 %v8095_v48 }
 0x44f   :  { %v2725_v31 = vsel %vm2722_vm3, %v2724_v15, %v2720_v63  ;;  %vm3037_vm15 = vmor %vm3035_vm14, %vm3036_vm12 }
 0x450   :  { %v2726_v39 = vmul.f32 %v7801_v51, %v2725_v31  ;;  %v3002_v51 = vsub.f32 1.0, %v3001_v44  ;;  %v3032_v16 = vsub.f32 1.0, %v3031_v38 }
 0x451   :  { %v2466_v46 = vpop.f32.mrf.mxu1 }
 0x452   :  { %v2745_v33 = vpack.c.bf16 %v2741_v61, %v2726_v39  ;;  %v3003_v42 = vmul.f32 %v5419_v21, %v3002_v51  ;;  %3315 = vmatpush.bf16.msra.mxu2 %v4997_v60  ;;  %v3033_v63 = vmul.f32 %v8102_v57, %v3032_v16  ;;  %v3042_v51 = vor.u32 1.1754944e-38, %v3041_v7 }
 0x453   :  { %v8108_v52 = vpop.f32.mrf.mxu3 }
 0x454   :  { %4802 = vmatmul.msk.bf16.gmra.mxu3 %vm480_vm1, %v2745_v33  ;;  %v3004_v4 = vadd.f32 %v5419_v21, %v3003_v42  ;;  %v3034_v33 = vadd.f32 %v8102_v57, %v3033_v63 }
 0x456   :  { %3316 = vmatpush.bf16.msra.mxu2 %v4996_v17  ;;  %v3008_v26 = vsel %vm8112_vm6, %v5419_v21, %v3004_v4  ;;  %v3038_v27 = vsel %vm3037_vm15, %v8102_v57, %v3034_v33  ;;  %vm1808_vm6 = vcmask 785408  }
 0x457   :  { %v3013_v55 = vsel %vm3010_vm8, %v3012_v54, %v3008_v26 }
 0x458   :  { %v2933_v40 = vpop.xlane.xlu2 %2932  ;;  %v3014_v47 = vmul.f32 %v7741_v25, %v3013_v55  ;;  %v3039_v25 = vand.u32 2147483647, %v8088_v1 }
 0x459   :  { %5422 = vrcp.f32 %v2933_v40  ;;  %v2468_v29 = vpop.f32.mrf.mxu1  ;;  %v3026_v12 = vand.u32 2147483648, %v2933_v40  ;;  %v3024_v43 = vand.u32 2147483647, %v2933_v40  ;;  %vm3020_vm9 = vweird.f32 %v2933_v40 }
 0x45a   :  { %5424 = vrcp.f32 %v8095_v48  ;;  %v5125_v45 = vpack.i.bf16 %v2468_v29, %v2466_v46  ;;  %3317 = vmatpush.bf16.msra.mxu2 %v4995_v53  ;;  %v3054_v46 = vand.u32 2147483647, %v8095_v48  ;;  %vm3040_vm4 = vcmp.eq.f32.partialorder %v3039_v25, 8.507059e+37 }
 0x45b   :  { %v3027_v10 = vor.u32 1.1754944e-38, %v3026_v12  ;;  %vm3025_vm11 = vcmp.eq.f32.partialorder %v3024_v43, 8.507059e+37  ;;  %v8125_v3 = vpop.f32.mrf.mxu3  ;;  %v5057_v5 = vpop.permute.xlu1 %5056 }
 0x45c   :  { %5126 = vrot.lane.b32.xlu1 %v5125_v45, %s5539_s11  ;;  %v3043_v45 = vsel %vm3040_vm4, %v3042_v51, %v3038_v27  ;;  %vm3055_vm5 = vcmp.eq.f32.partialorder %v3054_v46, 8.507059e+37 }
 0x45d   :  { %v3044_v17 = vmul.f32 %v7817_v6, %v3043_v45 }
 0x45f   :  { %v5423_v11 = vpop.eup %5422 }
 0x460   :  { %v3016_v20 = vmul.f32 %v5423_v11, %v2933_v40  ;;  %v5425_v14 = vpop.eup %5424  ;;  %vm3021_vm7 = vweird.f32 %v5423_v11 }
 0x461   :  { %v3046_v36 = vmul.f32 %v5425_v14, %v8095_v48  ;;  %v2471_v24 = vpop.f32.mrf.mxu1  ;;  %vm3022_vm10 = vmor %vm3020_vm9, %vm3021_vm7  ;;  %vm3051_vm13 = vweird.f32 %v5425_v14 }
 0x462   :  { %v3017_v23 = vsub.f32 1.0, %v3016_v20  ;;  %vm3052_vm3 = vmor %vm3050_vm2, %vm3051_vm13 }
 0x463   :  { %v3047_v28 = vsub.f32 1.0, %v3046_v36  ;;  %v8141_v40 = vpop.f32.mrf.mxu3 }
 0x464   :  { %v3018_v56 = vmul.f32 %v5423_v11, %v3017_v23  ;;  %v5058_v23 = vunpack.i.l.bf16 %v5057_v5 }
 0x465   :  { %v3048_v32 = vmul.f32 %v5425_v14, %v3047_v28 }
 0x466   :  { %v3019_v35 = vadd.f32 %v5423_v11, %v3018_v56 }
 0x467   :  { %v3049_v44 = vadd.f32 %v5425_v14, %v3048_v32 }
 0x468   :  { %v3023_v15 = vsel %vm3022_vm10, %v5423_v11, %v3019_v35  ;;  %v5052_v11 = vpop.permute.xlu0 %5051  ;;  %v5067_v35 = vpop.permute.xlu2 %5066 }
 0x469   :  { %v3028_v18 = vsel %vm3025_vm11, %v3027_v10, %v3023_v15  ;;  %v2473_v39 = vpop.f32.mrf.mxu1  ;;  %v3053_v60 = vsel %vm3052_vm3, %v5425_v14, %v3049_v44  ;;  %v5054_v20 = vunpack.i.h.bf16 %v5052_v11  ;;  %v5059_v14 = vunpack.i.h.bf16 %v5057_v5 }
 0x46a   :  { %v3029_v31 = vmul.f32 %v7866_v19, %v3028_v18  ;;  %v5140_v21 = vpack.i.bf16 %v2473_v39, %v2471_v24  ;;  %v3056_v19 = vand.u32 2147483648, %v8095_v48  ;;  %v5053_v48 = vunpack.i.l.bf16 %v5052_v11 }
 0x46b   :  { %v8145_v38 = vpop.f32.mrf.mxu3  ;;  %v1793_v6 = vsel %vm426_vm0, %v7336_v41, %v5054_v20  ;;  %v5069_v10 = vunpack.i.h.bf16 %v5067_v35  ;;  %v5068_v55 = vunpack.i.l.bf16 %v5067_v35 }
 0x46c   :  { %v3062_v61 = vpack.c.bf16 %v3029_v31, %v3014_v47  ;;  %5141 = vrot.lane.b32.xlu1 %v5140_v21, %s5539_s11  ;;  %v3057_v29 = vor.u32 1.1754944e-38, %v3056_v19  ;;  %v1801_v56 = vsel %vm480_vm1, %v1793_v6, %v5059_v14 }
 0x46d   :  { %v1795_v47 = vsel %vm426_vm0, %v7475_v13, %v5069_v10  ;;  %v1794_v31 = vsel %vm426_vm0, %v7405_v2, %v5068_v55 }
 0x46e   :  { %4809 = vmatmul.msk.bf16.gmra.mxu1 %vm480_vm1, %v3062_v61  ;;  %v3058_v1 = vsel %vm3055_vm5, %v3057_v29, %v3053_v60 }
 0x46f   :  { %v3059_v4 = vmul.f32 %v7813_v49, %v3058_v1  ;;  %v1792_v49 = vsel %vm426_vm0, %v7273_v22, %v5053_v48 }
 0x470   :  { %v1800_v43 = vsel %vm480_vm1, %v1792_v49, %v5058_v23 }
 0x471   :  { %v2476_v42 = vpop.f32.mrf.mxu1  ;;  %v3063_v8 = vpack.c.bf16 %v3059_v4, %v3044_v17 }
 0x477   :  { %v5062_v26 = vpop.permute.xlu0 %5061 }
 0x478   :  { %v5064_v12 = vunpack.i.h.bf16 %v5062_v26  ;;  %v5063_v36 = vunpack.i.l.bf16 %v5062_v26 }
 0x479   :  { %v2478_v57 = vpop.f32.mrf.mxu1 }
 0x47a   :  { %v5155_v0 = vpack.i.bf16 %v2478_v57, %v2476_v42  ;;  %v1809_v24 = vsel %vm1808_vm6, %v1800_v43, %v5063_v36  ;;  %v1810_v54 = vsel %vm1808_vm6, %v1801_v56, %v5064_v12 }
 0x47b   :  { %v3237_v53 = vpack.c.bf16 %v1810_v54, %v1809_v24 }
 0x47c   :  { %5156 = vrot.lane.b32.xlu1 %v5155_v0, %s5539_s11 }
 0x47d   :  { %3318 = vmatmul.bf16.vlgmr.msra.gmra.mxu2 %v3237_v53 }
 0x47e   :  { %4810 = vmatmul.msk.bf16.gmra.mxu1 %vm480_vm1, %v3063_v8 }
 0x47f   :  { %v5072_v41 = vpop.permute.xlu0 %5071 }
 0x480   :  { %v5074_v28 = vunpack.i.h.bf16 %v5072_v41  ;;  %v5073_v15 = vunpack.i.l.bf16 %v5072_v41 }
 0x482   :  { %v1803_v61 = vsel %vm480_vm1, %v1795_v47, %v5074_v28  ;;  %v1802_v21 = vsel %vm480_vm1, %v1794_v31, %v5073_v15 }
 0x487   :  { %v2779_v16 = vpop.f32.mrf.mxu3  ;;  %v5082_v25 = vpop.permute.xlu0 %5081 }
 0x488   :  { %v5084_v46 = vunpack.i.h.bf16 %v5082_v25  ;;  %v5083_v27 = vunpack.i.l.bf16 %v5082_v25 }
 0x489   :  { %v5077_v63 = vpop.permute.xlu1 %5076 }
 0x48a   :  { %v5079_v32 = vunpack.i.h.bf16 %v5077_v63  ;;  %v5078_v39 = vunpack.i.l.bf16 %v5077_v63  ;;  %v1797_v42 = vsel %vm426_vm0, %v7650_v37, %v5084_v46  ;;  %v1796_v29 = vsel %vm426_vm0, %v7561_v50, %v5083_v27  ;;  %v5102_v50 = vpop.permute.xlu2 %5101 }
 0x48b   :  { %v5104_v49 = vunpack.i.h.bf16 %v5102_v50  ;;  %v5103_v26 = vunpack.i.l.bf16 %v5102_v50 }
 0x48c   :  { %v1811_v33 = vsel %vm1808_vm6, %v1802_v21, %v5078_v39  ;;  %v1812_v7 = vsel %vm1808_vm6, %v1803_v61, %v5079_v32 }
 0x48d   :  { %v3238_v44 = vpack.c.bf16 %v1812_v7, %v1811_v33  ;;  %v8192_v33 = vld [vmem:[%s9025_s5] sm:$0xff] }
 0x48e   :  { %v8195_v7 = vperm.slane %v8192_v33, 1 }
 0x48f   :  { %v2781_v22 = vpop.f32.mrf.mxu3  ;;  %3323 = vmatmul.bf16.gmra.mxu2 %v3238_v44 }
 0x490   :  { %v5115_v18 = vpack.i.bf16 %v2781_v22, %v2779_v16 }
 0x491   :  { %v5087_v19 = vpop.permute.xlu1 %5086 }
 0x492   :  { %5116 = vrot.lane.b32.xlu2 %v5115_v18, %s5537_s9  ;;  %v5089_v13 = vunpack.i.h.bf16 %v5087_v19  ;;  %v5088_v51 = vunpack.i.l.bf16 %v5087_v19  ;;  %v5493_v19 = vld [vmem:[%s9020_s0] sm:$0xff] }
 0x494   :  { %v1805_v17 = vsel %vm480_vm1, %v1797_v42, %v5089_v13  ;;  %v1804_v11 = vsel %vm480_vm1, %v1796_v29, %v5088_v51  ;;  %v5494_v51 = vld [vmem:[%s9020_s0 + $0x8] sm:$0xff] }
 0x499   :  { %v5097_v57 = vpop.permute.xlu1 %5096 }
 0x49a   :  { %v5092_v2 = vpop.permute.xlu0 %5091  ;;  %v5099_v37 = vunpack.i.h.bf16 %v5097_v57  ;;  %v5098_v0 = vunpack.i.l.bf16 %v5097_v57 }
 0x49b   :  { %v5094_v45 = vunpack.i.h.bf16 %v5092_v2  ;;  %v5093_v1 = vunpack.i.l.bf16 %v5092_v2 }
 0x49c   :  { %v1799_v14 = vsel %vm426_vm0, %v7768_v59, %v5099_v37  ;;  %v1798_v23 = vsel %vm426_vm0, %v7709_v9, %v5098_v0 }
 0x49d   :  { %v1813_v4 = vsel %vm1808_vm6, %v1804_v11, %v5093_v1  ;;  %v1814_v20 = vsel %vm1808_vm6, %v1805_v17, %v5094_v45  ;;  %v1806_v43 = vsel %vm480_vm1, %v1798_v23, %v5103_v26  ;;  %v1807_v24 = vsel %vm480_vm1, %v1799_v14, %v5104_v49 }
 0x49e   :  { %v3239_v48 = vpack.c.bf16 %v1814_v20, %v1813_v4 }
 0x4a0   :  { %v3097_v60 = vpop.f32.mrf.mxu1  ;;  %3328 = vmatmul.bf16.gmra.mxu2 %v3239_v48 }
 0x4a8   :  { %v3099_v5 = vpop.f32.mrf.mxu1 }
 0x4a9   :  { %v5120_v8 = vpack.i.bf16 %v3099_v5, %v3097_v60 }
 0x4aa   :  { %v5107_v12 = vpop.permute.xlu0 %5106 }
 0x4ab   :  { %5121 = vrot.lane.b32.xlu0 %v5120_v8, %s5538_s10  ;;  %v5109_v36 = vunpack.i.h.bf16 %v5107_v12  ;;  %v5108_v56 = vunpack.i.l.bf16 %v5107_v12 }
 0x4ad   :  { %v1815_v54 = vsel %vm1808_vm6, %v1806_v43, %v5108_v56  ;;  %v1816_v53 = vsel %vm1808_vm6, %v1807_v24, %v5109_v36  ;;  %v5496_v36 = vld [vmem:[%s9020_s0 + $0x20] sm:$0xff]  ;;  %v5497_v43 = vld [vmem:[%s9020_s0 + $0x10] sm:$0xff] }
 0x4ae   :  { %v3240_v16 = vpack.c.bf16 %v1816_v53, %v1815_v54 }
 0x4b0   :  { %v2784_v6 = vpop.f32.mrf.mxu3  ;;  %3333 = vmatmul.bf16.gmra.mxu2 %v3240_v16  ;;  %v5498_v16 = vld [vmem:[%s9020_s0 + $0x28] sm:$0xff] }
 0x4b8   :  { %v2786_v59 = vpop.f32.mrf.mxu3 }
 0x4b9   :  { %v5130_v35 = vpack.i.bf16 %v2786_v59, %v2784_v6 }
 0x4bb   :  { %5131 = vrot.lane.b32.xlu2 %v5130_v35, %s5537_s9 }
 0x4be   :  { %v5112_v2 = vpop.permute.xlu1 %5111 }
 0x4bf   :  { %v5114_v29 = vunpack.i.h.bf16 %v5112_v2  ;;  %v5113_v45 = vunpack.i.l.bf16 %v5112_v2 }
 0x4c1   :  { %v3214_v20 = vsel %vm426_vm0, %v8052_v62, %v5114_v29  ;;  %v3213_v48 = vsel %vm426_vm0, %v8011_v30, %v5113_v45  ;;  %v5495_v62 = vld [vmem:[%s9020_s0 + $0x18] sm:$0xff]  ;;  %v5540_v45 = vmov 128.0  }
 0x4c2   :  { %5426 = vrcp.f32 %v5540_v45 }
 0x4c5   :  { %v2789_v41 = vpop.f32.mrf.mxu3 }
 0x4c6   :  { %v3102_v9 = vpop.f32.mrf.mxu1 }
 0x4cd   :  { %v2791_v22 = vpop.f32.mrf.mxu3 }
 0x4ce   :  { %v3104_v10 = vpop.f32.mrf.mxu1  ;;  %v5145_v28 = vpack.i.bf16 %v2791_v22, %v2789_v41  ;;  %v5127_v41 = vpop.permute.xlu1 %5126 }
 0x4cf   :  { %v5135_v55 = vpack.i.bf16 %v3104_v10, %v3102_v9 }
 0x4d0   :  { %5146 = vrot.lane.b32.xlu2 %v5145_v28, %s5537_s9  ;;  %v5129_v28 = vunpack.i.h.bf16 %v5127_v41 }
 0x4d1   :  { %5136 = vrot.lane.b32.xlu0 %v5135_v55, %s5538_s10  ;;  %v5499_v55 = vld [vmem:[%s9020_s0 + $0x30] sm:$0xff] }
 0x4d7   :  { %v2794_v15 = vpop.f32.mrf.mxu3 }
 0x4df   :  { %v2796_v18 = vpop.f32.mrf.mxu3 }
 0x4e0   :  { %v5160_v63 = vpack.i.bf16 %v2796_v18, %v2794_v15  ;;  %v5128_v15 = vunpack.i.l.bf16 %v5127_v41 }
 0x4e2   :  { %5161 = vrot.lane.b32.xlu2 %v5160_v63, %s5537_s9 }
 0x4eb   :  { %v3107_v47 = vpop.f32.mrf.mxu1 }
 0x4ec   :  { %v5117_v42 = vpop.permute.xlu2 %5116 }
 0x4ed   :  { %v5119_v17 = vunpack.i.h.bf16 %v5117_v42  ;;  %v5118_v11 = vunpack.i.l.bf16 %v5117_v42 }
 0x4ef   :  { %v3221_v8 = vsel %vm480_vm1, %v3213_v48, %v5118_v11  ;;  %v3222_v37 = vsel %vm480_vm1, %v3214_v20, %v5119_v17 }
 0x4f3   :  { %v3109_v31 = vpop.f32.mrf.mxu1 }
 0x4f4   :  { %v5150_v32 = vpack.i.bf16 %v3109_v31, %v3107_v47  ;;  %v3216_v31 = vsel %vm426_vm0, %v8090_v34, %v5129_v28 }
 0x4f6   :  { %5151 = vrot.lane.b32.xlu0 %v5150_v32, %s5538_s10  ;;  %v3215_v32 = vsel %vm426_vm0, %v8075_v58, %v5128_v15 }
 0x4fb   :  { %v3112_v39 = vpop.f32.mrf.mxu1 }
 0x500   :  { %v3319_v44 = vpop.f32.mrf.mxu2 }
 0x501   :  { %v3320_v25 = vadd.f32 %v3319_v44, %v8195_v7 }
 0x503   :  { %v3114_v61 = vpop.f32.mrf.mxu1  ;;  %v8201_v46 = vadd.f32 %v5493_v19, %v3320_v25 }
 0x504   :  { %v5165_v21 = vpack.i.bf16 %v3114_v61, %v3112_v39 }
 0x505   :  { %3375 = vadd.xlane.f32.xlu1 %v8201_v46 }
 0x506   :  { %5166 = vrot.lane.b32.xlu0 %v5165_v21, %s5538_s10 }
 0x508   :  { %v3321_v27 = vpop.f32.mrf.mxu2 }
 0x509   :  { %v3322_v13 = vadd.f32 %v3321_v27, %v8195_v7 }
 0x50b   :  { %v8208_v60 = vadd.f32 %v5494_v51, %v3322_v13  ;;  %v5142_v13 = vpop.permute.xlu1 %5141 }
 0x50c   :  { %v5144_v2 = vunpack.i.h.bf16 %v5142_v13  ;;  %v5143_v42 = vunpack.i.l.bf16 %v5142_v13 }
 0x50d   :  { %3377 = vadd.xlane.f32.xlu2 %v8208_v60 }
 0x50e   :  { %v3217_v17 = vsel %vm426_vm0, %v8108_v52, %v5143_v42 }
 0x512   :  { %v3324_v1 = vpop.f32.mrf.mxu2 }
 0x513   :  { %v3325_v49 = vadd.f32 %v3324_v1, %v8195_v7  ;;  %v3218_v1 = vsel %vm426_vm0, %v8125_v3, %v5144_v2 }
 0x515   :  { %v8236_v24 = vadd.f32 %v5497_v43, %v3325_v49  ;;  %v5132_v10 = vpop.permute.xlu2 %5131 }
 0x516   :  { %v5134_v18 = vunpack.i.h.bf16 %v5132_v10  ;;  %v5133_v63 = vunpack.i.l.bf16 %v5132_v10 }
 0x518   :  { %v3223_v21 = vsel %vm480_vm1, %v3215_v32, %v5133_v63  ;;  %v3224_v44 = vsel %vm480_vm1, %v3216_v31, %v5134_v18 }
 0x51a   :  { %v3326_v23 = vpop.f32.mrf.mxu2 }
 0x51b   :  { %v3327_v6 = vadd.f32 %v3326_v23, %v8195_v7 }
 0x51d   :  { %v5122_v4 = vpop.permute.xlu0 %5121  ;;  %v8223_v30 = vadd.f32 %v5495_v62, %v3327_v6 }
 0x51e   :  { %v5124_v5 = vunpack.i.h.bf16 %v5122_v4  ;;  %v5123_v57 = vunpack.i.l.bf16 %v5122_v4 }
 0x51f   :  { %3381 = vadd.xlane.f32.xlu1 %v8223_v30 }
 0x520   :  { %v3229_v0 = vsel %vm1808_vm6, %v3221_v8, %v5123_v57  ;;  %v3230_v50 = vsel %vm1808_vm6, %v3222_v37, %v5124_v5  ;;  %v5427_v37 = vpop.eup %5426 }
 0x521   :  { %v3241_v14 = vpack.c.bf16 %v3230_v50, %v3229_v0  ;;  %v3408_v0 = vmul.f32 128.0, %v5427_v37  ;;  %v5157_v50 = vpop.permute.xlu1 %5156  ;;  %vm3412_vm7 = vweird.f32 %v5427_v37 }
 0x522   :  { %v5159_v23 = vunpack.i.h.bf16 %v5157_v50  ;;  %v5158_v6 = vunpack.i.l.bf16 %v5157_v50 }
 0x523   :  { %3338 = vmatmul.bf16.gmra.mxu2 %v3241_v14  ;;  %v3329_v26 = vpop.f32.mrf.mxu2  ;;  %v3409_v3 = vsub.f32 1.0, %v3408_v0 }
 0x524   :  { %v3330_v12 = vadd.f32 %v3329_v26, %v8195_v7 }
 0x525   :  { %v3410_v49 = vmul.f32 %v5427_v37, %v3409_v3 }
 0x526   :  { %v8231_v56 = vadd.f32 %v5496_v36, %v3330_v12  ;;  %v3220_v12 = vsel %vm426_vm0, %v8145_v38, %v5159_v23  ;;  %v3219_v36 = vsel %vm426_vm0, %v8141_v40, %v5158_v6 }
 0x527   :  { %v3411_v41 = vadd.f32 %v5427_v37, %v3410_v49  ;;  %v5018_v49 = vld [vmem:[%s9023_s3 + $0x74] sm:$0xf0] }
 0x528   :  { %3383 = vadd.xlane.f32.xlu2 %v8231_v56 }
 0x52a   :  { %v5147_v51 = vpop.permute.xlu2 %5146 }
 0x52b   :  { %v3331_v54 = vpop.f32.mrf.mxu2  ;;  %v5149_v34 = vunpack.i.h.bf16 %v5147_v51  ;;  %v5148_v29 = vunpack.i.l.bf16 %v5147_v51 }
 0x52c   :  { %v3332_v53 = vadd.f32 %v3331_v54, %v8195_v7 }
 0x52d   :  { %v3225_v20 = vsel %vm480_vm1, %v3217_v17, %v5148_v29  ;;  %v3226_v48 = vsel %vm480_vm1, %v3218_v1, %v5149_v34 }
 0x52e   :  { %v8244_v59 = vadd.f32 %v5498_v16, %v3332_v53 }
 0x530   :  { %3379 = vadd.xlane.f32.xlu0 %v8236_v24 }
 0x533   :  { %v3334_v35 = vpop.f32.mrf.mxu2 }
 0x534   :  { %v3335_v9 = vadd.f32 %v3334_v35, %v8195_v7 }
 0x536   :  { %v8251_v22 = vadd.f32 %v5499_v55, %v3335_v9  ;;  %v8278_v55 = vsel %vm3412_vm7, %v5427_v37, %v3411_v41  ;;  %v4895_v41 = vld [vmem:[%s9023_s3 + $0x68] sm:$0xf0] }
 0x538   :  { %3385 = vadd.xlane.f32.xlu0 %v8244_v59 }
 0x53b   :  { %v3336_v18 = vpop.f32.mrf.mxu2 }
 0x53c   :  { %v5162_v14 = vpop.permute.xlu2 %5161 }
 0x53d   :  { %v5164_v52 = vunpack.i.h.bf16 %v5162_v14  ;;  %v5163_v62 = vunpack.i.l.bf16 %v5162_v14  ;;  %v5503_v14 = vld [vmem:[%s9020_s0 + $0x50] sm:$0xff] }
 0x53f   :  { %v3227_v53 = vsel %vm480_vm1, %v3219_v36, %v5163_v62  ;;  %v3228_v16 = vsel %vm480_vm1, %v3220_v12, %v5164_v52  ;;  %v4901_v62 = vld [vmem:[%s9023_s3 + $0x70] sm:$0xf]  ;;  %v4903_v36 = vld [vmem:[%s9023_s3 + $0x78] sm:$0xf0] }
 0x540   :  { %3387 = vadd.xlane.f32.xlu0 %v8251_v22  ;;  %v4902_v12 = vor.u32 %v5018_v49, %v4901_v62 }
 0x542   :  { %3842 = vmatpush.bf16.msra.mxu3 %v4902_v12 }
 0x543   :  { %v5137_v47 = vpop.permute.xlu0 %5136 }
 0x544   :  { %v5139_v39 = vunpack.i.h.bf16 %v5137_v47  ;;  %v5138_v61 = vunpack.i.l.bf16 %v5137_v47  ;;  %v3337_v47 = vadd.f32 %v3336_v18, %v8195_v7  ;;  %v4885_v18 = vld [vmem:[%s9023_s3 + $0x50] sm:$0xf] }
 0x546   :  { %v3231_v25 = vsel %vm1808_vm6, %v3223_v21, %v5138_v61  ;;  %v3232_v19 = vsel %vm1808_vm6, %v3224_v44, %v5139_v39  ;;  %v5500_v39 = vld [vmem:[%s9020_s0 + $0x38] sm:$0xff] }
 0x547   :  { %v3242_v27 = vpack.c.bf16 %v3232_v19, %v3231_v25  ;;  %v8294_v61 = vadd.f32 %v5500_v39, %v3337_v47  ;;  %v5013_v47 = vld [vmem:[%s9023_s3 + $0x54] sm:$0xf]  ;;  %v4887_v39 = vld [vmem:[%s9023_s3 + $0x58] sm:$0xf0] }
 0x549   :  { %3343 = vmatmul.bf16.gmra.mxu2 %v3242_v27 }
 0x568   :  { %v5152_v58 = vpop.permute.xlu0 %5151 }
 0x569   :  { %v5154_v11 = vunpack.i.h.bf16 %v5152_v58  ;;  %v5153_v4 = vunpack.i.l.bf16 %v5152_v58  ;;  %v5501_v58 = vld [vmem:[%s9020_s0 + $0x40] sm:$0xff] }
 0x56b   :  { %v3233_v5 = vsel %vm1808_vm6, %v3225_v20, %v5153_v4  ;;  %v3234_v57 = vsel %vm1808_vm6, %v3226_v48, %v5154_v11  ;;  %v5502_v48 = vld [vmem:[%s9020_s0 + $0x48] sm:$0xff] }
 0x56c   :  { %v3243_v8 = vpack.c.bf16 %v3234_v57, %v3233_v5 }
 0x56e   :  { %3348 = vmatmul.bf16.gmra.mxu2 %v3243_v8 }
 0x578   :  { %v5167_v26 = vpop.permute.xlu0 %5166  ;;  %v3376_v38 = vpop.xlane.xlu1 %3375 }
 0x579   :  { %v5169_v43 = vunpack.i.h.bf16 %v5167_v26  ;;  %v5168_v54 = vunpack.i.l.bf16 %v5167_v26  ;;  %v3414_v28 = vmul.f32 %v8278_v55, %v3376_v38  ;;  %v5017_v26 = vld [vmem:[%s9023_s3 + $0x74] sm:$0xf] }
 0x57b   :  { %v3235_v35 = vsel %vm1808_vm6, %v3227_v53, %v5168_v54  ;;  %v3236_v9 = vsel %vm1808_vm6, %v3228_v16, %v5169_v43  ;;  %v8282_v40 = vsub.f32 %v8201_v46, %v3414_v28  ;;  %v4906_v43 = vor.u32 %v5017_v26, %v4903_v36  ;;  %v4893_v54 = vld [vmem:[%s9023_s3 + $0x60] sm:$0xf]  ;;  %v5016_v53 = vld [vmem:[%s9023_s3 + $0x64] sm:$0xf0]  ;;  %v5015_v16 = vld [vmem:[%s9023_s3 + $0x64] sm:$0xf] }
 0x57c   :  { %v3244_v10 = vpack.c.bf16 %v3236_v9, %v3235_v35  ;;  %v4894_v9 = vor.u32 %v5016_v53, %v4893_v54  ;;  %v4898_v38 = vor.u32 %v5015_v16, %v4895_v41  ;;  %v5505_v28 = vld [vmem:[%s9020_s0 + $0x60] sm:$0xff]  ;;  %v5507_v26 = vld [vmem:[%s9020_s0 + $0x70] sm:$0xff] }
 0x57d   :  { %v3446_v15 = vmul.f32 %v8282_v40, %v8282_v40  ;;  %3891 = vmatpush.bf16.msrb.mxu0 %v4906_v43  ;;  %v4853_v36 = vld [vmem:[%s9023_s3 + $0x10] sm:$0xf]  ;;  %v5006_v43 = vld [vmem:[%s9023_s3 + $0x14] sm:$0xf0]  ;;  %v5005_v54 = vld [vmem:[%s9023_s3 + $0x14] sm:$0xf] }
 0x57e   :  { %3353 = vmatmul.bf16.gmra.mxu2 %v3244_v10  ;;  %3843 = vmatpush.bf16.msra.mxu3 %v4894_v9  ;;  %v4855_v9 = vld [vmem:[%s9023_s3 + $0x18] sm:$0xf0] }
 0x57f   :  { %3462 = vadd.xlane.f32.xlu1 %v3446_v15  ;;  %v4858_v41 = vor.u32 %v5005_v54, %v4855_v9 }
 0x580   :  { %v3378_v63 = vpop.xlane.xlu2 %3377 }
 0x581   :  { %v3415_v31 = vmul.f32 %v8278_v55, %v3378_v63  ;;  %3892 = vmatpush.bf16.msrb.mxu0 %v4898_v38  ;;  %v5014_v63 = vld [vmem:[%s9023_s3 + $0x54] sm:$0xf0] }
 0x583   :  { %v8289_v32 = vsub.f32 %v8208_v60, %v3415_v31  ;;  %v4886_v31 = vor.u32 %v5014_v63, %v4885_v18  ;;  %v4845_v63 = vld [vmem:[%s9023_s3] sm:$0xf] }
 0x585   :  { %v3447_v46 = vmul.f32 %v8289_v32, %v8289_v32  ;;  %3844 = vmatpush.bf16.msra.mxu3 %v4886_v31  ;;  %v5003_v31 = vld [vmem:[%s9023_s3 + $0x4] sm:$0xf] }
 0x587   :  { %3464 = vadd.xlane.f32.xlu2 %v3447_v46  ;;  %3389 = vadd.xlane.f32.xlu1 %v8294_v61  ;;  %v4890_v46 = vor.u32 %v5013_v47, %v4887_v39  ;;  %v5004_v47 = vld [vmem:[%s9023_s3 + $0x4] sm:$0xf0] }
 0x588   :  { %v4846_v39 = vor.u32 %v5004_v47, %v4845_v63 }
 0x589   :  { %3893 = vmatpush.bf16.msrb.mxu0 %v4890_v46  ;;  %v4847_v46 = vld [vmem:[%s9023_s3 + $0x8] sm:$0xf0] }
 0x592   :  { %v3382_v21 = vpop.xlane.xlu1 %3381 }
 0x593   :  { %v3417_v44 = vmul.f32 %v8278_v55, %v3382_v21  ;;  %v4877_v21 = vld [vmem:[%s9023_s3 + $0x40] sm:$0xf] }
 0x595   :  { %v8301_v25 = vsub.f32 %v8223_v30, %v3417_v44  ;;  %v5012_v44 = vld [vmem:[%s9023_s3 + $0x44] sm:$0xf0] }
 0x597   :  { %v3449_v60 = vmul.f32 %v8301_v25, %v8301_v25 }
 0x599   :  { %3468 = vadd.xlane.f32.xlu0 %v3449_v60  ;;  %v5011_v60 = vld [vmem:[%s9023_s3 + $0x44] sm:$0xf] }
 0x59b   :  { %v3384_v19 = vpop.xlane.xlu2 %3383 }
 0x59c   :  { %v3418_v27 = vmul.f32 %v8278_v55, %v3384_v19 }
 0x59e   :  { %v8308_v2 = vsub.f32 %v8231_v56, %v3418_v27  ;;  %v4878_v27 = vor.u32 %v5012_v44, %v4877_v21  ;;  %v4850_v44 = vor.u32 %v5003_v31, %v4847_v46 }
 0x5a0   :  { %v3450_v30 = vmul.f32 %v8308_v2, %v8308_v2  ;;  %3845 = vmatpush.bf16.msra.mxu3 %v4878_v27 }
 0x5a2   :  { %3470 = vadd.xlane.f32.xlu0 %v3450_v30 }
 0x5a3   :  { %v3380_v13 = vpop.xlane.xlu0 %3379 }
 0x5a4   :  { %v3416_v51 = vmul.f32 %v8278_v55, %v3380_v13  ;;  %v4879_v13 = vld [vmem:[%s9023_s3 + $0x48] sm:$0xf0] }
 0x5a6   :  { %v8311_v42 = vsub.f32 %v8236_v24, %v3416_v51  ;;  %v3339_v34 = vpop.f32.mrf.mxu2 }
 0x5a7   :  { %v3340_v29 = vadd.f32 %v3339_v34, %v8195_v7  ;;  %v4882_v34 = vor.u32 %v5011_v60, %v4879_v13 }
 0x5a8   :  { %v3448_v45 = vmul.f32 %v8311_v42, %v8311_v42 }
 0x5a9   :  { %v8321_v1 = vadd.f32 %v5501_v58, %v3340_v29  ;;  %v5506_v29 = vld [vmem:[%s9020_s0 + $0x68] sm:$0xff]  ;;  %3894 = vmatpush.bf16.msrb.mxu0 %v4882_v34  ;;  %v4869_v58 = vld [vmem:[%s9023_s3 + $0x30] sm:$0xf] }
 0x5aa   :  { %3466 = vadd.xlane.f32.xlu2 %v3448_v45 }
 0x5ab   :  { %v3386_v56 = vpop.xlane.xlu0 %3385  ;;  %3391 = vadd.xlane.f32.xlu1 %v8321_v1 }
 0x5ac   :  { %v3419_v24 = vmul.f32 %v8278_v55, %v3386_v56  ;;  %v5010_v56 = vld [vmem:[%s9023_s3 + $0x34] sm:$0xf0] }
 0x5ae   :  { %v8326_v17 = vsub.f32 %v8244_v59, %v3419_v24  ;;  %v3341_v11 = vpop.f32.mrf.mxu2  ;;  %v5009_v24 = vld [vmem:[%s9023_s3 + $0x34] sm:$0xf] }
 0x5af   :  { %v3342_v4 = vadd.f32 %v3341_v11, %v8195_v7 }
 0x5b0   :  { %v3451_v20 = vmul.f32 %v8326_v17, %v8326_v17 }
 0x5b1   :  { %v8334_v5 = vadd.f32 %v5502_v48, %v3342_v4  ;;  %v4870_v4 = vor.u32 %v5010_v56, %v4869_v58 }
 0x5b3   :  { %v3388_v57 = vpop.xlane.xlu0 %3387  ;;  %3393 = vadd.xlane.f32.xlu2 %v8334_v5  ;;  %3472 = vadd.xlane.f32.xlu1 %v3451_v20  ;;  %v4871_v20 = vld [vmem:[%s9023_s3 + $0x38] sm:$0xf0] }
 0x5b4   :  { %v3420_v8 = vmul.f32 %v8278_v55, %v3388_v57  ;;  %v4874_v48 = vor.u32 %v5009_v24, %v4871_v20  ;;  %3846 = vmatpush.bf16.msra.mxu3 %v4870_v4 }
 0x5b6   :  { %v8339_v59 = vsub.f32 %v8251_v22, %v3420_v8  ;;  %v5504_v22 = vld [vmem:[%s9020_s0 + $0x58] sm:$0xff]  ;;  %3895 = vmatpush.bf16.msrb.mxu0 %v4874_v48  ;;  %v4861_v8 = vld [vmem:[%s9023_s3 + $0x20] sm:$0xf] }
 0x5b8   :  { %v3452_v37 = vmul.f32 %v8339_v59, %v8339_v59 }
 0x5bb   :  { %3474 = vadd.xlane.f32.xlu1 %v3452_v37  ;;  %v5008_v37 = vld [vmem:[%s9023_s3 + $0x24] sm:$0xf0] }
 0x5cc   :  { %v3344_v0 = vpop.f32.mrf.mxu2 }
 0x5cd   :  { %v3345_v50 = vadd.f32 %v3344_v0, %v8195_v7  ;;  %v5007_v0 = vld [vmem:[%s9023_s3 + $0x24] sm:$0xf] }
 0x5cf   :  { %v8347_v3 = vadd.f32 %v5503_v14, %v3345_v50  ;;  %v4862_v14 = vor.u32 %v5008_v37, %v4861_v8  ;;  %v8488_v8 = vperm.slane %v8192_v33, 3 }
 0x5d1   :  { %3395 = vadd.xlane.f32.xlu2 %v8347_v3  ;;  %3847 = vmatpush.bf16.msra.mxu3 %v4862_v14 }
 0x5d4   :  { %v3346_v23 = vpop.f32.mrf.mxu2 }
 0x5d5   :  { %v3347_v6 = vadd.f32 %v3346_v23, %v8195_v7  ;;  %v4863_v23 = vld [vmem:[%s9023_s3 + $0x28] sm:$0xf0] }
 0x5d7   :  { %v8354_v52 = vadd.f32 %v5504_v22, %v3347_v6  ;;  %v4866_v22 = vor.u32 %v5007_v0, %v4863_v23 }
 0x5d9   :  { %3397 = vadd.xlane.f32.xlu0 %v8354_v52  ;;  %3896 = vmatpush.bf16.msrb.mxu0 %v4866_v22 }
 0x5dd   :  { %3897 = vmatpush.bf16.msrb.mxu0 %v4858_v41 }
 0x5e1   :  { %3898 = vmatpush.bf16.msrb.mxu0 %v4850_v44 }
 0x5f1   :  { %v3349_v35 = vpop.f32.mrf.mxu2 }
 0x5f2   :  { %v3350_v10 = vadd.f32 %v3349_v35, %v8195_v7  ;;  %v3463_v30 = vpop.xlane.xlu1 %3462  ;;  %v4854_v35 = vor.u32 %v5006_v43, %v4853_v36 }
 0x5f3   :  { %v3494_v11 = vmul.f32 %v3463_v30, %v8278_v55 }
 0x5f4   :  { %v8385_v15 = vadd.f32 %v5505_v28, %v3350_v10  ;;  %3848 = vmatpush.bf16.msra.mxu3 %v4854_v35 }
 0x5f5   :  { %v3510_v57 = vadd.f32 1e-05, %v3494_v11  ;;  %v8484_v11 = vperm.slane %v8192_v33, 2 }
 0x5f6   :  { %3399 = vadd.xlane.f32.xlu0 %v8385_v15 }
 0x5f7   :  { %5428 = vrsqrt.f32 %v3510_v57  ;;  %vm3532_vm1 = vweird.f32 %v3510_v57 }
 0x5f8   :  { %3849 = vmatpush.bf16.msra.mxu3 %v4846_v39 }
 0x5f9   :  { %v3351_v19 = vpop.f32.mrf.mxu2 }
 0x5fa   :  { %v3352_v51 = vadd.f32 %v3351_v19, %v8195_v7  ;;  %v3465_v62 = vpop.xlane.xlu2 %3464  ;;  %v3390_v49 = vpop.xlane.xlu1 %3389 }
 0x5fb   :  { %v3495_v53 = vmul.f32 %v3465_v62, %v8278_v55  ;;  %v3421_v16 = vmul.f32 %v8278_v55, %v3390_v49 }
 0x5fc   :  { %v8416_v45 = vadd.f32 %v5506_v29, %v3352_v51 }
 0x5fd   :  { %v5429_v10 = vpop.eup %5428  ;;  %v3511_v38 = vadd.f32 1e-05, %v3495_v53  ;;  %v8466_v28 = vsub.f32 %v8294_v61, %v3421_v16 }
 0x5fe   :  { %3401 = vadd.xlane.f32.xlu1 %v8416_v45  ;;  %v3527_v18 = vmul.f32 %v5429_v10, %v3510_v57  ;;  %vm3533_vm0 = vweird.f32 %v5429_v10 }
 0x5ff   :  { %5430 = vrsqrt.f32 %v3511_v38  ;;  %v3453_v61 = vmul.f32 %v8466_v28, %v8466_v28  ;;  %vm3534_vm8 = vmor %vm3532_vm1, %vm3533_vm0  ;;  %vm3542_vm10 = vweird.f32 %v3511_v38 }
 0x600   :  { %v3528_v21 = vmul.f32 %v5429_v10, %v3527_v18 }
 0x601   :  { %v3354_v50 = vpop.f32.mrf.mxu2  ;;  %3476 = vadd.xlane.f32.xlu2 %v3453_v61 }
 0x602   :  { %v3355_v6 = vadd.f32 %v3354_v50, %v8195_v7  ;;  %v3529_v60 = vmul.f32 0.5, %v3528_v21 }
 0x604   :  { %v8448_v12 = vadd.f32 %v5507_v26, %v3355_v6  ;;  %v3530_v19 = vsub.f32 1.5, %v3529_v60 }
 0x605   :  { %v5431_v27 = vpop.eup %5430 }
 0x606   :  { %3403 = vadd.xlane.f32.xlu1 %v8448_v12  ;;  %v3531_v13 = vmul.f32 %v5429_v10, %v3530_v19  ;;  %v3537_v51 = vmul.f32 %v5431_v27, %v3511_v38  ;;  %vm3543_vm9 = vweird.f32 %v5431_v27 }
 0x607   :  { %vm3544_vm11 = vmor %vm3542_vm10, %vm3543_vm9 }
 0x608   :  { %v3538_v34 = vmul.f32 %v5431_v27, %v3537_v51  ;;  %v3535_v30 = vsel %vm3534_vm8, %v5429_v10, %v3531_v13 }
 0x609   :  { %v3686_v4 = vmul.f32 %v3535_v30, %v8282_v40  ;;  %v3356_v41 = vpop.f32.mrf.mxu2 }
 0x60a   :  { %v3539_v29 = vmul.f32 0.5, %v3538_v34  ;;  %v3357_v31 = vadd.f32 %v3356_v41, %v8195_v7 }
 0x60b   :  { %v3703_v37 = vmul.f32 %v8484_v11, %v3686_v4 }
 0x60c   :  { %v3469_v58 = vpop.xlane.xlu0 %3468  ;;  %v3540_v24 = vsub.f32 1.5, %v3539_v29 }
 0x60d   :  { %v3497_v56 = vmul.f32 %v3469_v58, %v8278_v55  ;;  %v8496_v49 = vadd.f32 %v8488_v8, %v3703_v37 }
 0x60e   :  { %v3541_v48 = vmul.f32 %v5431_v27, %v3540_v24 }
 0x60f   :  { %v3513_v20 = vadd.f32 1e-05, %v3497_v56 }
 0x610   :  { %v3545_v57 = vsel %vm3544_vm11, %v5431_v27, %v3541_v48  ;;  %v5508_v27 = vld [vmem:[%s9020_s0 + $0x78] sm:$0xff] }
 0x611   :  { %5432 = vrsqrt.f32 %v3513_v20  ;;  %v3687_v0 = vmul.f32 %v3545_v57, %v8289_v32  ;;  %v8522_v13 = vadd.f32 %v5508_v27, %v3357_v31  ;;  %vm3562_vm13 = vweird.f32 %v3513_v20 }
 0x613   :  { %v3704_v14 = vmul.f32 %v8484_v11, %v3687_v0 }
 0x615   :  { %v3471_v50 = vpop.xlane.xlu0 %3470  ;;  %v8499_v26 = vadd.f32 %v8488_v8, %v3704_v14 }
 0x616   :  { %v3498_v23 = vmul.f32 %v3471_v50, %v8278_v55 }
 0x617   :  { %v5433_v62 = vpop.eup %5432  ;;  %v3736_v53 = vpack.c.bf16 %v8499_v26, %v8496_v49 }
 0x618   :  { %v8501_v36 = vadd.f32 1e-05, %v3498_v23  ;;  %v3557_v43 = vmul.f32 %v5433_v62, %v3513_v20  ;;  %vm3563_vm12 = vweird.f32 %v5433_v62 }
 0x619   :  { %3850 = vmatmul.bf16.vlgmr.msra.gmra.mxu3 %v3736_v53  ;;  %3899 = vmatmul.bf16.vlgmr.msrb.gmra.mxu0 %v3736_v53  ;;  %vm3564_vm14 = vmor %vm3562_vm13, %vm3563_vm12 }
 0x61a   :  { %5434 = vrsqrt.f32 %v8501_v36  ;;  %v3558_v35 = vmul.f32 %v5433_v62, %v3557_v43  ;;  %vm3572_vm7 = vweird.f32 %v8501_v36 }
 0x61c   :  { %v3559_v10 = vmul.f32 0.5, %v3558_v35 }
 0x61d   :  { %v3467_v6 = vpop.xlane.xlu2 %3466 }
 0x61e   :  { %v3496_v40 = vmul.f32 %v3467_v6, %v8278_v55  ;;  %v3392_v22 = vpop.xlane.xlu1 %3391  ;;  %v3560_v38 = vsub.f32 1.5, %v3559_v10 }
 0x61f   :  { %v3422_v32 = vmul.f32 %v8278_v55, %v3392_v22 }
 0x620   :  { %v3512_v54 = vadd.f32 1e-05, %v3496_v40  ;;  %v5435_v47 = vpop.eup %5434  ;;  %v3561_v46 = vmul.f32 %v5433_v62, %v3560_v38 }
 0x621   :  { %v8508_v16 = vsub.f32 %v8321_v1, %v3422_v32  ;;  %v3567_v21 = vmul.f32 %v5435_v47, %v8501_v36  ;;  %vm3573_vm5 = vweird.f32 %v5435_v47 }
 0x622   :  { %5436 = vrsqrt.f32 %v3512_v54  ;;  %v3565_v34 = vsel %vm3564_vm14, %v5433_v62, %v3561_v46  ;;  %vm3552_vm2 = vweird.f32 %v3512_v54  ;;  %vm3574_vm1 = vmor %vm3572_vm7, %vm3573_vm5 }
 0x623   :  { %v3454_v9 = vmul.f32 %v8508_v16, %v8508_v16  ;;  %v3568_v30 = vmul.f32 %v5435_v47, %v3567_v21  ;;  %v3689_v58 = vmul.f32 %v3565_v34, %v8301_v25 }
 0x625   :  { %3478 = vadd.xlane.f32.xlu2 %v3454_v9  ;;  %v3569_v24 = vmul.f32 0.5, %v3568_v30  ;;  %v3706_v0 = vmul.f32 %v8484_v11, %v3689_v58 }
 0x626   :  { %v3394_v18 = vpop.xlane.xlu2 %3393  ;;  %v3473_v63 = vpop.xlane.xlu1 %3472 }
 0x627   :  { %v3423_v61 = vmul.f32 %v8278_v55, %v3394_v18  ;;  %v3499_v1 = vmul.f32 %v3473_v63, %v8278_v55  ;;  %v3570_v50 = vsub.f32 1.5, %v3569_v24  ;;  %v8535_v40 = vadd.f32 %v8488_v8, %v3706_v0  ;;  %v5032_v24 = vld [vmem:[%s9024_s4 + $0x68] sm:$0xff]  ;;  %v5031_v0 = vld [vmem:[%s9024_s4 + $0x60] sm:$0xff] }
 0x628   :  { %v5437_v39 = vpop.eup %5436 }
 0x629   :  { %v3547_v44 = vmul.f32 %v5437_v39, %v3512_v54  ;;  %v8517_v60 = vsub.f32 %v8334_v5, %v3423_v61  ;;  %v3515_v19 = vadd.f32 1e-05, %v3499_v1  ;;  %vm3553_vm15 = vweird.f32 %v5437_v39 }
 0x62a   :  { %vm3554_vm3 = vmor %vm3552_vm2, %vm3553_vm15  ;;  %v3571_v22 = vmul.f32 %v5435_v47, %v3570_v50 }
 0x62b   :  { %v3548_v7 = vmul.f32 %v5437_v39, %v3547_v44  ;;  %5438 = vrsqrt.f32 %v3515_v19  ;;  %v3455_v51 = vmul.f32 %v8517_v60, %v8517_v60  ;;  %vm3582_vm6 = vweird.f32 %v3515_v19 }
 0x62c   :  { %v3575_v43 = vsel %vm3574_vm1, %v5435_v47, %v3571_v22 }
 0x62d   :  { %v3549_v29 = vmul.f32 0.5, %v3548_v7  ;;  %3405 = vadd.xlane.f32.xlu2 %v8522_v13  ;;  %3480 = vadd.xlane.f32.xlu0 %v3455_v51  ;;  %v3690_v53 = vmul.f32 %v3575_v43, %v8308_v2  ;;  %v5034_v51 = vld [vmem:[%s9024_s4 + $0x78] sm:$0xff]  ;;  %v5023_v43 = vld [vmem:[%s9024_s4 + $0x20] sm:$0xff] }
 0x62e   :  { %v3475_v61 = vpop.xlane.xlu1 %3474  ;;  %4198 = vmatpush.bf16.msrb.mxu2 %v5034_v51  ;;  %v5019_v51 = vld [vmem:[%s9024_s4] sm:$0xff] }
 0x62f   :  { %v3550_v5 = vsub.f32 1.5, %v3549_v29  ;;  %v3707_v41 = vmul.f32 %v8484_v11, %v3690_v53  ;;  %v3500_v1 = vmul.f32 %v3475_v61, %v8278_v55  ;;  %v5033_v29 = vld [vmem:[%s9024_s4 + $0x70] sm:$0xff] }
 0x630   :  { %v5021_v61 = vld [vmem:[%s9024_s4 + $0x10] sm:$0xff] }
 0x631   :  { %v5439_v56 = vpop.eup %5438  ;;  %v3551_v4 = vmul.f32 %v5437_v39, %v3550_v5  ;;  %v8552_v18 = vadd.f32 %v8488_v8, %v3707_v41  ;;  %v3516_v44 = vadd.f32 1e-05, %v3500_v1  ;;  %v5027_v1 = vld [vmem:[%s9024_s4 + $0x40] sm:$0xff] }
 0x632   :  { %v3577_v20 = vmul.f32 %v5439_v56, %v3515_v19  ;;  %vm3583_vm4 = vweird.f32 %v5439_v56  ;;  %4199 = vmatpush.bf16.msrb.mxu2 %v5033_v29 }
 0x633   :  { %v3555_v48 = vsel %vm3554_vm3, %v5437_v39, %v3551_v4  ;;  %vm3584_vm0 = vmor %vm3582_vm6, %vm3583_vm4  ;;  %5440 = vrsqrt.f32 %v3516_v44  ;;  %vm3592_vm9 = vweird.f32 %v3516_v44 }
 0x634   :  { %v3688_v57 = vmul.f32 %v3555_v48, %v8311_v42  ;;  %v3578_v37 = vmul.f32 %v5439_v56, %v3577_v20 }
 0x636   :  { %v3579_v14 = vmul.f32 0.5, %v3578_v37  ;;  %v3705_v23 = vmul.f32 %v8484_v11, %v3688_v57  ;;  %4200 = vmatpush.bf16.msrb.mxu2 %v5032_v24 }
 0x638   :  { %v3580_v6 = vsub.f32 1.5, %v3579_v14  ;;  %v8532_v25 = vadd.f32 %v8488_v8, %v3705_v23  ;;  %v5030_v23 = vld [vmem:[%s9024_s4 + $0x58] sm:$0xff] }
 0x639   :  { %v5441_v30 = vpop.eup %5440 }
 0x63a   :  { %v3581_v62 = vmul.f32 %v5439_v56, %v3580_v6  ;;  %v3737_v42 = vpack.c.bf16 %v8535_v40, %v8532_v25  ;;  %v3587_v58 = vmul.f32 %v5441_v30, %v3516_v44  ;;  %4201 = vmatpush.bf16.msrb.mxu2 %v5031_v0  ;;  %vm3593_vm8 = vweird.f32 %v5441_v30 }
 0x63b   :  { %vm3594_vm10 = vmor %vm3592_vm9, %vm3593_vm8 }
 0x63c   :  { %v3585_v32 = vsel %vm3584_vm0, %v5439_v56, %v3581_v62  ;;  %3855 = vmatmul.bf16.gmra.mxu3 %v3737_v42  ;;  %3904 = vmatmul.bf16.gmra.mxu0 %v3737_v42  ;;  %v3588_v20 = vmul.f32 %v5441_v30, %v3587_v58 }
 0x63d   :  { %v3691_v54 = vmul.f32 %v3585_v32, %v8326_v17 }
 0x63e   :  { %v3589_v14 = vmul.f32 0.5, %v3588_v20  ;;  %4202 = vmatpush.bf16.msrb.mxu2 %v5030_v23 }
 0x63f   :  { %v3708_v35 = vmul.f32 %v8484_v11, %v3691_v54 }
 0x640   :  { %v3590_v6 = vsub.f32 1.5, %v3589_v14  ;;  %v8659_v14 = vperm.slane %v8192_v33, 4 }
 0x641   :  { %v8546_v38 = vadd.f32 %v8488_v8, %v3708_v35  ;;  %v5029_v35 = vld [vmem:[%s9024_s4 + $0x50] sm:$0xff] }
 0x642   :  { %v3591_v62 = vmul.f32 %v5441_v30, %v3590_v6  ;;  %4203 = vmatpush.bf16.msrb.mxu2 %v5029_v35 }
 0x643   :  { %v3738_v2 = vpack.c.bf16 %v8546_v38, %v8552_v18 }
 0x644   :  { %v3396_v9 = vpop.xlane.xlu2 %3395  ;;  %v3595_v54 = vsel %vm3594_vm10, %v5441_v30, %v3591_v62  ;;  %v5509_v30 = vld [vmem:[%s9025_s5 + $0x8] sm:$0xff] }
 0x645   :  { %v3424_v10 = vmul.f32 %v8278_v55, %v3396_v9  ;;  %v5022_v9 = vld [vmem:[%s9024_s4 + $0x18] sm:$0xff]  ;;  %v8648_v29 = vperm.slane %v5509_v30, 4 }
 0x647   :  { %v8549_v36 = vsub.f32 %v8347_v3, %v3424_v10  ;;  %v3692_v10 = vmul.f32 %v3595_v54, %v8339_v59 }
 0x649   :  { %v3456_v17 = vmul.f32 %v8549_v36, %v8549_v36 }
 0x64b   :  { %3482 = vadd.xlane.f32.xlu0 %v3456_v17  ;;  %v5028_v17 = vld [vmem:[%s9024_s4 + $0x48] sm:$0xff] }
 0x64c   :  { %v3398_v63 = vpop.xlane.xlu0 %3397  ;;  %3860 = vmatmul.bf16.gmra.mxu3 %v3738_v2  ;;  %3909 = vmatmul.bf16.gmra.mxu0 %v3738_v2 }
 0x64d   :  { %v3425_v47 = vmul.f32 %v8278_v55, %v3398_v63  ;;  %4204 = vmatpush.bf16.msrb.mxu2 %v5028_v17 }
 0x64f   :  { %v8560_v31 = vsub.f32 %v8354_v52, %v3425_v47 }
 0x651   :  { %v3457_v3 = vmul.f32 %v8560_v31, %v8560_v31  ;;  %4205 = vmatpush.bf16.msrb.mxu2 %v5027_v1 }
 0x653   :  { %3484 = vadd.xlane.f32.xlu1 %v3457_v3  ;;  %v3709_v3 = vmul.f32 %v8484_v11, %v3692_v10 }
 0x669   :  { %v3400_v39 = vpop.xlane.xlu0 %3399 }
 0x66a   :  { %v3426_v46 = vmul.f32 %v8278_v55, %v3400_v39 }
 0x66c   :  { %v8567_v21 = vsub.f32 %v8385_v15, %v3426_v46  ;;  %v5026_v15 = vld [vmem:[%s9024_s4 + $0x38] sm:$0xff]  ;;  %v5020_v46 = vld [vmem:[%s9024_s4 + $0x8] sm:$0xff] }
 0x66d   :  { %4149 = vmatpush.bf16.msrb.mxu1 %v5026_v15 }
 0x66e   :  { %v3458_v19 = vmul.f32 %v8567_v21, %v8567_v21 }
 0x670   :  { %3486 = vadd.xlane.f32.xlu2 %v3458_v19 }
 0x671   :  { %v3402_v52 = vpop.xlane.xlu1 %3401 }
 0x672   :  { %v3427_v27 = vmul.f32 %v8278_v55, %v3402_v52 }
 0x674   :  { %v8573_v7 = vsub.f32 %v8416_v45, %v3427_v27  ;;  %v5025_v45 = vld [vmem:[%s9024_s4 + $0x30] sm:$0xff]  ;;  %v3477_v48 = vpop.xlane.xlu2 %3476 }
 0x675   :  { %4150 = vmatpush.bf16.msrb.mxu1 %v5025_v45  ;;  %v3501_v37 = vmul.f32 %v3477_v48, %v8278_v55 }
 0x676   :  { %v3459_v34 = vmul.f32 %v8573_v7, %v8573_v7 }
 0x677   :  { %v3517_v50 = vadd.f32 1e-05, %v3501_v37 }
 0x678   :  { %3488 = vadd.xlane.f32.xlu0 %v3459_v34 }
 0x679   :  { %v3404_v5 = vpop.xlane.xlu1 %3403  ;;  %5442 = vrsqrt.f32 %v3517_v50  ;;  %vm3602_vm12 = vweird.f32 %v3517_v50 }
 0x67a   :  { %v3428_v56 = vmul.f32 %v8278_v55, %v3404_v5 }
 0x67c   :  { %v8594_v4 = vsub.f32 %v8448_v12, %v3428_v56  ;;  %v5024_v12 = vld [vmem:[%s9024_s4 + $0x28] sm:$0xff] }
 0x67d   :  { %4151 = vmatpush.bf16.msrb.mxu1 %v5024_v12 }
 0x67e   :  { %v3460_v57 = vmul.f32 %v8594_v4, %v8594_v4 }
 0x67f   :  { %v5443_v22 = vpop.eup %5442 }
 0x680   :  { %3490 = vadd.xlane.f32.xlu1 %v3460_v57  ;;  %v3597_v42 = vmul.f32 %v5443_v22, %v3517_v50  ;;  %vm3603_vm11 = vweird.f32 %v5443_v22 }
 0x681   :  { %4152 = vmatpush.bf16.msrb.mxu1 %v5023_v43  ;;  %vm3604_vm13 = vmor %vm3602_vm12, %vm3603_vm11 }
 0x682   :  { %v3598_v32 = vmul.f32 %v5443_v22, %v3597_v42 }
 0x684   :  { %v3599_v53 = vmul.f32 0.5, %v3598_v32 }
 0x685   :  { %4153 = vmatpush.bf16.msrb.mxu1 %v5022_v9 }
 0x686   :  { %v3600_v41 = vsub.f32 1.5, %v3599_v53 }
 0x688   :  { %v3601_v2 = vmul.f32 %v5443_v22, %v3600_v41 }
 0x689   :  { %4154 = vmatpush.bf16.msrb.mxu1 %v5021_v61 }
 0x68a   :  { %v3605_v63 = vsel %vm3604_vm13, %v5443_v22, %v3601_v2 }
 0x68b   :  { %v3693_v47 = vmul.f32 %v3605_v63, %v8466_v28  ;;  %v8634_v28 = vadd.f32 %v8488_v8, %v3709_v3 }
 0x68d   :  { %v3710_v59 = vmul.f32 %v8484_v11, %v3693_v47  ;;  %4155 = vmatpush.bf16.msrb.mxu1 %v5020_v46 }
 0x68f   :  { %v8637_v44 = vadd.f32 %v8488_v8, %v3710_v59 }
 0x691   :  { %v3739_v52 = vpack.c.bf16 %v8637_v44, %v8634_v28  ;;  %4156 = vmatpush.bf16.msrb.mxu1 %v5019_v51 }
 0x693   :  { %3865 = vmatmul.bf16.gmra.mxu3 %v3739_v52  ;;  %3914 = vmatmul.bf16.gmra.mxu0 %v3739_v52 }
 0x696   :  { %v3900_v15 = vpop.f32.mrf.mxu0 }
 0x697   :  { %v3901_v57 = vadd.f32 %v3900_v15, %v8648_v29 }
 0x698   :  { %v3479_v39 = vpop.xlane.xlu2 %3478 }
 0x699   :  { %v3502_v19 = vmul.f32 %v3479_v39, %v8278_v55  ;;  %v3941_v6 = vmax.f32 %v3901_v57, 0.0 }
 0x69b   :  { %v3518_v27 = vadd.f32 1e-05, %v3502_v19  ;;  %v3973_v43 = vmul.f32 %v3941_v6, %v3941_v6 }
 0x69c   :  { %v3851_v50 = vpop.f32.mrf.mxu3 }
 0x69d   :  { %5444 = vrsqrt.f32 %v3518_v27  ;;  %v3852_v62 = vadd.f32 %v3851_v50, %v8659_v14  ;;  %vm3612_vm15 = vweird.f32 %v3518_v27 }
 0x69e   :  { %v3902_v23 = vpop.f32.mrf.mxu0 }
 0x69f   :  { %v3940_v33 = vmax.f32 %v3852_v62, 0.0 }
 0x6a0   :  { %v3406_v34 = vpop.xlane.xlu2 %3405  ;;  %v3481_v45 = vpop.xlane.xlu0 %3480 }
 0x6a1   :  { %v3429_v5 = vmul.f32 %v8278_v55, %v3406_v34  ;;  %v3503_v58 = vmul.f32 %v3481_v45, %v8278_v55  ;;  %v3972_v3 = vmul.f32 %v3940_v33, %v3940_v33 }
 0x6a3   :  { %v5445_v56 = vpop.eup %5444  ;;  %v8653_v24 = vsub.f32 %v8522_v13, %v3429_v5  ;;  %v3519_v48 = vadd.f32 1e-05, %v3503_v58  ;;  %v3903_v13 = vadd.f32 %v3902_v23, %v8648_v29 }
 0x6a4   :  { %v3607_v20 = vmul.f32 %v5445_v56, %v3518_v27  ;;  %vm3613_vm14 = vweird.f32 %v5445_v56  ;;  %v3853_v9 = vpop.f32.mrf.mxu3 }
 0x6a5   :  { %v3461_v37 = vmul.f32 %v8653_v24, %v8653_v24  ;;  %5446 = vrsqrt.f32 %v3519_v48  ;;  %v3943_v42 = vmax.f32 %v3903_v13, 0.0  ;;  %v3854_v17 = vadd.f32 %v3853_v9, %v8659_v14  ;;  %vm3614_vm2 = vmor %vm3612_vm15, %vm3613_vm14 }
 0x6a6   :  { %v3608_v0 = vmul.f32 %v5445_v56, %v3607_v20  ;;  %vm3622_vm4 = vweird.f32 %v3519_v48 }
 0x6a7   :  { %3492 = vadd.xlane.f32.xlu2 %v3461_v37  ;;  %v3975_v53 = vmul.f32 %v3943_v42, %v3943_v42  ;;  %v3942_v47 = vmax.f32 %v3854_v17, 0.0 }
 0x6a8   :  { %v3609_v12 = vmul.f32 0.5, %v3608_v0 }
 0x6a9   :  { %v4005_v41 = vpack.c.bf16 %v3975_v53, %v3973_v43  ;;  %v3974_v59 = vmul.f32 %v3942_v47, %v3942_v47 }
 0x6aa   :  { %v3610_v22 = vsub.f32 1.5, %v3609_v12 }
 0x6ab   :  { %v5447_v32 = vpop.eup %5446  ;;  %4206 = vmatmul.bf16.vlgmr.msrb.gmra.mxu2 %v4005_v41  ;;  %v4004_v46 = vpack.c.bf16 %v3974_v59, %v3972_v3 }
 0x6ac   :  { %v3611_v54 = vmul.f32 %v5445_v56, %v3610_v22  ;;  %v3617_v35 = vmul.f32 %v5447_v32, %v3519_v48  ;;  %vm3623_vm3 = vweird.f32 %v5447_v32 }
 0x6ad   :  { %vm3624_vm5 = vmor %vm3622_vm4, %vm3623_vm3  ;;  %4157 = vmatmul.bf16.vlgmr.msrb.gmra.mxu1 %v4004_v46 }
 0x6ae   :  { %v3618_v10 = vmul.f32 %v5447_v32, %v3617_v35  ;;  %v3615_v2 = vsel %vm3614_vm2, %v5445_v56, %v3611_v54 }
 0x6af   :  { %v3694_v1 = vmul.f32 %v3615_v2, %v8508_v16 }
 0x6b0   :  { %v3619_v63 = vmul.f32 0.5, %v3618_v10 }
 0x6b1   :  { %v3711_v27 = vmul.f32 %v8484_v11, %v3694_v1 }
 0x6b2   :  { %v3620_v61 = vsub.f32 1.5, %v3619_v63 }
 0x6b3   :  { %v8669_v34 = vadd.f32 %v8488_v8, %v3711_v27 }
 0x6b4   :  { %v3621_v39 = vmul.f32 %v5447_v32, %v3620_v61 }
 0x6b6   :  { %v3625_v19 = vsel %vm3624_vm5, %v5447_v32, %v3621_v39 }
 0x6b7   :  { %v3695_v52 = vmul.f32 %v3625_v19, %v8517_v60 }
 0x6b9   :  { %v3905_v51 = vpop.f32.mrf.mxu0  ;;  %v3712_v15 = vmul.f32 %v8484_v11, %v3695_v52 }
 0x6ba   :  { %v3906_v16 = vadd.f32 %v3905_v51, %v8648_v29 }
 0x6bb   :  { %v8672_v30 = vadd.f32 %v8488_v8, %v3712_v15 }
 0x6bc   :  { %v3945_v48 = vmax.f32 %v3906_v16, 0.0 }
 0x6bd   :  { %v3740_v5 = vpack.c.bf16 %v8672_v30, %v8669_v34 }
 0x6be   :  { %v3483_v45 = vpop.xlane.xlu0 %3482  ;;  %v3977_v50 = vmul.f32 %v3945_v48, %v3945_v48 }
 0x6bf   :  { %v3504_v58 = vmul.f32 %v3483_v45, %v8278_v55  ;;  %v3856_v60 = vpop.f32.mrf.mxu3  ;;  %3870 = vmatmul.bf16.gmra.mxu3 %v3740_v5  ;;  %3919 = vmatmul.bf16.gmra.mxu0 %v3740_v5 }
 0x6c0   :  { %v3857_v37 = vadd.f32 %v3856_v60, %v8659_v14 }
 0x6c1   :  { %v3520_v56 = vadd.f32 1e-05, %v3504_v58  ;;  %v3907_v20 = vpop.f32.mrf.mxu0 }
 0x6c2   :  { %v3908_v57 = vadd.f32 %v3907_v20, %v8648_v29  ;;  %v3944_v22 = vmax.f32 %v3857_v37, 0.0 }
 0x6c3   :  { %5448 = vrsqrt.f32 %v3520_v56  ;;  %vm3632_vm7 = vweird.f32 %v3520_v56 }
 0x6c4   :  { %v3947_v0 = vmax.f32 %v3908_v57, 0.0  ;;  %v3976_v33 = vmul.f32 %v3944_v22, %v3944_v22 }
 0x6c6   :  { %v3979_v12 = vmul.f32 %v3947_v0, %v3947_v0  ;;  %v3485_v23 = vpop.xlane.xlu1 %3484 }
 0x6c7   :  { %v3505_v6 = vmul.f32 %v3485_v23, %v8278_v55  ;;  %v3858_v13 = vpop.f32.mrf.mxu3 }
 0x6c8   :  { %v4007_v62 = vpack.c.bf16 %v3979_v12, %v3977_v50  ;;  %v3859_v42 = vadd.f32 %v3858_v13, %v8659_v14 }
 0x6c9   :  { %v5449_v32 = vpop.eup %5448  ;;  %v3521_v43 = vadd.f32 1e-05, %v3505_v6  ;;  %v3910_v54 = vpop.f32.mrf.mxu0 }
 0x6ca   :  { %v3627_v53 = vmul.f32 %v5449_v32, %v3520_v56  ;;  %v3946_v35 = vmax.f32 %v3859_v42, 0.0  ;;  %4211 = vmatmul.bf16.gmra.mxu2 %v4007_v62  ;;  %v3911_v2 = vadd.f32 %v3910_v54, %v8648_v29  ;;  %vm3633_vm6 = vweird.f32 %v5449_v32 }
 0x6cb   :  { %5450 = vrsqrt.f32 %v3521_v43  ;;  %vm3634_vm0 = vmor %vm3632_vm7, %vm3633_vm6  ;;  %vm3642_vm8 = vweird.f32 %v3521_v43 }
 0x6cc   :  { %v3628_v9 = vmul.f32 %v5449_v32, %v3627_v53  ;;  %v3978_v41 = vmul.f32 %v3946_v35, %v3946_v35  ;;  %v3949_v39 = vmax.f32 %v3911_v2, 0.0 }
 0x6ce   :  { %v3629_v10 = vmul.f32 0.5, %v3628_v9  ;;  %v4006_v17 = vpack.c.bf16 %v3978_v41, %v3976_v33  ;;  %v3981_v16 = vmul.f32 %v3949_v39, %v3949_v39 }
 0x6cf   :  { %v3861_v63 = vpop.f32.mrf.mxu3 }
 0x6d0   :  { %v3630_v47 = vsub.f32 1.5, %v3629_v10  ;;  %4162 = vmatmul.bf16.gmra.mxu1 %v4006_v17  ;;  %v3862_v52 = vadd.f32 %v3861_v63, %v8659_v14 }
 0x6d1   :  { %v5451_v3 = vpop.eup %5450  ;;  %v3912_v61 = vpop.f32.mrf.mxu0 }
 0x6d2   :  { %v3631_v59 = vmul.f32 %v5449_v32, %v3630_v47  ;;  %v3637_v1 = vmul.f32 %v5451_v3, %v3521_v43  ;;  %v3913_v46 = vadd.f32 %v3912_v61, %v8648_v29  ;;  %vm3643_vm1 = vweird.f32 %v5451_v3 }
 0x6d3   :  { %v3948_v60 = vmax.f32 %v3862_v52, 0.0  ;;  %vm3644_vm9 = vmor %vm3642_vm8, %vm3643_vm1 }
 0x6d4   :  { %v3638_v19 = vmul.f32 %v5451_v3, %v3637_v1  ;;  %v3951_v27 = vmax.f32 %v3913_v46, 0.0  ;;  %v3635_v51 = vsel %vm3634_vm0, %v5449_v32, %v3631_v59 }
 0x6d5   :  { %v3696_v48 = vmul.f32 %v3635_v51, %v8549_v36  ;;  %v3980_v50 = vmul.f32 %v3948_v60, %v3948_v60 }
 0x6d6   :  { %v3639_v15 = vmul.f32 0.5, %v3638_v19  ;;  %v3983_v45 = vmul.f32 %v3951_v27, %v3951_v27 }
 0x6d7   :  { %v3863_v5 = vpop.f32.mrf.mxu3  ;;  %v3713_v6 = vmul.f32 %v8484_v11, %v3696_v48 }
 0x6d8   :  { %v3640_v58 = vsub.f32 1.5, %v3639_v15  ;;  %v3864_v20 = vadd.f32 %v3863_v5, %v8659_v14  ;;  %v4009_v57 = vpack.c.bf16 %v3983_v45, %v3981_v16 }
 0x6d9   :  { %v8691_v62 = vadd.f32 %v8488_v8, %v3713_v6 }
 0x6da   :  { %v3641_v37 = vmul.f32 %v5451_v3, %v3640_v58  ;;  %v3950_v56 = vmax.f32 %v3864_v20, 0.0  ;;  %4216 = vmatmul.bf16.gmra.mxu2 %v4009_v57 }
 0x6dc   :  { %v3645_v0 = vsel %vm3644_vm9, %v5451_v3, %v3641_v37  ;;  %v3982_v12 = vmul.f32 %v3950_v56, %v3950_v56 }
 0x6dd   :  { %v3697_v23 = vmul.f32 %v3645_v0, %v8560_v31 }
 0x6de   :  { %v4008_v13 = vpack.c.bf16 %v3982_v12, %v3980_v50 }
 0x6df   :  { %v3714_v22 = vmul.f32 %v8484_v11, %v3697_v23 }
 0x6e0   :  { %4167 = vmatmul.bf16.gmra.mxu1 %v4008_v13 }
 0x6e1   :  { %v8694_v36 = vadd.f32 %v8488_v8, %v3714_v22 }
 0x6e3   :  { %v3487_v42 = vpop.xlane.xlu2 %3486  ;;  %v3741_v32 = vpack.c.bf16 %v8694_v36, %v8691_v62 }
 0x6e4   :  { %v3506_v43 = vmul.f32 %v3487_v42, %v8278_v55 }
 0x6e5   :  { %3875 = vmatmul.bf16.gmra.mxu3 %v3741_v32  ;;  %3924 = vmatmul.bf16.gmra.mxu0 %v3741_v32 }
 0x6e6   :  { %v3522_v31 = vadd.f32 1e-05, %v3506_v43 }
 0x6e8   :  { %5452 = vrsqrt.f32 %v3522_v31  ;;  %vm3652_vm11 = vweird.f32 %v3522_v31 }
 0x6eb   :  { %v3489_v54 = vpop.xlane.xlu0 %3488 }
 0x6ec   :  { %v3507_v53 = vmul.f32 %v3489_v54, %v8278_v55 }
 0x6ee   :  { %v5453_v35 = vpop.eup %5452  ;;  %v3523_v9 = vadd.f32 1e-05, %v3507_v53 }
 0x6ef   :  { %v3647_v33 = vmul.f32 %v5453_v35, %v3522_v31  ;;  %vm3653_vm10 = vweird.f32 %v5453_v35 }
 0x6f0   :  { %5454 = vrsqrt.f32 %v3523_v9  ;;  %vm3654_vm12 = vmor %vm3652_vm11, %vm3653_vm10  ;;  %vm3662_vm14 = vweird.f32 %v3523_v9 }
 0x6f1   :  { %v3648_v41 = vmul.f32 %v5453_v35, %v3647_v33 }
 0x6f3   :  { %v3649_v10 = vmul.f32 0.5, %v3648_v41  ;;  %v3491_v27 = vpop.xlane.xlu1 %3490 }
 0x6f4   :  { %v3508_v16 = vmul.f32 %v3491_v27, %v8278_v55  ;;  %v8723_v27 = vld [vmem:[%s9025_s5] sm:$0xff]  ;;  %s5541_s5 = smov [#allocation2]  }
 0x6f5   :  { %v3650_v17 = vsub.f32 1.5, %v3649_v10  ;;  %s4637_s1 = sshll.u32 %s5541_s5, 4  ;;  %s4638_s1 = int_to_ptr.vmem [resolvable:$true] %s4637_s1 }
 0x6f6   :  { %v5455_v2 = vpop.eup %5454  ;;  %v3524_v58 = vadd.f32 1e-05, %v3508_v16 }
 0x6f7   :  { %v3651_v63 = vmul.f32 %v5453_v35, %v3650_v17  ;;  %v3657_v47 = vmul.f32 %v5455_v2, %v3523_v9  ;;  %vm3663_vm13 = vweird.f32 %v5455_v2 }
 0x6f8   :  { %vm3664_vm15 = vmor %vm3662_vm14, %vm3663_vm13  ;;  %5456 = vrsqrt.f32 %v3524_v58  ;;  %vm3672_vm3 = vweird.f32 %v3524_v58 }
 0x6f9   :  { %v3658_v3 = vmul.f32 %v5455_v2, %v3657_v47  ;;  %v3655_v61 = vsel %vm3654_vm12, %v5453_v35, %v3651_v63 }
 0x6fa   :  { %v3698_v39 = vmul.f32 %v3655_v61, %v8567_v21 }
 0x6fb   :  { %v3659_v59 = vmul.f32 0.5, %v3658_v3 }
 0x6fc   :  { %v3715_v51 = vmul.f32 %v8484_v11, %v3698_v39 }
 0x6fd   :  { %v3660_v1 = vsub.f32 1.5, %v3659_v59 }
 0x6fe   :  { %v8706_v45 = vadd.f32 %v8488_v8, %v3715_v51  ;;  %v8726_v51 = vperm.slane %v8723_v27, 5 }
 0x6ff   :  { %v3661_v46 = vmul.f32 %v5455_v2, %v3660_v1 }
 0x701   :  { %v3665_v19 = vsel %vm3664_vm15, %v5455_v2, %v3661_v46 }
 0x702   :  { %v3699_v52 = vmul.f32 %v3665_v19, %v8573_v7  ;;  %v5457_v7 = vpop.eup %5456 }
 0x703   :  { %v3667_v60 = vmul.f32 %v5457_v7, %v3524_v58  ;;  %vm3673_vm2 = vweird.f32 %v5457_v7 }
 0x704   :  { %v3716_v15 = vmul.f32 %v8484_v11, %v3699_v52  ;;  %vm3674_vm4 = vmor %vm3672_vm3, %vm3673_vm2 }
 0x705   :  { %v3668_v20 = vmul.f32 %v5457_v7, %v3667_v60 }
 0x706   :  { %v8709_v5 = vadd.f32 %v8488_v8, %v3716_v15 }
 0x707   :  { %v3669_v0 = vmul.f32 0.5, %v3668_v20 }
 0x708   :  { %v3742_v21 = vpack.c.bf16 %v8709_v5, %v8706_v45 }
 0x709   :  { %v3670_v23 = vsub.f32 1.5, %v3669_v0 }
 0x70a   :  { %3880 = vmatmul.bf16.gmra.mxu3 %v3742_v21  ;;  %3929 = vmatmul.bf16.gmra.mxu0 %v3742_v21 }
 0x70b   :  { %v3671_v31 = vmul.f32 %v5457_v7, %v3670_v23 }
 0x70d   :  { %v3675_v2 = vsel %vm3674_vm4, %v5457_v7, %v3671_v31 }
 0x70e   :  { %v3700_v61 = vmul.f32 %v3675_v2, %v8594_v4 }
 0x710   :  { %v3915_v48 = vpop.f32.mrf.mxu0  ;;  %v3717_v4 = vmul.f32 %v8484_v11, %v3700_v61 }
 0x711   :  { %v3916_v50 = vadd.f32 %v3915_v48, %v8648_v29 }
 0x712   :  { %v8732_v7 = vadd.f32 %v8488_v8, %v3717_v4 }
 0x713   :  { %v3953_v13 = vmax.f32 %v3916_v50, 0.0 }
 0x715   :  { %v3985_v53 = vmul.f32 %v3953_v13, %v3953_v13 }
 0x716   :  { %v3866_v12 = vpop.f32.mrf.mxu3 }
 0x717   :  { %v3867_v32 = vadd.f32 %v3866_v12, %v8659_v14 }
 0x718   :  { %v3917_v6 = vpop.f32.mrf.mxu0 }
 0x719   :  { %v3918_v22 = vadd.f32 %v3917_v6, %v8648_v29  ;;  %v3952_v41 = vmax.f32 %v3867_v32, 0.0 }
 0x71a   :  { %v3493_v57 = vpop.xlane.xlu2 %3492 }
 0x71b   :  { %v3509_v37 = vmul.f32 %v3493_v57, %v8278_v55  ;;  %v3955_v43 = vmax.f32 %v3918_v22, 0.0  ;;  %v3984_v59 = vmul.f32 %v3952_v41, %v3952_v41 }
 0x71d   :  { %v3525_v56 = vadd.f32 1e-05, %v3509_v37  ;;  %v3987_v35 = vmul.f32 %v3955_v43, %v3955_v43 }
 0x71e   :  { %v3868_v33 = vpop.f32.mrf.mxu3 }
 0x71f   :  { %5458 = vrsqrt.f32 %v3525_v56  ;;  %v4011_v10 = vpack.c.bf16 %v3987_v35, %v3985_v53  ;;  %v3869_v17 = vadd.f32 %v3868_v33, %v8659_v14  ;;  %vm3682_vm6 = vweird.f32 %v3525_v56 }
 0x721   :  { %v3954_v47 = vmax.f32 %v3869_v17, 0.0  ;;  %4221 = vmatmul.bf16.gmra.mxu2 %v4011_v10 }
 0x723   :  { %v3986_v1 = vmul.f32 %v3954_v47, %v3954_v47 }
 0x725   :  { %v5459_v42 = vpop.eup %5458  ;;  %v4010_v46 = vpack.c.bf16 %v3986_v1, %v3984_v59 }
 0x726   :  { %v3677_v54 = vmul.f32 %v5459_v42, %v3525_v56  ;;  %vm3683_vm5 = vweird.f32 %v5459_v42 }
 0x727   :  { %vm3684_vm7 = vmor %vm3682_vm6, %vm3683_vm5  ;;  %4172 = vmatmul.bf16.gmra.mxu1 %v4010_v46 }
 0x728   :  { %v3678_v9 = vmul.f32 %v5459_v42, %v3677_v54 }
 0x72a   :  { %v3679_v63 = vmul.f32 0.5, %v3678_v9  ;;  %v4158_v16 = vpop.f32.mrf.mxu1 }
 0x72b   :  { %v4159_v58 = vadd.f32 %v4158_v16, %v8726_v51 }
 0x72c   :  { %v3680_v3 = vsub.f32 1.5, %v3679_v63 }
 0x72e   :  { %v3681_v39 = vmul.f32 %v5459_v42, %v3680_v3  ;;  %v4207_v21 = vpop.f32.mrf.mxu2 }
 0x72f   :  { %v4208_v60 = vadd.f32 %v4207_v21, %v4159_v58 }
 0x730   :  { %v3685_v19 = vsel %vm3684_vm7, %v5459_v42, %v3681_v39 }
 0x731   :  { %v3701_v52 = vmul.f32 %v3685_v19, %v8653_v24  ;;  %v8740_v48 = vadd.f32 %v4208_v60, %v8496_v49 }
 0x733   :  { %v3718_v15 = vmul.f32 %v8484_v11, %v3701_v52  ;;  %4263 = vadd.xlane.f32.xlu0 %v8740_v48  ;;  %v4160_v11 = vpop.f32.mrf.mxu1 }
 0x734   :  { %v4161_v57 = vadd.f32 %v4160_v11, %v8726_v51 }
 0x735   :  { %v8735_v24 = vadd.f32 %v8488_v8, %v3718_v15 }
 0x736   :  { %v4209_v56 = vpop.f32.mrf.mxu2 }
 0x737   :  { %v3743_v20 = vpack.c.bf16 %v8735_v24, %v8732_v7  ;;  %v4210_v0 = vadd.f32 %v4209_v56, %v4161_v57 }
 0x739   :  { %3885 = vmatmul.bf16.gmra.mxu3 %v3743_v20  ;;  %3934 = vmatmul.bf16.gmra.mxu0 %v3743_v20  ;;  %v8745_v8 = vadd.f32 %v4210_v0, %v8499_v26 }
 0x73b   :  { %4265 = vadd.xlane.f32.xlu1 %v8745_v8 }
 0x73c   :  { %v3920_v37 = vpop.f32.mrf.mxu0 }
 0x73d   :  { %v3921_v50 = vadd.f32 %v3920_v37, %v8648_v29 }
 0x73f   :  { %v3957_v23 = vmax.f32 %v3921_v50, 0.0 }
 0x741   :  { %v3989_v42 = vmul.f32 %v3957_v23, %v3957_v23 }
 0x742   :  { %v3871_v12 = vpop.f32.mrf.mxu3 }
 0x743   :  { %v3872_v13 = vadd.f32 %v3871_v12, %v8659_v14 }
 0x744   :  { %v3922_v49 = vpop.f32.mrf.mxu0 }
 0x745   :  { %v3923_v6 = vadd.f32 %v3922_v49, %v8648_v29  ;;  %v3956_v31 = vmax.f32 %v3872_v13, 0.0 }
 0x747   :  { %v3959_v22 = vmax.f32 %v3923_v6, 0.0  ;;  %v3988_v41 = vmul.f32 %v3956_v31, %v3956_v31 }
 0x749   :  { %v3991_v32 = vmul.f32 %v3959_v22, %v3959_v22 }
 0x74a   :  { %v3873_v43 = vpop.f32.mrf.mxu3 }
 0x74b   :  { %v4013_v54 = vpack.c.bf16 %v3991_v32, %v3989_v42  ;;  %v3874_v26 = vadd.f32 %v3873_v43, %v8659_v14 }
 0x74d   :  { %v4163_v53 = vpop.f32.mrf.mxu1  ;;  %v4212_v35 = vpop.f32.mrf.mxu2  ;;  %v3958_v9 = vmax.f32 %v3874_v26, 0.0  ;;  %4226 = vmatmul.bf16.gmra.mxu2 %v4013_v54 }
 0x74e   :  { %v4164_v33 = vadd.f32 %v4163_v53, %v8726_v51 }
 0x74f   :  { %v3990_v10 = vmul.f32 %v3958_v9, %v3958_v9 }
 0x750   :  { %v4213_v17 = vadd.f32 %v4212_v35, %v4164_v33 }
 0x751   :  { %v4012_v2 = vpack.c.bf16 %v3990_v10, %v3988_v41 }
 0x752   :  { %v8754_v63 = vadd.f32 %v4213_v17, %v8532_v25 }
 0x753   :  { %4177 = vmatmul.bf16.gmra.mxu1 %v4012_v2 }
 0x754   :  { %4267 = vadd.xlane.f32.xlu2 %v8754_v63 }
 0x755   :  { %v4165_v47 = vpop.f32.mrf.mxu1  ;;  %v4214_v3 = vpop.f32.mrf.mxu2 }
 0x756   :  { %v4166_v61 = vadd.f32 %v4165_v47, %v8726_v51 }
 0x758   :  { %v4215_v59 = vadd.f32 %v4214_v3, %v4166_v61 }
 0x75a   :  { %v8759_v1 = vadd.f32 %v4215_v59, %v8535_v40 }
 0x75c   :  { %4269 = vadd.xlane.f32.xlu0 %v8759_v1 }
 0x75d   :  { %v4168_v39 = vpop.f32.mrf.mxu1  ;;  %v4217_v19 = vpop.f32.mrf.mxu2 }
 0x75e   :  { %v4169_v46 = vadd.f32 %v4168_v39, %v8726_v51 }
 0x760   :  { %v4218_v52 = vadd.f32 %v4217_v19, %v4169_v46 }
 0x762   :  { %v8764_v25 = vadd.f32 %v4218_v52, %v8552_v18  ;;  %v3925_v4 = vpop.f32.mrf.mxu0 }
 0x763   :  { %v3926_v21 = vadd.f32 %v3925_v4, %v8648_v29 }
 0x764   :  { %4271 = vadd.xlane.f32.xlu1 %v8764_v25 }
 0x765   :  { %v4170_v15 = vpop.f32.mrf.mxu1  ;;  %v4219_v40 = vpop.f32.mrf.mxu2  ;;  %v3961_v57 = vmax.f32 %v3926_v21, 0.0 }
 0x766   :  { %v4171_v16 = vadd.f32 %v4170_v15, %v8726_v51 }
 0x767   :  { %v3993_v0 = vmul.f32 %v3961_v57, %v3961_v57 }
 0x768   :  { %v4220_v58 = vadd.f32 %v4219_v40, %v4171_v16  ;;  %v3876_v60 = vpop.f32.mrf.mxu3 }
 0x769   :  { %v3877_v18 = vadd.f32 %v3876_v60, %v8659_v14 }
 0x76a   :  { %v8770_v20 = vadd.f32 %v4220_v58, %v8546_v38  ;;  %v3927_v11 = vpop.f32.mrf.mxu0 }
 0x76b   :  { %v3928_v37 = vadd.f32 %v3927_v11, %v8648_v29  ;;  %v3960_v49 = vmax.f32 %v3877_v18, 0.0 }
 0x76c   :  { %4273 = vadd.xlane.f32.xlu2 %v8770_v20 }
 0x76d   :  { %v3963_v56 = vmax.f32 %v3928_v37, 0.0  ;;  %v3992_v38 = vmul.f32 %v3960_v49, %v3960_v49 }
 0x76f   :  { %v3995_v50 = vmul.f32 %v3963_v56, %v3963_v56 }
 0x770   :  { %v3878_v12 = vpop.f32.mrf.mxu3 }
 0x771   :  { %v4015_v23 = vpack.c.bf16 %v3995_v50, %v3993_v0  ;;  %v3879_v6 = vadd.f32 %v3878_v12, %v8659_v14 }
 0x773   :  { %v3962_v13 = vmax.f32 %v3879_v6, 0.0  ;;  %4231 = vmatmul.bf16.gmra.mxu2 %v4015_v23 }
 0x775   :  { %v3994_v22 = vmul.f32 %v3962_v13, %v3962_v13 }
 0x777   :  { %v4014_v42 = vpack.c.bf16 %v3994_v22, %v3992_v38 }
 0x779   :  { %4182 = vmatmul.bf16.gmra.mxu1 %v4014_v42 }
 0x787   :  { %v3930_v32 = vpop.f32.mrf.mxu0 }
 0x788   :  { %v3931_v43 = vadd.f32 %v3930_v32, %v8648_v29 }
 0x78a   :  { %v3965_v26 = vmax.f32 %v3931_v43, 0.0 }
 0x78c   :  { %v3997_v33 = vmul.f32 %v3965_v26, %v3965_v26 }
 0x78d   :  { %v3881_v31 = vpop.f32.mrf.mxu3 }
 0x78e   :  { %v3882_v35 = vadd.f32 %v3881_v31, %v8659_v14 }
 0x78f   :  { %v3932_v54 = vpop.f32.mrf.mxu0 }
 0x790   :  { %v3933_v53 = vadd.f32 %v3932_v54, %v8648_v29  ;;  %v3964_v17 = vmax.f32 %v3882_v35, 0.0 }
 0x792   :  { %v3967_v9 = vmax.f32 %v3933_v53, 0.0  ;;  %v3996_v61 = vmul.f32 %v3964_v17, %v3964_v17 }
 0x794   :  { %v3999_v41 = vmul.f32 %v3967_v9, %v3967_v9 }
 0x795   :  { %v3883_v10 = vpop.f32.mrf.mxu3 }
 0x796   :  { %v4017_v2 = vpack.c.bf16 %v3999_v41, %v3997_v33  ;;  %v3884_v47 = vadd.f32 %v3883_v10, %v8659_v14 }
 0x798   :  { %v3966_v3 = vmax.f32 %v3884_v47, 0.0  ;;  %4236 = vmatmul.bf16.gmra.mxu2 %v4017_v2 }
 0x79a   :  { %v3998_v59 = vmul.f32 %v3966_v3, %v3966_v3 }
 0x79c   :  { %v4016_v39 = vpack.c.bf16 %v3998_v59, %v3996_v61 }
 0x79e   :  { %4187 = vmatmul.bf16.gmra.mxu1 %v4016_v39 }
 0x7a4   :  { %v4173_v46 = vpop.f32.mrf.mxu1  ;;  %v4222_v19 = vpop.f32.mrf.mxu2 }
 0x7a5   :  { %v4174_v52 = vadd.f32 %v4173_v46, %v8726_v51 }
 0x7a7   :  { %v4223_v4 = vadd.f32 %v4222_v19, %v4174_v52 }
 0x7a9   :  { %v8782_v15 = vadd.f32 %v4223_v4, %v8634_v28 }
 0x7ab   :  { %4275 = vadd.xlane.f32.xlu0 %v8782_v15 }
 0x7ac   :  { %v4175_v16 = vpop.f32.mrf.mxu1  ;;  %v4224_v58 = vpop.f32.mrf.mxu2 }
 0x7ad   :  { %v4176_v21 = vadd.f32 %v4175_v16, %v8726_v51 }
 0x7af   :  { %v4225_v60 = vadd.f32 %v4224_v58, %v4176_v21  ;;  %v4264_v21 = vpop.xlane.xlu0 %4263 }
 0x7b1   :  { %v8787_v11 = vadd.f32 %v4225_v60, %v8637_v44 }
 0x7b3   :  { %4277 = vadd.xlane.f32.xlu1 %v8787_v11 }
 0x7b6   :  { %v3935_v40 = vpop.f32.mrf.mxu0 }
 0x7b7   :  { %v3936_v57 = vadd.f32 %v3935_v40, %v8648_v29 }
 0x7b9   :  { %v3969_v56 = vmax.f32 %v3936_v57, 0.0 }
 0x7bb   :  { %v4001_v12 = vmul.f32 %v3969_v56, %v3969_v56 }
 0x7bc   :  { %v3886_v37 = vpop.f32.mrf.mxu3 }
 0x7bd   :  { %v3887_v0 = vadd.f32 %v3886_v37, %v8659_v14 }
 0x7be   :  { %v3937_v18 = vpop.f32.mrf.mxu0 }
 0x7bf   :  { %v3938_v28 = vadd.f32 %v3937_v18, %v8648_v29  ;;  %v3968_v6 = vmax.f32 %v3887_v0, 0.0 }
 0x7c1   :  { %v3971_v50 = vmax.f32 %v3938_v28, 0.0  ;;  %v4000_v22 = vmul.f32 %v3968_v6, %v3968_v6 }
 0x7c3   :  { %v4003_v49 = vmul.f32 %v3971_v50, %v3971_v50 }
 0x7c4   :  { %v3888_v23 = vpop.f32.mrf.mxu3 }
 0x7c5   :  { %v3889_v13 = vadd.f32 %v3888_v23, %v8659_v14  ;;  %v4019_v44 = vpack.c.bf16 %v4003_v49, %v4001_v12 }
 0x7c7   :  { %v3970_v38 = vmax.f32 %v3889_v13, 0.0  ;;  %4241 = vmatmul.bf16.gmra.mxu2 %v4019_v44 }
 0x7c9   :  { %v4002_v42 = vmul.f32 %v3970_v38, %v3970_v38 }
 0x7cb   :  { %v4018_v32 = vpack.c.bf16 %v4002_v42, %v4000_v22  ;;  %v4268_v22 = vpop.xlane.xlu2 %4267 }
 0x7cd   :  { %4192 = vmatmul.bf16.gmra.mxu1 %v4018_v32 }
 0x7d0   :  { %v4178_v43 = vpop.f32.mrf.mxu1  ;;  %v4227_v31 = vpop.f32.mrf.mxu2 }
 0x7d1   :  { %v4179_v29 = vadd.f32 %v4178_v43, %v8726_v51 }
 0x7d3   :  { %v4228_v54 = vadd.f32 %v4227_v31, %v4179_v29 }
 0x7d5   :  { %v8796_v26 = vadd.f32 %v4228_v54, %v8669_v34 }
 0x7d7   :  { %4279 = vadd.xlane.f32.xlu2 %v8796_v26 }
 0x7d8   :  { %v4180_v53 = vpop.f32.mrf.mxu1  ;;  %v4229_v35 = vpop.f32.mrf.mxu2 }
 0x7d9   :  { %v4181_v14 = vadd.f32 %v4180_v53, %v8726_v51 }
 0x7db   :  { %v4230_v9 = vadd.f32 %v4229_v35, %v4181_v14 }
 0x7dd   :  { %v4256_v33 = vadd.f32 %v4230_v9, %v8672_v30 }
 0x7df   :  { %4281 = vadd.xlane.f32.xlu0 %v4256_v33 }
 0x7f6   :  { %v4183_v41 = vpop.f32.mrf.mxu1  ;;  %v4232_v10 = vpop.f32.mrf.mxu2 }
 0x7f7   :  { %v4184_v17 = vadd.f32 %v4183_v41, %v8726_v51  ;;  %v4274_v41 = vpop.xlane.xlu2 %4273 }
 0x7f9   :  { %v4233_v2 = vadd.f32 %v4232_v10, %v4184_v17 }
 0x7fb   :  { %v8803_v47 = vadd.f32 %v4233_v2, %v8691_v62 }
 0x7fd   :  { %4283 = vadd.xlane.f32.xlu1 %v8803_v47 }
 0x7fe   :  { %v4185_v34 = vpop.f32.mrf.mxu1  ;;  %v4234_v61 = vpop.f32.mrf.mxu2 }
 0x7ff   :  { %v4186_v3 = vadd.f32 %v4185_v34, %v8726_v51 }
 0x801   :  { %v4235_v59 = vadd.f32 %v4234_v61, %v4186_v3 }
 0x803   :  { %v8808_v39 = vadd.f32 %v4235_v59, %v8694_v36  ;;  %v4295_v36 = vmul.f32 %v4264_v21, %v8278_v55 }
 0x805   :  { %4285 = vadd.xlane.f32.xlu2 %v8808_v39  ;;  %v8823_v57 = vsub.f32 %v8740_v48, %v4295_v36 }
 0x807   :  { %v4327_v18 = vmul.f32 %v8823_v57, %v8823_v57 }
 0x81b   :  { %v4188_v30 = vpop.f32.mrf.mxu1  ;;  %v4237_v46 = vpop.f32.mrf.mxu2 }
 0x81c   :  { %v4189_v19 = vadd.f32 %v4188_v30, %v8726_v51 }
 0x81e   :  { %v4238_v52 = vadd.f32 %v4237_v46, %v4189_v19 }
 0x820   :  { %v8813_v62 = vadd.f32 %v4238_v52, %v8706_v45  ;;  %v4270_v45 = vpop.xlane.xlu0 %4269 }
 0x821   :  { %v4298_v37 = vmul.f32 %v4270_v45, %v8278_v55 }
 0x822   :  { %4287 = vadd.xlane.f32.xlu0 %v8813_v62 }
 0x823   :  { %v4190_v4 = vpop.f32.mrf.mxu1  ;;  %v4239_v40 = vpop.f32.mrf.mxu2  ;;  %v8829_v56 = vsub.f32 %v8759_v1, %v4298_v37 }
 0x824   :  { %v4191_v16 = vadd.f32 %v4190_v4, %v8726_v51  ;;  %v4266_v1 = vpop.xlane.xlu1 %4265 }
 0x825   :  { %v4296_v13 = vmul.f32 %v4266_v1, %v8278_v55 }
 0x826   :  { %v4240_v58 = vadd.f32 %v4239_v40, %v4191_v16 }
 0x828   :  { %v8819_v60 = vadd.f32 %v4240_v58, %v8709_v5  ;;  %v4276_v28 = vpop.xlane.xlu0 %4275  ;;  %v4330_v5 = vmul.f32 %v8829_v56, %v8829_v56 }
 0x829   :  { %v4301_v0 = vmul.f32 %v4276_v28, %v8278_v55 }
 0x82a   :  { %4289 = vadd.xlane.f32.xlu1 %v8819_v60 }
 0x82b   :  { %v8835_v48 = vsub.f32 %v8782_v15, %v4301_v0  ;;  %v8846_v15 = vsub.f32 %v8745_v8, %v4296_v13 }
 0x82c   :  { %v4272_v43 = vpop.xlane.xlu1 %4271 }
 0x82d   :  { %v4333_v50 = vmul.f32 %v8835_v48, %v8835_v48  ;;  %v4299_v14 = vmul.f32 %v4272_v43, %v8278_v55  ;;  %v4328_v8 = vmul.f32 %v8846_v15, %v8846_v15 }
 0x832   :  { %4343 = vadd.xlane.f32.xlu1 %v4327_v18 }
 0x834   :  { %v4278_v10 = vpop.xlane.xlu1 %4277 }
 0x835   :  { %v4302_v17 = vmul.f32 %v4278_v10, %v8278_v55 }
 0x83a   :  { %4349 = vadd.xlane.f32.xlu1 %v4330_v5 }
 0x842   :  { %4355 = vadd.xlane.f32.xlu1 %v4333_v50 }
 0x84a   :  { %v4193_v12 = vpop.f32.mrf.mxu1  ;;  %v4242_v23 = vpop.f32.mrf.mxu2 }
 0x84b   :  { %v4194_v49 = vadd.f32 %v4193_v12, %v8726_v51  ;;  %v4280_v3 = vpop.xlane.xlu2 %4279 }
 0x84c   :  { %v4303_v61 = vmul.f32 %v4280_v3, %v8278_v55 }
 0x84d   :  { %v4243_v6 = vadd.f32 %v4242_v23, %v4194_v49 }
 0x84e   :  { %v8886_v46 = vsub.f32 %v8796_v26, %v4303_v61 }
 0x84f   :  { %v8842_v44 = vadd.f32 %v4243_v6, %v8732_v7  ;;  %v4297_v7 = vmul.f32 %v4268_v22, %v8278_v55 }
 0x851   :  { %4291 = vadd.xlane.f32.xlu2 %v8842_v44  ;;  %v8863_v9 = vsub.f32 %v8754_v63, %v4297_v7 }
 0x852   :  { %v4195_v38 = vpop.f32.mrf.mxu1  ;;  %v4282_v42 = vpop.xlane.xlu0 %4281 }
 0x853   :  { %v4196_v32 = vadd.f32 %v4195_v38, %v8726_v51  ;;  %v4304_v31 = vmul.f32 %v4282_v42, %v8278_v55  ;;  %v4244_v29 = vpop.f32.mrf.mxu2  ;;  %v4329_v2 = vmul.f32 %v8863_v9, %v8863_v9 }
 0x855   :  { %v4245_v54 = vadd.f32 %v4244_v29, %v4196_v32  ;;  %v8850_v53 = vsub.f32 %v4256_v33, %v4304_v31  ;;  %v8866_v33 = vsub.f32 %v8764_v25, %v4299_v14  ;;  %v8878_v25 = vsub.f32 %v8787_v11, %v4302_v17 }
 0x856   :  { %v8918_v29 = vperm.slane %v8723_v27, 6  ;;  %v8921_v14 = vperm.slane %v8723_v27, 7 }
 0x857   :  { %v8855_v35 = vadd.f32 %v4245_v54, %v8735_v24  ;;  %v4336_v51 = vmul.f32 %v8850_v53, %v8850_v53  ;;  %v4300_v24 = vmul.f32 %v4274_v41, %v8278_v55  ;;  %v4331_v34 = vmul.f32 %v8866_v33, %v8866_v33 }
 0x858   :  { %v4334_v30 = vmul.f32 %v8878_v25, %v8878_v25 }
 0x859   :  { %4293 = vadd.xlane.f32.xlu0 %v8855_v35  ;;  %4345 = vadd.xlane.f32.xlu2 %v4328_v8  ;;  %v8875_v63 = vsub.f32 %v8770_v20, %v4300_v24  ;;  %v4335_v20 = vmul.f32 %v8886_v46, %v8886_v46 }
 0x85a   :  { %4361 = vadd.xlane.f32.xlu1 %v4336_v51 }
 0x85b   :  { %v4332_v59 = vmul.f32 %v8875_v63, %v8875_v63 }
 0x861   :  { %4347 = vadd.xlane.f32.xlu0 %v4329_v2  ;;  %4351 = vadd.xlane.f32.xlu2 %v4331_v34 }
 0x869   :  { %4353 = vadd.xlane.f32.xlu0 %v4332_v59  ;;  %4357 = vadd.xlane.f32.xlu2 %v4334_v30 }
 0x870   :  { %v4284_v19 = vpop.xlane.xlu1 %4283 }
 0x871   :  { %v4305_v11 = vmul.f32 %v4284_v19, %v8278_v55  ;;  %4359 = vadd.xlane.f32.xlu0 %v4335_v20 }
 0x873   :  { %v8892_v52 = vsub.f32 %v8803_v47, %v4305_v11 }
 0x875   :  { %v4337_v4 = vmul.f32 %v8892_v52, %v8892_v52 }
 0x877   :  { %4363 = vadd.xlane.f32.xlu2 %v4337_v4 }
 0x878   :  { %v4286_v16 = vpop.xlane.xlu2 %4285 }
 0x879   :  { %v4306_v21 = vmul.f32 %v4286_v16, %v8278_v55 }
 0x87b   :  { %v8898_v26 = vsub.f32 %v8808_v39, %v4306_v21 }
 0x87d   :  { %v4338_v40 = vmul.f32 %v8898_v26, %v8898_v26 }
 0x87f   :  { %4365 = vadd.xlane.f32.xlu0 %v4338_v40 }
 0x895   :  { %v4288_v58 = vpop.xlane.xlu0 %4287 }
 0x896   :  { %v4307_v36 = vmul.f32 %v4288_v58, %v8278_v55 }
 0x898   :  { %v8904_v47 = vsub.f32 %v8813_v62, %v4307_v36 }
 0x89a   :  { %v4339_v45 = vmul.f32 %v8904_v47, %v8904_v47 }
 0x89c   :  { %4367 = vadd.xlane.f32.xlu1 %v4339_v45 }
 0x89d   :  { %v4290_v37 = vpop.xlane.xlu1 %4289 }
 0x89e   :  { %v4308_v18 = vmul.f32 %v4290_v37, %v8278_v55 }
 0x8a0   :  { %v8910_v39 = vsub.f32 %v8819_v60, %v4308_v18 }
 0x8a2   :  { %v4340_v28 = vmul.f32 %v8910_v39, %v8910_v39 }
 0x8a4   :  { %4369 = vadd.xlane.f32.xlu2 %v4340_v28 }
 0x8a5   :  { %v4344_v0 = vpop.xlane.xlu1 %4343 }
 0x8a6   :  { %v4375_v5 = vmul.f32 %v4344_v0, %v8278_v55 }
 0x8a8   :  { %v4391_v50 = vadd.f32 1e-05, %v4375_v5 }
 0x8aa   :  { %5460 = vrsqrt.f32 %v4391_v50  ;;  %vm4413_vm1 = vweird.f32 %v4391_v50 }
 0x8ad   :  { %v4350_v62 = vpop.xlane.xlu1 %4349 }
 0x8ae   :  { %v4378_v12 = vmul.f32 %v4350_v62, %v8278_v55 }
 0x8b0   :  { %v5461_v49 = vpop.eup %5460  ;;  %v4394_v23 = vadd.f32 1e-05, %v4378_v12 }
 0x8b1   :  { %v4408_v1 = vmul.f32 %v5461_v49, %v4391_v50  ;;  %vm4414_vm0 = vweird.f32 %v5461_v49 }
 0x8b2   :  { %5462 = vrsqrt.f32 %v4394_v23  ;;  %vm4415_vm8 = vmor %vm4413_vm1, %vm4414_vm0  ;;  %vm4443_vm10 = vweird.f32 %v4394_v23 }
 0x8b3   :  { %v4409_v6 = vmul.f32 %v5461_v49, %v4408_v1 }
 0x8b5   :  { %v4410_v13 = vmul.f32 0.5, %v4409_v6  ;;  %v4356_v60 = vpop.xlane.xlu1 %4355 }
 0x8b6   :  { %v4381_v38 = vmul.f32 %v4356_v60, %v8278_v55 }
 0x8b7   :  { %v4411_v22 = vsub.f32 1.5, %v4410_v13 }
 0x8b8   :  { %v5463_v42 = vpop.eup %5462  ;;  %v4397_v32 = vadd.f32 1e-05, %v4381_v38 }
 0x8b9   :  { %v4412_v43 = vmul.f32 %v5461_v49, %v4411_v22  ;;  %v4438_v31 = vmul.f32 %v5463_v42, %v4394_v23  ;;  %vm4444_vm9 = vweird.f32 %v5463_v42 }
 0x8ba   :  { %5464 = vrsqrt.f32 %v4397_v32  ;;  %vm4445_vm11 = vmor %vm4443_vm10, %vm4444_vm9  ;;  %vm4473_vm13 = vweird.f32 %v4397_v32 }
 0x8bb   :  { %v4416_v54 = vsel %vm4415_vm8, %v5461_v49, %v4412_v43  ;;  %v4439_v7 = vmul.f32 %v5463_v42, %v4438_v31 }
 0x8bc   :  { %v4567_v8 = vmul.f32 %v4416_v54, %v8823_v57 }
 0x8bd   :  { %v4440_v51 = vmul.f32 0.5, %v4439_v7 }
 0x8be   :  { %v4584_v41 = vmul.f32 %v8918_v29, %v4567_v8 }
 0x8bf   :  { %v4441_v10 = vsub.f32 1.5, %v4440_v51 }
 0x8c0   :  { %v5465_v24 = vpop.eup %5464  ;;  %v4601_v17 = vadd.f32 %v8921_v14, %v4584_v41 }
 0x8c1   :  { %v4442_v2 = vmul.f32 %v5463_v42, %v4441_v10  ;;  %v4468_v34 = vmul.f32 %v5465_v24, %v4397_v32  ;;  %vm4474_vm12 = vweird.f32 %v5465_v24 }
 0x8c2   :  { %4617 = vst [vmem:[#allocation2] sm:$0xff] %v4601_v17  ;;  %vm4475_vm14 = vmor %vm4473_vm13, %vm4474_vm12 }
 0x8c3   :  { %v4446_v3 = vsel %vm4445_vm11, %v5463_v42, %v4442_v2  ;;  %v4469_v61 = vmul.f32 %v5465_v24, %v4468_v34 }
 0x8c4   :  { %v4570_v27 = vmul.f32 %v4446_v3, %v8829_v56  ;;  %v4292_v59 = vpop.xlane.xlu2 %4291 }
 0x8c5   :  { %v4470_v30 = vmul.f32 0.5, %v4469_v61  ;;  %v4309_v57 = vmul.f32 %v4292_v59, %v8278_v55 }
 0x8c6   :  { %v4587_v20 = vmul.f32 %v8918_v29, %v4570_v27 }
 0x8c7   :  { %v4471_v19 = vsub.f32 1.5, %v4470_v30  ;;  %v8930_v11 = vsub.f32 %v8842_v44, %v4309_v57 }
 0x8c8   :  { %v4604_v4 = vadd.f32 %v8921_v14, %v4587_v20 }
 0x8c9   :  { %v4472_v16 = vmul.f32 %v5465_v24, %v4471_v19  ;;  %v4341_v21 = vmul.f32 %v8930_v11, %v8930_v11 }
 0x8ca   :  { %4620 = vst [vmem:[#allocation2 + $0x18] sm:$0xff] %v4604_v4 }
 0x8cb   :  { %v4476_v56 = vsel %vm4475_vm14, %v5465_v24, %v4472_v16  ;;  %4371 = vadd.xlane.f32.xlu0 %v4341_v21 }
 0x8cc   :  { %v4573_v40 = vmul.f32 %v4476_v56, %v8835_v48  ;;  %v4294_v58 = vpop.xlane.xlu0 %4293  ;;  %v4346_v36 = vpop.xlane.xlu2 %4345 }
 0x8cd   :  { %v4310_v45 = vmul.f32 %v4294_v58, %v8278_v55  ;;  %v4376_v44 = vmul.f32 %v4346_v36, %v8278_v55  ;;  %v4362_v37 = vpop.xlane.xlu1 %4361 }
 0x8ce   :  { %v4590_v18 = vmul.f32 %v8918_v29, %v4573_v40  ;;  %v4384_v28 = vmul.f32 %v4362_v37, %v8278_v55 }
 0x8cf   :  { %v8941_v0 = vsub.f32 %v8855_v35, %v4310_v45  ;;  %v4392_v5 = vadd.f32 1e-05, %v4376_v44 }
 0x8d0   :  { %v4607_v50 = vadd.f32 %v8921_v14, %v4590_v18  ;;  %v4400_v62 = vadd.f32 1e-05, %v4384_v28 }
 0x8d1   :  { %5466 = vrsqrt.f32 %v4392_v5  ;;  %v4342_v48 = vmul.f32 %v8941_v0, %v8941_v0  ;;  %vm4423_vm3 = vweird.f32 %v4392_v5 }
 0x8d2   :  { %4623 = vst [vmem:[#allocation2 + $0x30] sm:$0xff] %v4607_v50  ;;  %5468 = vrsqrt.f32 %v4400_v62  ;;  %vm4503_vm5 = vweird.f32 %v4400_v62 }
 0x8d3   :  { %4373 = vadd.xlane.f32.xlu1 %v4342_v48 }
 0x8d4   :  { %v4348_v12 = vpop.xlane.xlu0 %4347  ;;  %v4352_v49 = vpop.xlane.xlu2 %4351 }
 0x8d5   :  { %v4377_v23 = vmul.f32 %v4348_v12, %v8278_v55  ;;  %v4379_v1 = vmul.f32 %v4352_v49, %v8278_v55 }
 0x8d7   :  { %v5467_v6 = vpop.eup %5466  ;;  %v4393_v35 = vadd.f32 1e-05, %v4377_v23  ;;  %v8948_v13 = vadd.f32 1e-05, %v4379_v1 }
 0x8d8   :  { %v5469_v60 = vpop.eup %5468  ;;  %v4418_v38 = vmul.f32 %v5467_v6, %v4392_v5  ;;  %vm4424_vm15 = vweird.f32 %v5467_v6 }
 0x8d9   :  { %v4498_v22 = vmul.f32 %v5469_v60, %v4400_v62  ;;  %5470 = vrsqrt.f32 %v4393_v35  ;;  %vm4504_vm2 = vweird.f32 %v5469_v60  ;;  %vm4425_vm4 = vmor %vm4423_vm3, %vm4424_vm15  ;;  %vm4433_vm1 = vweird.f32 %v4393_v35 }
 0x8da   :  { %v4419_v42 = vmul.f32 %v5467_v6, %v4418_v38  ;;  %5472 = vrsqrt.f32 %v8948_v13  ;;  %vm4505_vm6 = vmor %vm4503_vm5, %vm4504_vm2  ;;  %vm4453_vm9 = vweird.f32 %v8948_v13 }
 0x8db   :  { %v4499_v32 = vmul.f32 %v5469_v60, %v4498_v22 }
 0x8dc   :  { %v4420_v43 = vmul.f32 0.5, %v4419_v42  ;;  %v4354_v31 = vpop.xlane.xlu0 %4353  ;;  %v4358_v54 = vpop.xlane.xlu2 %4357 }
 0x8dd   :  { %v4500_v7 = vmul.f32 0.5, %v4499_v32  ;;  %v4380_v8 = vmul.f32 %v4354_v31, %v8278_v55  ;;  %v4382_v51 = vmul.f32 %v4358_v54, %v8278_v55 }
 0x8de   :  { %v4421_v41 = vsub.f32 1.5, %v4420_v43 }
 0x8df   :  { %v5471_v10 = vpop.eup %5470  ;;  %v4501_v24 = vsub.f32 1.5, %v4500_v7  ;;  %v8953_v17 = vadd.f32 1e-05, %v4380_v8  ;;  %v8955_v2 = vadd.f32 1e-05, %v4382_v51 }
 0x8e0   :  { %v5473_v34 = vpop.eup %5472  ;;  %v4422_v3 = vmul.f32 %v5467_v6, %v4421_v41  ;;  %v4428_v61 = vmul.f32 %v5471_v10, %v4393_v35  ;;  %vm4434_vm7 = vweird.f32 %v5471_v10 }
 0x8e1   :  { %v4502_v27 = vmul.f32 %v5469_v60, %v4501_v24  ;;  %v4448_v59 = vmul.f32 %v5473_v34, %v8948_v13  ;;  %5474 = vrsqrt.f32 %v8953_v17  ;;  %vm4454_vm0 = vweird.f32 %v5473_v34  ;;  %vm4435_vm8 = vmor %vm4433_vm1, %vm4434_vm7 }
 0x8e2   :  { %v4426_v30 = vsel %vm4425_vm4, %v5467_v6, %v4422_v3  ;;  %v4429_v57 = vmul.f32 %v5471_v10, %v4428_v61  ;;  %5476 = vrsqrt.f32 %v8955_v2  ;;  %vm4455_vm10 = vmor %vm4453_vm9, %vm4454_vm0  ;;  %vm4463_vm13 = vweird.f32 %v8953_v17 }
 0x8e3   :  { %v4568_v20 = vmul.f32 %v4426_v30, %v8846_v15  ;;  %v4506_v19 = vsel %vm4505_vm6, %v5469_v60, %v4502_v27  ;;  %v4449_v4 = vmul.f32 %v5473_v34, %v4448_v59  ;;  %vm4483_vm15 = vweird.f32 %v8955_v2 }
 0x8e4   :  { %v4576_v16 = vmul.f32 %v4506_v19, %v8850_v53  ;;  %v4430_v21 = vmul.f32 0.5, %v4429_v57  ;;  %v4360_v56 = vpop.xlane.xlu0 %4359 }
 0x8e5   :  { %v4585_v40 = vmul.f32 %v8918_v29, %v4568_v20  ;;  %v4450_v58 = vmul.f32 0.5, %v4449_v4  ;;  %v4383_v36 = vmul.f32 %v4360_v56, %v8278_v55 }
 0x8e6   :  { %v4593_v45 = vmul.f32 %v8918_v29, %v4576_v16  ;;  %v4431_v44 = vsub.f32 1.5, %v4430_v21 }
 0x8e7   :  { %v5475_v37 = vpop.eup %5474  ;;  %v4602_v18 = vadd.f32 %v8921_v14, %v4585_v40  ;;  %v4451_v28 = vsub.f32 1.5, %v4450_v58  ;;  %v8966_v15 = vadd.f32 1e-05, %v4383_v36 }
 0x8e8   :  { %v5477_v5 = vpop.eup %5476  ;;  %v4610_v53 = vadd.f32 %v8921_v14, %v4593_v45  ;;  %v4432_v50 = vmul.f32 %v5471_v10, %v4431_v44  ;;  %v4458_v62 = vmul.f32 %v5475_v37, %v8953_v17  ;;  %vm4464_vm11 = vweird.f32 %v5475_v37 }
 0x8e9   :  { %4618 = vst [vmem:[#allocation2 + $0x8] sm:$0xff] %v4602_v18  ;;  %v4452_v48 = vmul.f32 %v5473_v34, %v4451_v28  ;;  %v4478_v12 = vmul.f32 %v5477_v5, %v8955_v2  ;;  %5478 = vrsqrt.f32 %v8966_v15  ;;  %vm4484_vm12 = vweird.f32 %v5477_v5  ;;  %vm4465_vm14 = vmor %vm4463_vm13, %vm4464_vm11 }
 0x8ea   :  { %4626 = vst [vmem:[#allocation2 + $0x48] sm:$0xff] %v4610_v53  ;;  %v4436_v49 = vsel %vm4435_vm8, %v5471_v10, %v4432_v50  ;;  %v4459_v23 = vmul.f32 %v5475_v37, %v4458_v62  ;;  %v4364_v1 = vpop.xlane.xlu2 %4363  ;;  %vm4485_vm2 = vmor %vm4483_vm15, %vm4484_vm12  ;;  %vm4493_vm4 = vweird.f32 %v8966_v15 }
 0x8eb   :  { %v4569_v6 = vmul.f32 %v4436_v49, %v8863_v9  ;;  %v4456_v35 = vsel %vm4455_vm10, %v5473_v34, %v4452_v48  ;;  %v4479_v60 = vmul.f32 %v5477_v5, %v4478_v12  ;;  %v4385_v38 = vmul.f32 %v4364_v1, %v8278_v55 }
 0x8ec   :  { %v4571_v22 = vmul.f32 %v4456_v35, %v8866_v33  ;;  %v4460_v42 = vmul.f32 0.5, %v4459_v23 }
 0x8ed   :  { %v4586_v13 = vmul.f32 %v8918_v29, %v4569_v6  ;;  %v4480_v32 = vmul.f32 0.5, %v4479_v60  ;;  %v4401_v43 = vadd.f32 1e-05, %v4385_v38 }
 0x8ee   :  { %v4588_v31 = vmul.f32 %v8918_v29, %v4571_v22  ;;  %v4461_v54 = vsub.f32 1.5, %v4460_v42 }
 0x8ef   :  { %v5479_v7 = vpop.eup %5478  ;;  %v4603_v8 = vadd.f32 %v8921_v14, %v4586_v13  ;;  %v4481_v51 = vsub.f32 1.5, %v4480_v32  ;;  %5480 = vrsqrt.f32 %v4401_v43  ;;  %vm4513_vm7 = vweird.f32 %v4401_v43 }
 0x8f0   :  { %v4605_v9 = vadd.f32 %v8921_v14, %v4588_v31  ;;  %v4462_v41 = vmul.f32 %v5475_v37, %v4461_v54  ;;  %v4488_v33 = vmul.f32 %v5479_v7, %v8966_v15  ;;  %vm4494_vm3 = vweird.f32 %v5479_v7 }
 0x8f1   :  { %4619 = vst [vmem:[#allocation2 + $0x10] sm:$0xff] %v4603_v8  ;;  %v4482_v10 = vmul.f32 %v5477_v5, %v4481_v51  ;;  %vm4495_vm5 = vmor %vm4493_vm4, %vm4494_vm3 }
 0x8f2   :  { %4621 = vst [vmem:[#allocation2 + $0x20] sm:$0xff] %v4605_v9  ;;  %v4466_v24 = vsel %vm4465_vm14, %v5475_v37, %v4462_v41  ;;  %v4489_v34 = vmul.f32 %v5479_v7, %v4488_v33  ;;  %v4366_v3 = vpop.xlane.xlu0 %4365 }
 0x8f3   :  { %v4572_v61 = vmul.f32 %v4466_v24, %v8875_v63  ;;  %v4486_v27 = vsel %vm4485_vm2, %v5477_v5, %v4482_v10  ;;  %v4386_v59 = vmul.f32 %v4366_v3, %v8278_v55 }
 0x8f4   :  { %v4574_v30 = vmul.f32 %v4486_v27, %v8878_v25  ;;  %v4490_v17 = vmul.f32 0.5, %v4489_v34 }
 0x8f5   :  { %v5481_v57 = vpop.eup %5480  ;;  %v4589_v20 = vmul.f32 %v8918_v29, %v4572_v61  ;;  %v4402_v19 = vadd.f32 1e-05, %v4386_v59 }
 0x8f6   :  { %v4591_v4 = vmul.f32 %v8918_v29, %v4574_v30  ;;  %v4491_v2 = vsub.f32 1.5, %v4490_v17  ;;  %v4508_v16 = vmul.f32 %v5481_v57, %v4401_v43  ;;  %vm4514_vm6 = vweird.f32 %v5481_v57 }
 0x8f7   :  { %v4606_v21 = vadd.f32 %v8921_v14, %v4589_v20  ;;  %5482 = vrsqrt.f32 %v4402_v19  ;;  %vm4515_vm0 = vmor %vm4513_vm7, %vm4514_vm6  ;;  %vm4523_vm8 = vweird.f32 %v4402_v19 }
 0x8f8   :  { %v4608_v63 = vadd.f32 %v8921_v14, %v4591_v4  ;;  %v4492_v56 = vmul.f32 %v5479_v7, %v4491_v2  ;;  %v4509_v40 = vmul.f32 %v5481_v57, %v4508_v16 }
 0x8f9   :  { %4622 = vst [vmem:[#allocation2 + $0x28] sm:$0xff] %v4606_v21 }
 0x8fa   :  { %4624 = vst [vmem:[#allocation2 + $0x38] sm:$0xff] %v4608_v63  ;;  %v4496_v25 = vsel %vm4495_vm5, %v5479_v7, %v4492_v56  ;;  %v4510_v58 = vmul.f32 0.5, %v4509_v40 }
 0x8fb   :  { %v4575_v36 = vmul.f32 %v4496_v25, %v8886_v46 }
 0x8fc   :  { %v4511_v45 = vsub.f32 1.5, %v4510_v58 }
 0x8fd   :  { %v5483_v44 = vpop.eup %5482  ;;  %v4592_v37 = vmul.f32 %v8918_v29, %v4575_v36 }
 0x8fe   :  { %v4512_v18 = vmul.f32 %v5481_v57, %v4511_v45  ;;  %v4518_v28 = vmul.f32 %v5483_v44, %v4402_v19  ;;  %vm4524_vm1 = vweird.f32 %v5483_v44 }
 0x8ff   :  { %v4609_v5 = vadd.f32 %v8921_v14, %v4592_v37  ;;  %vm4525_vm9 = vmor %vm4523_vm8, %vm4524_vm1 }
 0x900   :  { %v4516_v15 = vsel %vm4515_vm0, %v5481_v57, %v4512_v18  ;;  %v4519_v53 = vmul.f32 %v5483_v44, %v4518_v28 }
 0x901   :  { %4625 = vst [vmem:[#allocation2 + $0x40] sm:$0xff] %v4609_v5  ;;  %v4577_v50 = vmul.f32 %v4516_v15, %v8892_v52 }
 0x902   :  { %v4520_v62 = vmul.f32 0.5, %v4519_v53 }
 0x903   :  { %v4594_v48 = vmul.f32 %v8918_v29, %v4577_v50 }
 0x904   :  { %v4521_v46 = vsub.f32 1.5, %v4520_v62 }
 0x905   :  { %v4611_v12 = vadd.f32 %v8921_v14, %v4594_v48 }
 0x906   :  { %v4522_v49 = vmul.f32 %v5483_v44, %v4521_v46 }
 0x907   :  { %4627 = vst [vmem:[#allocation2 + $0x50] sm:$0xff] %v4611_v12 }
 0x908   :  { %v4526_v23 = vsel %vm4525_vm9, %v5483_v44, %v4522_v49 }
 0x909   :  { %v4578_v1 = vmul.f32 %v4526_v23, %v8898_v26 }
 0x90b   :  { %v4595_v6 = vmul.f32 %v8918_v29, %v4578_v1 }
 0x90d   :  { %v4612_v35 = vadd.f32 %v8921_v14, %v4595_v6 }
 0x90f   :  { %4628 = vst [vmem:[#allocation2 + $0x58] sm:$0xff] %v4612_v35  ;;  %v4368_v52 = vpop.xlane.xlu1 %4367 }
 0x910   :  { %v4387_v60 = vmul.f32 %v4368_v52, %v8278_v55 }
 0x912   :  { %v4403_v38 = vadd.f32 1e-05, %v4387_v60 }
 0x914   :  { %5484 = vrsqrt.f32 %v4403_v38  ;;  %vm4533_vm11 = vweird.f32 %v4403_v38 }
 0x917   :  { %v4370_v22 = vpop.xlane.xlu2 %4369 }
 0x918   :  { %v4388_v42 = vmul.f32 %v4370_v22, %v8278_v55 }
 0x91a   :  { %v5485_v13 = vpop.eup %5484  ;;  %v4404_v32 = vadd.f32 1e-05, %v4388_v42 }
 0x91b   :  { %v4528_v43 = vmul.f32 %v5485_v13, %v4403_v38  ;;  %vm4534_vm10 = vweird.f32 %v5485_v13 }
 0x91c   :  { %5486 = vrsqrt.f32 %v4404_v32  ;;  %vm4535_vm12 = vmor %vm4533_vm11, %vm4534_vm10  ;;  %vm4543_vm14 = vweird.f32 %v4404_v32 }
 0x91d   :  { %v4529_v31 = vmul.f32 %v5485_v13, %v4528_v43 }
 0x91f   :  { %v4530_v54 = vmul.f32 0.5, %v4529_v31 }
 0x921   :  { %v4531_v26 = vsub.f32 1.5, %v4530_v54 }
 0x922   :  { %v5487_v7 = vpop.eup %5486 }
 0x923   :  { %v4532_v8 = vmul.f32 %v5485_v13, %v4531_v26  ;;  %v4538_v51 = vmul.f32 %v5487_v7, %v4404_v32  ;;  %vm4544_vm13 = vweird.f32 %v5487_v7 }
 0x924   :  { %vm4545_vm15 = vmor %vm4543_vm14, %vm4544_vm13 }
 0x925   :  { %v4536_v9 = vsel %vm4535_vm12, %v5485_v13, %v4532_v8  ;;  %v4539_v41 = vmul.f32 %v5487_v7, %v4538_v51 }
 0x926   :  { %v4579_v33 = vmul.f32 %v4536_v9, %v8904_v47 }
 0x927   :  { %v4540_v10 = vmul.f32 0.5, %v4539_v41 }
 0x928   :  { %v4596_v24 = vmul.f32 %v8918_v29, %v4579_v33 }
 0x929   :  { %v4541_v34 = vsub.f32 1.5, %v4540_v10 }
 0x92a   :  { %v4613_v3 = vadd.f32 %v8921_v14, %v4596_v24 }
 0x92b   :  { %v4542_v61 = vmul.f32 %v5487_v7, %v4541_v34 }
 0x92c   :  { %4629 = vst [vmem:[#allocation2 + $0x60] sm:$0xff] %v4613_v3 }
 0x92d   :  { %v4546_v27 = vsel %vm4545_vm15, %v5487_v7, %v4542_v61 }
 0x92e   :  { %v4580_v59 = vmul.f32 %v4546_v27, %v8910_v39 }
 0x930   :  { %v4597_v30 = vmul.f32 %v8918_v29, %v4580_v59 }
 0x932   :  { %v4614_v17 = vadd.f32 %v8921_v14, %v4597_v30 }
 0x934   :  { %4630 = vst [vmem:[#allocation2 + $0x68] sm:$0xff] %v4614_v17 }
 0x93e   :  { %v4372_v47 = vpop.xlane.xlu0 %4371 }
 0x93f   :  { %v4389_v57 = vmul.f32 %v4372_v47, %v8278_v55 }
 0x941   :  { %v4405_v20 = vadd.f32 1e-05, %v4389_v57 }
 0x943   :  { %5488 = vrsqrt.f32 %v4405_v20  ;;  %vm4553_vm3 = vweird.f32 %v4405_v20 }
 0x946   :  { %v4374_v19 = vpop.xlane.xlu1 %4373 }
 0x947   :  { %v4390_v4 = vmul.f32 %v4374_v19, %v8278_v55 }
 0x949   :  { %v5489_v2 = vpop.eup %5488  ;;  %v4406_v16 = vadd.f32 1e-05, %v4390_v4 }
 0x94a   :  { %v4548_v21 = vmul.f32 %v5489_v2, %v4405_v20  ;;  %vm4554_vm2 = vweird.f32 %v5489_v2 }
 0x94b   :  { %5490 = vrsqrt.f32 %v4406_v16  ;;  %vm4555_vm4 = vmor %vm4553_vm3, %vm4554_vm2  ;;  %vm4563_vm6 = vweird.f32 %v4406_v16 }
 0x94c   :  { %v4549_v63 = vmul.f32 %v5489_v2, %v4548_v21 }
 0x94e   :  { %v4550_v56 = vmul.f32 0.5, %v4549_v63 }
 0x950   :  { %v4551_v39 = vsub.f32 1.5, %v4550_v56 }
 0x951   :  { %v5491_v40 = vpop.eup %5490 }
 0x952   :  { %v4552_v25 = vmul.f32 %v5489_v2, %v4551_v39  ;;  %v4558_v58 = vmul.f32 %v5491_v40, %v4406_v16  ;;  %vm4564_vm5 = vweird.f32 %v5491_v40 }
 0x953   :  { %vm4565_vm7 = vmor %vm4563_vm6, %vm4564_vm5 }
 0x954   :  { %v4556_v36 = vsel %vm4555_vm4, %v5489_v2, %v4552_v25  ;;  %v4559_v45 = vmul.f32 %v5491_v40, %v4558_v58 }
 0x955   :  { %v4581_v44 = vmul.f32 %v4556_v36, %v8930_v11 }
 0x956   :  { %v4560_v37 = vmul.f32 0.5, %v4559_v45 }
 0x957   :  { %v4598_v55 = vmul.f32 %v8918_v29, %v4581_v44 }
 0x958   :  { %v4561_v18 = vsub.f32 1.5, %v4560_v37 }
 0x959   :  { %v4615_v28 = vadd.f32 %v8921_v14, %v4598_v55 }
 0x95a   :  { %v4562_v5 = vmul.f32 %v5491_v40, %v4561_v18 }
 0x95b   :  { %4631 = vst [vmem:[#allocation2 + $0x70] sm:$0xff] %v4615_v28 }
 0x95c   :  { %v4566_v15 = vsel %vm4565_vm7, %v5491_v40, %v4562_v5 }
 0x95d   :  { %v4582_v53 = vmul.f32 %v4566_v15, %v8941_v0 }
 0x95f   :  { %v4599_v11 = vmul.f32 %v8918_v29, %v4582_v53 }
 0x961   :  { %v4616_v50 = vadd.f32 %v8921_v14, %v4599_v11 }
 0x963   :  { %4632 = vst [vmem:[#allocation2 + $0x78] sm:$0xff] %v4616_v50 }
 0x964   :  { %4645 = dma.vmem_to_hbm [thread:$0]  %s4638_s1, 2048, %s4640_s28, [#allocation3], %s5542_s29, %s5542_s29, %s5543_s30  }
 0x965   :  { %5535 = dma.done.wait [#allocation3], 2048  }
 0x966   :  { %5536 = vsyncadd [#allocation3], 4294965248 }
 0x967   :  { %4650 = vsyncpa [#allocation3], 1 }

</bundles_post_ra>
